<compile_context>
chip_gen: v5e
topology: v5e:2x2
jax: 0.10.0
libtpu: 0.0.40
codegen_flags: <defaults>
</compile_context>

<pallas_src>
import functools

import jax
import jax.numpy as jnp
import numpy as np
from jax.experimental import pallas as pl
from jax.experimental.pallas import tpu as pltpu


def _conv3x3_wide(xv, w_slab, S, Wp):
    """One 3x3 'wide' SAME conv.

    xv:     (K0, S + 2*(Wp+1)) value; channels on sublanes, flattened padded spatial
            (row width Wp = W+2) on lanes.
    w_slab: (3, Cout, 3*K0) value; kx taps fused into the contraction dim.
    Returns the (Cout, S) f32 accumulator (bias / ReLU applied by the caller).
    """
    cout = w_slab.shape[1]
    acc = jnp.zeros((cout, S), jnp.float32)
    for ky in range(3):
        off = ky * Wp
        patch = jnp.concatenate(
            [xv[:, off + kx: off + kx + S] for kx in range(3)], axis=0)  # (3*K0, S)
        acc = acc + jnp.dot(w_slab[ky], patch,
                            preferred_element_type=jnp.float32)
    return acc


def _ds_layer_kernel(x_ref, w1_ref, b1_ref, w2_ref, b2_ref, w3_ref, b3_ref,
                     mask_ref, o_ref, h1s_ref, *, H, W):
    # x_ref  : (B, Cin, SP+2)  zero-padded input, flattened spatial on lanes
    # w1_ref : (3, Cmid, 3*Cin)  kx-fused slabs       b1_ref: (Cmid, 1)
    # w2_ref : (3, Cmid, 3*Cmid)                      b2_ref: (Cmid, 1)
    # w3_ref : (Cmid, 1)                              b3_ref: (1, 1)
    # mask_ref: (1, S) 1.0 on valid columns, 0.0 on the 2 junk columns per row
    # o_ref  : (B, 1, S)  "wide" prediction rows (junk columns stripped in wrapper)
    # h1s_ref: (B, Cmid, 128 + S + PAD) scratch for the conv1 activation (+ halo)
    B = x_ref.shape[0]
    cmid = w1_ref.shape[1]
    Wp = W + 2
    S = H * Wp
    ALIGN = 128            # lane-aligned start of the h1 interior inside the scratch
    PAD = Wp + 1           # halo needed left/right of the interior by conv2

    mask = mask_ref[...]
    w1v, w2v = w1_ref[...], w2_ref[...]
    b1v, b2v = b1_ref[...], b2_ref[...]
    w3v, b3v = w3_ref[...], b3_ref[...]
    halo = jnp.zeros((cmid, PAD), jnp.float32)

    for b in range(B):
        x = x_ref[b]                                            # (Cin, SP+2)

        # ---- conv1 (3x3 SAME) + ReLU; junk columns masked to 0 so they double as
        #      the left/right zero padding seen by conv2 ----
        h1 = jnp.maximum(_conv3x3_wide(x, w1v, S, Wp) + b1v, 0.0) * mask

        # stage h1 with a zero halo (only two narrow strips are re-zeroed per image)
        h1s_ref[b, :, ALIGN - PAD:ALIGN] = halo
        h1s_ref[b, :, ALIGN + S:ALIGN + S + PAD] = halo
        h1s_ref[b, :, ALIGN:ALIGN + S] = h1

        # ---- conv2 (3x3 SAME) + ReLU ----
        hp = h1s_ref[b, :, ALIGN - PAD:ALIGN + S + PAD]         # (Cmid, S + 2*PAD)
        h2 = jnp.maximum(_conv3x3_wide(hp, w2v, S, Wp) + b2v, 0.0)

        # ---- predlayer: 1x1 conv -> 1 channel (VPU multiply + sublane reduce) ----
        pred = jnp.sum(h2 * w3v, axis=0, keepdims=True) + b3v   # (1, S) lane-dense
        o_ref[b] = pred


def _pick_batch_block(n):
    """Largest batch block that still leaves >= 2 grid steps (megacore sharding)."""
    for cand in (8, 4, 2):
        if n % cand == 0 and n // cand >= 2:
            return cand
    return 1


def ds_layer(x_nchw, params, *, b_blk=None):
    """DSLayer forward.  x_nchw: (N, Cin, H, W) f32 -> (N, 1, H, W) f32.

    params are PyTorch-style: (w1 OIHW, b1 (C,), w2 OIHW, b2 (C,), w3 OIHW, b3 (1,)).
    """
    w1, b1, w2, b2, w3, b3 = params
    N, Cin, H, W = x_nchw.shape
    Cmid = w1.shape[0]
    Wp = W + 2
    SP = (H + 2) * Wp
    S = H * Wp
    PAD = Wp + 1
    assert PAD <= 128, "kernel assumes W + 3 <= 128 (halo fits the aligned margin)"

    if b_blk is None:
        b_blk = _pick_batch_block(N)
    assert N % b_blk == 0
    grid_n = N // b_blk

    # Zero-pad spatially, flatten the padded spatial dims onto the lane axis, and
    # append 2 zero lanes so every shifted tap window of width S stays in bounds.
    xp = jnp.pad(x_nchw, ((0, 0), (0, 0), (1, 1), (1, 1))).reshape(N, Cin, SP)
    xp = jnp.pad(xp, ((0, 0), (0, 0), (0, 2)))

    # kx-fused weight slabs: slab[ky, cout, kx*Cin + cin] = w[cout, cin, ky, kx]
    w1_slab = jnp.transpose(w1, (2, 0, 3, 1)).reshape(3, Cmid, 3 * Cin)
    w2_slab = jnp.transpose(w2, (2, 0, 3, 1)).reshape(3, Cmid, 3 * Cmid)
    b1c = b1.reshape(Cmid, 1)
    b2c = b2.reshape(Cmid, 1)
    w3c = w3.reshape(Cmid, 1)
    b3c = b3.reshape(1, 1)

    # 1.0 on the W valid columns of each width-(W+2) row, 0.0 on the 2 junk columns.
    mask = jnp.asarray((np.arange(S) % Wp < W).astype(np.float32)).reshape(1, S)

    kernel = functools.partial(_ds_layer_kernel, H=H, W=W)
    out_wide = pl.pallas_call(
        kernel,
        out_shape=jax.ShapeDtypeStruct((N, 1, S), jnp.float32),
        grid_spec=pltpu.PrefetchScalarGridSpec(
            num_scalar_prefetch=0,
            grid=(grid_n,),
            in_specs=[
                pl.BlockSpec((b_blk, Cin, SP + 2), lambda n: (n, 0, 0)),
                pl.BlockSpec((3, Cmid, 3 * Cin),   lambda n: (0, 0, 0)),
                pl.BlockSpec((Cmid, 1),            lambda n: (0, 0)),
                pl.BlockSpec((3, Cmid, 3 * Cmid),  lambda n: (0, 0, 0)),
                pl.BlockSpec((Cmid, 1),            lambda n: (0, 0)),
                pl.BlockSpec((Cmid, 1),            lambda n: (0, 0)),
                pl.BlockSpec((1, 1),               lambda n: (0, 0)),
                pl.BlockSpec((1, S),               lambda n: (0, 0)),
            ],
            out_specs=pl.BlockSpec((b_blk, 1, S), lambda n: (n, 0, 0)),
            scratch_shapes=[
                pltpu.VMEM((b_blk, Cmid, 128 + S + PAD), jnp.float32)],
        ),
        compiler_params=pltpu.CompilerParams(
            dimension_semantics=("parallel",)),
    )(xp, w1_slab, b1c, w2_slab, b2c, w3c, b3c, mask)

    # strip the 2 junk columns per image row (free layout plumbing) and restore NCHW
    out = out_wide.reshape(N, H, Wp)[:, :, :W]
    return out.reshape(N, 1, H, W)


def ds_layer_reference(x_nchw, params):
    """Pure-JAX reference (lax conv, NCHW/OIHW) for correctness checking."""
    w1, b1, w2, b2, w3, b3 = params
    dn = ('NCHW', 'OIHW', 'NCHW')
    h = jax.lax.conv_general_dilated(x_nchw, w1, (1, 1), 'SAME',
                                     dimension_numbers=dn,
                                     precision='highest') + b1.reshape(1, -1, 1, 1)
    h = jnp.maximum(h, 0.0)
    h = jax.lax.conv_general_dilated(h, w2, (1, 1), 'SAME',
                                     dimension_numbers=dn,
                                     precision='highest') + b2.reshape(1, -1, 1, 1)
    h = jnp.maximum(h, 0.0)
    h = jax.lax.conv_general_dilated(h, w3, (1, 1), 'SAME',
                                     dimension_numbers=dn,
                                     precision='highest') + b3.reshape(1, -1, 1, 1)
    return h


def make_params(key, cin=64, cmid=64):
    """Deterministic synthetic parameters in PyTorch-style shapes (OIHW weights)."""
    ks = jax.random.split(key, 6)
    s1 = 1.0 / np.sqrt(9 * cin)
    s2 = 1.0 / np.sqrt(9 * cmid)
    s3 = 1.0 / np.sqrt(cmid)
    w1 = jax.random.uniform(ks[0], (cmid, cin, 3, 3), jnp.float32, -s1, s1)
    b1 = jax.random.uniform(ks[1], (cmid,), jnp.float32, -s1, s1)
    w2 = jax.random.uniform(ks[2], (cmid, cmid, 3, 3), jnp.float32, -s2, s2)
    b2 = jax.random.uniform(ks[3], (cmid,), jnp.float32, -s2, s2)
    w3 = jax.random.uniform(ks[4], (1, cmid, 1, 1), jnp.float32, -s3, s3)
    b3 = jax.random.uniform(ks[5], (1,), jnp.float32, -s3, s3)
    return (w1, b1, w2, b2, w3, b3)


if __name__ == "__main__":
    key = jax.random.PRNGKey(0)
    kx, kp = jax.random.split(key)

    N, Cin, H, W = 2, 64, 16, 16          # in_channel=64 (module default)
    x = jax.random.normal(kx, (N, Cin, H, W), jnp.float32)
    params = make_params(kp, cin=Cin, cmid=64)

    out = jax.block_until_ready(ds_layer(x, params))
    assert out.shape == (N, 1, H, W), out.shape

    ref = jax.block_until_ready(ds_layer_reference(x, params))
    np.testing.assert_allclose(np.asarray(out), np.asarray(ref),
                               rtol=1e-2, atol=1e-2)

    print("KERNEL_OK")
</pallas_src>

<mosaic_0001>
module attributes {stable_mosaic.version = 11 : i64} {
  func.func @_ds_layer_kernel(%arg0: i32, %arg1: memref<1x64x326xf32, #tpu.memory_space<vmem>>, %arg2: memref<3x64x192xf32, #tpu.memory_space<vmem>>, %arg3: memref<64x1xf32, #tpu.memory_space<vmem>>, %arg4: memref<3x64x192xf32, #tpu.memory_space<vmem>>, %arg5: memref<64x1xf32, #tpu.memory_space<vmem>>, %arg6: memref<64x1xf32, #tpu.memory_space<vmem>>, %arg7: memref<1x1xf32, #tpu.memory_space<vmem>>, %arg8: memref<1x288xf32, #tpu.memory_space<vmem>>, %arg9: memref<1x1x288xf32, #tpu.memory_space<vmem>>, %arg10: memref<1x64x435xf32, #tpu.memory_space<vmem>>) attributes {dimension_semantics = [#tpu.dimension_semantics<parallel>], iteration_bounds = array<i64: 2>, scalar_prefetch = 0 : i64, scratch_operands = 1 : i64, tpu.core_type = #tpu.core_type<tc>, window_params = [{transform_indices = @transform_0, window_bounds = array<i64: 1, 64, 326>}, {pipeline_mode = #tpu.pipeline_mode<synchronous>, transform_indices = @transform_1, window_bounds = array<i64: 3, 64, 192>}, {pipeline_mode = #tpu.pipeline_mode<synchronous>, transform_indices = @transform_2, window_bounds = array<i64: 64, 1>}, {pipeline_mode = #tpu.pipeline_mode<synchronous>, transform_indices = @transform_3, window_bounds = array<i64: 3, 64, 192>}, {pipeline_mode = #tpu.pipeline_mode<synchronous>, transform_indices = @transform_4, window_bounds = array<i64: 64, 1>}, {pipeline_mode = #tpu.pipeline_mode<synchronous>, transform_indices = @transform_5, window_bounds = array<i64: 64, 1>}, {pipeline_mode = #tpu.pipeline_mode<synchronous>, transform_indices = @transform_6, window_bounds = array<i64: 1, 1>}, {pipeline_mode = #tpu.pipeline_mode<synchronous>, transform_indices = @transform_7, window_bounds = array<i64: 1, 288>}, {transform_indices = @transform_8, window_bounds = array<i64: 1, 1, 288>}]} {
    %c0 = arith.constant 0 : index
    %c0_0 = arith.constant 0 : index
    %0 = vector.load %arg8[%c0, %c0_0] : memref<1x288xf32, #tpu.memory_space<vmem>>, vector<1x288xf32>
    %c0_1 = arith.constant 0 : index
    %c0_2 = arith.constant 0 : index
    %c0_3 = arith.constant 0 : index
    %1 = vector.load %arg2[%c0_1, %c0_2, %c0_3] : memref<3x64x192xf32, #tpu.memory_space<vmem>>, vector<3x64x192xf32>
    %c0_4 = arith.constant 0 : index
    %c0_5 = arith.constant 0 : index
    %c0_6 = arith.constant 0 : index
    %2 = vector.load %arg4[%c0_4, %c0_5, %c0_6] : memref<3x64x192xf32, #tpu.memory_space<vmem>>, vector<3x64x192xf32>
    %c0_7 = arith.constant 0 : index
    %c0_8 = arith.constant 0 : index
    %3 = vector.load %arg3[%c0_7, %c0_8] : memref<64x1xf32, #tpu.memory_space<vmem>>, vector<64x1xf32>
    %c0_9 = arith.constant 0 : index
    %c0_10 = arith.constant 0 : index
    %4 = vector.load %arg5[%c0_9, %c0_10] : memref<64x1xf32, #tpu.memory_space<vmem>>, vector<64x1xf32>
    %c0_11 = arith.constant 0 : index
    %c0_12 = arith.constant 0 : index
    %5 = vector.load %arg6[%c0_11, %c0_12] : memref<64x1xf32, #tpu.memory_space<vmem>>, vector<64x1xf32>
    %c0_13 = arith.constant 0 : index
    %c0_14 = arith.constant 0 : index
    %6 = vector.load %arg7[%c0_13, %c0_14] : memref<1x1xf32, #tpu.memory_space<vmem>>, vector<1x1xf32>
    %cst = arith.constant 0.000000e+00 : f32
    %7 = vector.broadcast %cst : f32 to vector<64x19xf32>
    %c0_15 = arith.constant 0 : index
    %c0_16 = arith.constant 0 : index
    %c0_17 = arith.constant 0 : index
    %8 = vector.load %arg1[%c0_15, %c0_16, %c0_17] : memref<1x64x326xf32, #tpu.memory_space<vmem>>, vector<1x64x326xf32>
    %9 = vector.shape_cast %8 : vector<1x64x326xf32> to vector<64x326xf32>
    %cst_18 = arith.constant 0.000000e+00 : f32
    %10 = vector.broadcast %cst_18 : f32 to vector<64x288xf32>
    %11 = vector.extract_strided_slice %9 {offsets = [0, 0], sizes = [64, 288], strides = [1, 1]} : vector<64x326xf32> to vector<64x288xf32>
    %12 = vector.extract_strided_slice %9 {offsets = [0, 1], sizes = [64, 288], strides = [1, 1]} : vector<64x326xf32> to vector<64x288xf32>
    %13 = vector.extract_strided_slice %9 {offsets = [0, 2], sizes = [64, 288], strides = [1, 1]} : vector<64x326xf32> to vector<64x288xf32>
    %14 = tpu.concatenate %11, %12, %13 in 0 : vector<64x288xf32>, vector<64x288xf32>, vector<64x288xf32> -> vector<192x288xf32>
    %15 = vector.extract_strided_slice %1 {offsets = [0, 0, 0], sizes = [1, 64, 192], strides = [1, 1, 1]} : vector<3x64x192xf32> to vector<1x64x192xf32>
    %16 = vector.shape_cast %15 : vector<1x64x192xf32> to vector<64x192xf32>
    %cst_19 = arith.constant dense<0.000000e+00> : vector<64x288xf32>
    %17 = tpu.matmul %16, %14, %cst_19 {dimension_numbers = #tpu.dot_dimension_numbers<[1], [0], [0], [1], [0, 0, 1, 1], [], []>} : vector<64x192xf32>, vector<192x288xf32>, vector<64x288xf32> -> vector<64x288xf32>
    %18 = arith.addf %10, %17 : vector<64x288xf32>
    %19 = vector.extract_strided_slice %9 {offsets = [0, 18], sizes = [64, 288], strides = [1, 1]} : vector<64x326xf32> to vector<64x288xf32>
    %20 = vector.extract_strided_slice %9 {offsets = [0, 19], sizes = [64, 288], strides = [1, 1]} : vector<64x326xf32> to vector<64x288xf32>
    %21 = vector.extract_strided_slice %9 {offsets = [0, 20], sizes = [64, 288], strides = [1, 1]} : vector<64x326xf32> to vector<64x288xf32>
    %22 = tpu.concatenate %19, %20, %21 in 0 : vector<64x288xf32>, vector<64x288xf32>, vector<64x288xf32> -> vector<192x288xf32>
    %23 = vector.extract_strided_slice %1 {offsets = [1, 0, 0], sizes = [1, 64, 192], strides = [1, 1, 1]} : vector<3x64x192xf32> to vector<1x64x192xf32>
    %24 = vector.shape_cast %23 : vector<1x64x192xf32> to vector<64x192xf32>
    %cst_20 = arith.constant dense<0.000000e+00> : vector<64x288xf32>
    %25 = tpu.matmul %24, %22, %cst_20 {dimension_numbers = #tpu.dot_dimension_numbers<[1], [0], [0], [1], [0, 0, 1, 1], [], []>} : vector<64x192xf32>, vector<192x288xf32>, vector<64x288xf32> -> vector<64x288xf32>
    %26 = arith.addf %18, %25 : vector<64x288xf32>
    %27 = vector.extract_strided_slice %9 {offsets = [0, 36], sizes = [64, 288], strides = [1, 1]} : vector<64x326xf32> to vector<64x288xf32>
    %28 = vector.extract_strided_slice %9 {offsets = [0, 37], sizes = [64, 288], strides = [1, 1]} : vector<64x326xf32> to vector<64x288xf32>
    %29 = vector.extract_strided_slice %9 {offsets = [0, 38], sizes = [64, 288], strides = [1, 1]} : vector<64x326xf32> to vector<64x288xf32>
    %30 = tpu.concatenate %27, %28, %29 in 0 : vector<64x288xf32>, vector<64x288xf32>, vector<64x288xf32> -> vector<192x288xf32>
    %31 = vector.extract_strided_slice %1 {offsets = [2, 0, 0], sizes = [1, 64, 192], strides = [1, 1, 1]} : vector<3x64x192xf32> to vector<1x64x192xf32>
    %32 = vector.shape_cast %31 : vector<1x64x192xf32> to vector<64x192xf32>
    %cst_21 = arith.constant dense<0.000000e+00> : vector<64x288xf32>
    %33 = tpu.matmul %32, %30, %cst_21 {dimension_numbers = #tpu.dot_dimension_numbers<[1], [0], [0], [1], [0, 0, 1, 1], [], []>} : vector<64x192xf32>, vector<192x288xf32>, vector<64x288xf32> -> vector<64x288xf32>
    %34 = arith.addf %26, %33 : vector<64x288xf32>
    %35 = vector.broadcast %3 : vector<64x1xf32> to vector<64x288xf32>
    %36 = arith.addf %34, %35 : vector<64x288xf32>
    %cst_22 = arith.constant 0.000000e+00 : f32
    %37 = vector.broadcast %cst_22 : f32 to vector<64x288xf32>
    %38 = arith.maximumf %36, %37 : vector<64x288xf32>
    %39 = vector.broadcast %0 : vector<1x288xf32> to vector<64x288xf32>
    %40 = arith.mulf %38, %39 : vector<64x288xf32>
    %c0_23 = arith.constant 0 : index
    %c0_24 = arith.constant 0 : index
    %c109 = arith.constant 109 : index
    %41 = vector.load %arg10[%c0_23, %c0_24, %c109] : memref<1x64x435xf32, #tpu.memory_space<vmem>>, vector<1x64x19xf32>
    %42 = vector.shape_cast %41 : vector<1x64x19xf32> to vector<64x19xf32>
    %43 = vector.shape_cast %7 : vector<64x19xf32> to vector<1x64x19xf32>
    tpu.vector_store %arg10[%c0_23, %c0_24, %c109], %43 {strides = array<i32>} : memref<1x64x435xf32, #tpu.memory_space<vmem>>, vector<1x64x19xf32>,
    %c0_25 = arith.constant 0 : index
    %c0_26 = arith.constant 0 : index
    %c416 = arith.constant 416 : index
    %44 = vector.load %arg10[%c0_25, %c0_26, %c416] : memref<1x64x435xf32, #tpu.memory_space<vmem>>, vector<1x64x19xf32>
    %45 = vector.shape_cast %44 : vector<1x64x19xf32> to vector<64x19xf32>
    %46 = vector.shape_cast %7 : vector<64x19xf32> to vector<1x64x19xf32>
    tpu.vector_store %arg10[%c0_25, %c0_26, %c416], %46 {strides = array<i32>} : memref<1x64x435xf32, #tpu.memory_space<vmem>>, vector<1x64x19xf32>,
    %c0_27 = arith.constant 0 : index
    %c0_28 = arith.constant 0 : index
    %c128 = arith.constant 128 : index
    %47 = vector.load %arg10[%c0_27, %c0_28, %c128] : memref<1x64x435xf32, #tpu.memory_space<vmem>>, vector<1x64x288xf32>
    %48 = vector.shape_cast %47 : vector<1x64x288xf32> to vector<64x288xf32>
    %49 = vector.shape_cast %40 : vector<64x288xf32> to vector<1x64x288xf32>
    tpu.vector_store %arg10[%c0_27, %c0_28, %c128], %49 {strides = array<i32>} : memref<1x64x435xf32, #tpu.memory_space<vmem>>, vector<1x64x288xf32>,
    %c0_29 = arith.constant 0 : index
    %c0_30 = arith.constant 0 : index
    %c109_31 = arith.constant 109 : index
    %50 = vector.load %arg10[%c0_29, %c0_30, %c109_31] : memref<1x64x435xf32, #tpu.memory_space<vmem>>, vector<1x64x326xf32>
    %51 = vector.shape_cast %50 : vector<1x64x326xf32> to vector<64x326xf32>
    %cst_32 = arith.constant 0.000000e+00 : f32
    %52 = vector.broadcast %cst_32 : f32 to vector<64x288xf32>
    %53 = vector.extract_strided_slice %51 {offsets = [0, 0], sizes = [64, 288], strides = [1, 1]} : vector<64x326xf32> to vector<64x288xf32>
    %54 = vector.extract_strided_slice %51 {offsets = [0, 1], sizes = [64, 288], strides = [1, 1]} : vector<64x326xf32> to vector<64x288xf32>
    %55 = vector.extract_strided_slice %51 {offsets = [0, 2], sizes = [64, 288], strides = [1, 1]} : vector<64x326xf32> to vector<64x288xf32>
    %56 = tpu.concatenate %53, %54, %55 in 0 : vector<64x288xf32>, vector<64x288xf32>, vector<64x288xf32> -> vector<192x288xf32>
    %57 = vector.extract_strided_slice %2 {offsets = [0, 0, 0], sizes = [1, 64, 192], strides = [1, 1, 1]} : vector<3x64x192xf32> to vector<1x64x192xf32>
    %58 = vector.shape_cast %57 : vector<1x64x192xf32> to vector<64x192xf32>
    %cst_33 = arith.constant dense<0.000000e+00> : vector<64x288xf32>
    %59 = tpu.matmul %58, %56, %cst_33 {dimension_numbers = #tpu.dot_dimension_numbers<[1], [0], [0], [1], [0, 0, 1, 1], [], []>} : vector<64x192xf32>, vector<192x288xf32>, vector<64x288xf32> -> vector<64x288xf32>
    %60 = arith.addf %52, %59 : vector<64x288xf32>
    %61 = vector.extract_strided_slice %51 {offsets = [0, 18], sizes = [64, 288], strides = [1, 1]} : vector<64x326xf32> to vector<64x288xf32>
    %62 = vector.extract_strided_slice %51 {offsets = [0, 19], sizes = [64, 288], strides = [1, 1]} : vector<64x326xf32> to vector<64x288xf32>
    %63 = vector.extract_strided_slice %51 {offsets = [0, 20], sizes = [64, 288], strides = [1, 1]} : vector<64x326xf32> to vector<64x288xf32>
    %64 = tpu.concatenate %61, %62, %63 in 0 : vector<64x288xf32>, vector<64x288xf32>, vector<64x288xf32> -> vector<192x288xf32>
    %65 = vector.extract_strided_slice %2 {offsets = [1, 0, 0], sizes = [1, 64, 192], strides = [1, 1, 1]} : vector<3x64x192xf32> to vector<1x64x192xf32>
    %66 = vector.shape_cast %65 : vector<1x64x192xf32> to vector<64x192xf32>
    %cst_34 = arith.constant dense<0.000000e+00> : vector<64x288xf32>
    %67 = tpu.matmul %66, %64, %cst_34 {dimension_numbers = #tpu.dot_dimension_numbers<[1], [0], [0], [1], [0, 0, 1, 1], [], []>} : vector<64x192xf32>, vector<192x288xf32>, vector<64x288xf32> -> vector<64x288xf32>
    %68 = arith.addf %60, %67 : vector<64x288xf32>
    %69 = vector.extract_strided_slice %51 {offsets = [0, 36], sizes = [64, 288], strides = [1, 1]} : vector<64x326xf32> to vector<64x288xf32>
    %70 = vector.extract_strided_slice %51 {offsets = [0, 37], sizes = [64, 288], strides = [1, 1]} : vector<64x326xf32> to vector<64x288xf32>
    %71 = vector.extract_strided_slice %51 {offsets = [0, 38], sizes = [64, 288], strides = [1, 1]} : vector<64x326xf32> to vector<64x288xf32>
    %72 = tpu.concatenate %69, %70, %71 in 0 : vector<64x288xf32>, vector<64x288xf32>, vector<64x288xf32> -> vector<192x288xf32>
    %73 = vector.extract_strided_slice %2 {offsets = [2, 0, 0], sizes = [1, 64, 192], strides = [1, 1, 1]} : vector<3x64x192xf32> to vector<1x64x192xf32>
    %74 = vector.shape_cast %73 : vector<1x64x192xf32> to vector<64x192xf32>
    %cst_35 = arith.constant dense<0.000000e+00> : vector<64x288xf32>
    %75 = tpu.matmul %74, %72, %cst_35 {dimension_numbers = #tpu.dot_dimension_numbers<[1], [0], [0], [1], [0, 0, 1, 1], [], []>} : vector<64x192xf32>, vector<192x288xf32>, vector<64x288xf32> -> vector<64x288xf32>
    %76 = arith.addf %68, %75 : vector<64x288xf32>
    %77 = vector.broadcast %4 : vector<64x1xf32> to vector<64x288xf32>
    %78 = arith.addf %76, %77 : vector<64x288xf32>
    %cst_36 = arith.constant 0.000000e+00 : f32
    %79 = vector.broadcast %cst_36 : f32 to vector<64x288xf32>
    %80 = arith.maximumf %78, %79 : vector<64x288xf32>
    %81 = vector.broadcast %5 : vector<64x1xf32> to vector<64x288xf32>
    %82 = arith.mulf %80, %81 : vector<64x288xf32>
    %cst_37 = arith.constant dense<0.000000e+00> : vector<288xf32>
    %83 = vector.multi_reduction <add>, %82, %cst_37 [0] : vector<64x288xf32> to vector<288xf32>
    %84 = vector.shape_cast %83 : vector<288xf32> to vector<1x288xf32>
    %85 = vector.broadcast %6 : vector<1x1xf32> to vector<1x288xf32>
    %86 = arith.addf %84, %85 : vector<1x288xf32>
    %c0_38 = arith.constant 0 : index
    %c0_39 = arith.constant 0 : index
    %c0_40 = arith.constant 0 : index
    %87 = vector.load %arg9[%c0_38, %c0_39, %c0_40] : memref<1x1x288xf32, #tpu.memory_space<vmem>>, vector<1x1x288xf32>
    %88 = vector.shape_cast %87 : vector<1x1x288xf32> to vector<1x288xf32>
    %89 = vector.shape_cast %86 : vector<1x288xf32> to vector<1x1x288xf32>
    tpu.vector_store %arg9[%c0_38, %c0_39, %c0_40], %89 {strides = array<i32>} : memref<1x1x288xf32, #tpu.memory_space<vmem>>, vector<1x1x288xf32>,
    return
  }
  func.func @transform_0(%arg0: i32) -> (i32, i32, i32) {
    %c0_i32 = arith.constant 0 : i32
    %c0_i32_0 = arith.constant 0 : i32
    %c0_i32_1 = arith.constant 0 : i32
    return %arg0, %c0_i32, %c0_i32_0 : i32, i32, i32
  }
  func.func @transform_1(%arg0: i32) -> (i32, i32, i32) {
    %c0_i32 = arith.constant 0 : i32
    %c0_i32_0 = arith.constant 0 : i32
    %c0_i32_1 = arith.constant 0 : i32
    %c0_i32_2 = arith.constant 0 : i32
    return %c0_i32, %c0_i32_0, %c0_i32_1 : i32, i32, i32
  }
  func.func @transform_2(%arg0: i32) -> (i32, i32) {
    %c0_i32 = arith.constant 0 : i32
    %c0_i32_0 = arith.constant 0 : i32
    %c0_i32_1 = arith.constant 0 : i32
    return %c0_i32, %c0_i32_0 : i32, i32
  }
  func.func @transform_3(%arg0: i32) -> (i32, i32, i32) {
    %c0_i32 = arith.constant 0 : i32
    %c0_i32_0 = arith.constant 0 : i32
    %c0_i32_1 = arith.constant 0 : i32
    %c0_i32_2 = arith.constant 0 : i32
    return %c0_i32, %c0_i32_0, %c0_i32_1 : i32, i32, i32
  }
  func.func @transform_4(%arg0: i32) -> (i32, i32) {
    %c0_i32 = arith.constant 0 : i32
    %c0_i32_0 = arith.constant 0 : i32
    %c0_i32_1 = arith.constant 0 : i32
    return %c0_i32, %c0_i32_0 : i32, i32
  }
  func.func @transform_5(%arg0: i32) -> (i32, i32) {
    %c0_i32 = arith.constant 0 : i32
    %c0_i32_0 = arith.constant 0 : i32
    %c0_i32_1 = arith.constant 0 : i32
    return %c0_i32, %c0_i32_0 : i32, i32
  }
  func.func @transform_6(%arg0: i32) -> (i32, i32) {
    %c0_i32 = arith.constant 0 : i32
    %c0_i32_0 = arith.constant 0 : i32
    %c0_i32_1 = arith.constant 0 : i32
    return %c0_i32, %c0_i32_0 : i32, i32
  }
  func.func @transform_7(%arg0: i32) -> (i32, i32) {
    %c0_i32 = arith.constant 0 : i32
    %c0_i32_0 = arith.constant 0 : i32
    %c0_i32_1 = arith.constant 0 : i32
    return %c0_i32, %c0_i32_0 : i32, i32
  }
  func.func @transform_8(%arg0: i32) -> (i32, i32, i32) {
    %c0_i32 = arith.constant 0 : i32
    %c0_i32_0 = arith.constant 0 : i32
    %c0_i32_1 = arith.constant 0 : i32
    return %arg0, %c0_i32, %c0_i32_0 : i32, i32, i32
  }
}

</mosaic_0001>

<bundles_post_ra>
// kernel: tpu_custom_call.1
= control target key start
LH: loop header
LB: loop body
LE: loop exit
PB: predicated region body
PF: predicated region fallthrough
CT: control target
= control target key end

     0   :  { %s11089_s0 = inlined_call_operand.hbm [shape: f32[2,64,326], index: 0, kind: input, shape index: {}]   ;;  %s11090_s1 = inlined_call_operand.hbm [shape: f32[3,64,192], index: 1, kind: input, shape index: {}]   ;;  %s11091_s2 = inlined_call_operand.vmem [shape: f32[64,1], index: 2, kind: input, shape index: {}]   ;;  %s11092_s3 = inlined_call_operand.hbm [shape: f32[3,64,192], index: 3, kind: input, shape index: {}]   ;;  %s11093_s4 = inlined_call_operand.vmem [shape: f32[64,1], index: 4, kind: input, shape index: {}]   ;;  %s11094_s5 = inlined_call_operand.vmem [shape: f32[64,1], index: 5, kind: input, shape index: {}]   ;;  %s11095_s6 = inlined_call_operand.<no memory space> [shape: f32[1,1], index: 6, kind: input, shape index: {}]   ;;  %s11096_s7 = inlined_call_operand.vmem [shape: f32[1,288], index: 7, kind: input, shape index: {}]   ;;  %s11097_s8 = inlined_call_operand.hbm [shape: f32[2,1,288], index: 8, kind: output, shape index: {}]  }
   0x1   :  { %11319 = sst [smem:[#allocation83_spill]] %s11090_s1  ;;  %v13_v0 = vstv %s11095_s6 }
   0x2   :  { %11320 = sst [smem:[#allocation84_spill]] %s11092_s3  ;;  %14 = vst [vmem:[#allocation3] sm:$0x1] %v13_v0 }
   0x3   :  { %15 = vsyncpa [#allocation5], 0 }
   0x4   :  { %17 = vsyncpa [#allocation5 + $0x1], 0 }
   0x5   :  { %18 = vsyncpa [#allocation8], 0 }
   0x6   :  { %19 = vsyncpa [#allocation6], 0 }
   0x7   :  { %21 = vsyncpa [#allocation6 + $0x1], 0  ;;  %s6415_s29 = smov 0   ;;  %s6417_s30 = smov 0  }
   0x8   :  { %s6419_s9 = smov 0   ;;  %s6421_s10 = smov 0  }
   0x9 LB: > { %s6436_s6 = sadd.s32 4294967295, %s6350_s10   ;;  %s4577_s11 = sadd.s32 4294967294, %s6350_s10   ;;  %s6350_s10 = sphi %s6421_s10, %s11890_s10   ;;  %s6346_s9 = sphi %s6419_s9, %s11889_s9   ;;  %s6342_s30 = sphi %s6417_s30, %s11888_s30   ;;  %s6338_s29 = sphi %s6415_s29, %s11887_s29  }
   0xa   : > { %p47_p0 = scmp.ne.s32.totalorder %s6342_s30, %s6338_s29  ;;  %p48_p1 = scmp.eq.s32.totalorder %s6436_s6, 0 }
   0xb   : > { %p218_p2 = scmp.eq.s32.totalorder %s6436_s6, 1  ;;  %p224_p3 = scmp.eq.s32.totalorder %s4577_s11, 1 }
   0xc   : > { %p6445_p4 = por %p48_p1, %p47_p0  ;;  %p4578_p5 = scmp.ge.s32.totalorder %s6350_s10, 1 }
   0xd   : > { %p6450_p6 = por %p224_p3, %p47_p0  ;;  %p231_p7 = scmp.lt.s32.totalorder %s6350_s10, 3 }
   0xe   : > { %s11323_s1 = sld [smem:[#allocation83_spill]]  ;;  %s6352_s18 = smov [#allocation7]  }
   0xf   : > { %p6458_p8 = pnand %p4578_p5, %p231_p7  ;;  %s244_s19 = sshll.u32 %s6352_s18, 4  ;;  %s245_s19 = int_to_ptr.vmem [resolvable:$true] %s244_s19 }
  0x10   : > { %s11325_s3 = sld [smem:[#allocation84_spill]]  ;;  %s6353_s23 = smov 256  }
  0x11   : > { %p4773_p9 = pneg %p6458_p8  ;;  %s6354_s24 = smov 16  }
  0x12   : > { %s6355_s25 = smov [#allocation9]   ;;  %s6471_s27 = sadd.s32 1, %s6350_s10  }
  0x13   : > { %p4774_p10 = pnand %p4773_p9, %p48_p1  ;;  %s261_s26 = sshll.u32 %s6355_s25, 4  ;;  %s262_s26 = int_to_ptr.vmem [resolvable:$true] %s261_s26 }
  0x14   : > { %s242_s16 = sshll.u32 %s11323_s1, 4  ;;  %s34_s28 = sadd.s32 1, %s6346_s9  ;;  %s243_s16 = int_to_ptr.hbm [resolvable:$true] %s242_s16 }
  0x15   : > { %4776 = dma.hbm_to_vmem [thread:$0]  (!%p4774_p10), %s243_s16, 6144, %s245_s19, [#allocation8], %s6353_s23, %s6353_s23, %s6354_s24  }
  0x16   : > { %s259_s22 = sshll.u32 %s11325_s3, 4  ;;  %s31_s11 = ssub.s32 %s6350_s10, %s6471_s27  ;;  %s260_s22 = int_to_ptr.hbm [resolvable:$true] %s259_s22 }
  0x17   : > { %4779 = dma.hbm_to_vmem [thread:$0]  (!%p4774_p10), %s260_s22, 6144, %s262_s26, [#allocation8], %s6353_s23, %s6353_s23, %s6354_s24  }
  0x18   : > { %p41_p12 = scmp.ne.s32.totalorder %s6346_s9, %s6342_s30  ;;  %p32_p13 = scmp.eq.s32.totalorder %s31_s11, 0 }
  0x19   : > { %p42_p0 = scmp.eq.s32.totalorder %s6350_s10, 0  ;;  %p4790_p5 = scmp.lt.s32.totalorder %s6350_s10, 2 }
  0x1a   : > { %p6481_p3 = por %p218_p2, %p41_p12  ;;  %s287_s16 = sand.u32 1, %s6346_s9  }
  0x1b   : > { %s6487_s15 = scalar_select %p32_p13, %s6346_s9, %s34_s28  }
  0x1c   : > { %p43_p7 = por %p42_p0, %p41_p12  ;;  %s4756_s18 = smul.u32 192, %s287_s16 }
  0x1d   : > { %11327 = sst [smem:[#allocation14_spill]] %s6487_s15  ;;  %s4757_s19 = smul.u32 192, %s6350_s10 }
  0x1e   : > { %p6491_p9 = pnand %p4790_p5, %p43_p7  ;;  %s291_s24 = scalar_lea.vmem [#allocation4], %s4756_s18 }
  0x1f   : > { %s296_s23 = scalar_lea.hbm %s11089_s0, %s4757_s19  ;;  %s299_s25 = sshll.u32 %s291_s24, 4  ;;  %s300_s25 = int_to_ptr.vmem [resolvable:$true] %s299_s25 }
  0x20   : > { %s297_s26 = sshll.u32 %s296_s23, 4  ;;  %s288_s28 = scalar_lea.sflag [#allocation5], %s287_s16  ;;  %s298_s26 = int_to_ptr.hbm [resolvable:$true] %s297_s26 }
  0x21   : > { %s6250_s11 = sshra.s32 %s298_s26, 4  ;;  %p6254_p10 = pneg %p6491_p9  ;;  %s6251_s11 = int_to_ptr.hbm [resolvable:$true] %s6250_s11 }
  0x22   : > { %s6252_s1 = scalar_lea.hbm %s6251_s11, 192  ;;  %s6257_s21 = scalar_lea.hbm %s11089_s0, 384 }
  0x23   : > { %p6253_p2 = scmp.ne.s32.totalorder %s6251_s11, %s6252_s1  ;;  %p6258_p0 = scmp.lt.s32.totalorder %s6251_s11, %s11089_s0 }
  0x24   : > { %p6259_p5 = scmp.lt.s32.totalorder %s6257_s21, %s6252_s1 }
  0x25   : > { %p6255_p12 = pnand %p6254_p10, %p6253_p2 }
  0x26   : > { %p6260_p7 = por %p6259_p5, %p6258_p0 }
  0x27   : > { %p6256_p13 = pneg %p6255_p12 }
  0x29   : > { %p6261_p11 = pnand %p6260_p7, %p6256_p13 }
  0x2b   : > { %6264 = shalt.err (!%p6261_p11)
}
  0x2c   : > { %s6356_s16 = smov 384   ;;  %s6357_s18 = smov 24  }
  0x2d   : > { %4783 = dma.hbm_to_vmem [thread:$0]  (!%p6491_p9), %s298_s26, 3072, %s300_s25, %s288_s28, %s6356_s16, %s6356_s16, %s6357_s18  }
  0x2e   : > { %311 = sbr.rel (%p6458_p8) target bundleno = 1604 (0x644), region = 52 }
  0x33   : > { %s6511_s3 = sand.u32 1, %s6342_s30  }
  0x34   : > { %s4758_s15 = smul.u32 192, %s6511_s3  ;;  %s314_s23 = scalar_lea.sflag [#allocation5], %s6511_s3 }
  0x36   : > { %s6515_s1 = scalar_lea.vmem [#allocation4], %s4758_s15 }
  0x37   : > { %6325 = dma.done.wait (%p6445_p4), %s314_s23, 3072  }
  0x38   : > { %6327 = vsyncadd (%p6445_p4), %s314_s23, 4294964224 }
  0x39   : > { %6329 = dma.done.wait (%p48_p1), [#allocation8], 12288  }
  0x3a   : > { %6331 = vsyncadd (%p48_p1), [#allocation8], 4294955008  ;;  %v487_v1 = vld [vmem:[%s6515_s1 + $0x20] sm:$0xff]  ;;  %v488_v2 = vld [vmem:[%s6515_s1 + $0x28] sm:$0xff]  ;;  %s6358_s12 = smov 127   ;;  %s6359_s17 = smov 126  }
  0x3b   : > { %v483_v3 = vld [vmem:[%s6515_s1] sm:$0xff]  ;;  %v6528_v4 = vpack.i.bf16 %v488_v2, %v487_v1  ;;  %v484_v5 = vld [vmem:[%s6515_s1 + $0x8] sm:$0xff]  ;;  %v489_v9 = vld [vmem:[%s6515_s1 + $0x30] sm:$0xff]  ;;  %s6360_s20 = smov 110   ;;  %vm579_vm0 = vcmask 1039360   ;;  %vm668_vm1 = vcmask 1031168  }
  0x3c   : > { %v6531_v6 = vpack.i.bf16 %v484_v5, %v483_v3  ;;  %v491_v7 = vld [vmem:[%s6515_s1 + $0x40] sm:$0xff]  ;;  %v492_v8 = vld [vmem:[%s6515_s1 + $0x48] sm:$0xff]  ;;  %v490_v10 = vld [vmem:[%s6515_s1 + $0x38] sm:$0xff]  ;;  %s6361_s24 = smov 92   ;;  %vm853_vm2 = vcmask 900096   ;;  %vm974_vm3 = vcmask 523264  }
  0x3d   : > { %4852 = vrot.lane.b32.xlu1 %v6528_v4, %s6358_s12  ;;  %v6541_v11 = vpack.i.bf16 %v492_v8, %v491_v7  ;;  %v485_v12 = vld [vmem:[%s6515_s1 + $0x10] sm:$0xff]  ;;  %v486_v13 = vld [vmem:[%s6515_s1 + $0x18] sm:$0xff]  ;;  %v6547_v14 = vpack.i.bf16 %v490_v10, %v489_v9  ;;  %v495_v21 = vld [vmem:[%s6515_s1 + $0x60] sm:$0xff]  ;;  %vm1659_vm4 = vcmask 752640   ;;  %vm2193_vm5 = vcmask 1048424   ;;  %s6364_s21 = smov 1  }
  0x3e   : > { %4842 = vrot.lane.b32.xlu0 %v6531_v6, %s6358_s12  ;;  %v493_v15 = vld [vmem:[%s6515_s1 + $0x50] sm:$0xff]  ;;  %v494_v16 = vld [vmem:[%s6515_s1 + $0x58] sm:$0xff]  ;;  %v6551_v17 = vpack.i.bf16 %v486_v13, %v485_v12  ;;  %v496_v22 = vld [vmem:[%s6515_s1 + $0x68] sm:$0xff]  ;;  %s6365_s22 = smov 19   ;;  %vm2202_vm6 = vcmask 417024   ;;  %vm2213_vm7 = vcmask 261120  }
  0x3f   : > { %4862 = vrot.lane.b32.xlu2 %v6541_v11, %s6358_s12  ;;  %v6553_v18 = vpack.i.bf16 %v494_v16, %v493_v15  ;;  %v497_v19 = vld [vmem:[%s6515_s1 + $0x70] sm:$0xff]  ;;  %v498_v20 = vld [vmem:[%s6515_s1 + $0x78] sm:$0xff]  ;;  %v499_v24 = vld [vmem:[%s6515_s1 + $0x80] sm:$0xff]  ;;  %v6569_v26 = vpack.i.bf16 %v496_v22, %v495_v21  ;;  %vm2668_vm8 = vcmask 7168   ;;  %vm3275_vm9 = vcmask 154624   ;;  %s4760_s19 = smul.u32 3, %s6436_s6 }
  0x40   : > { %v6565_v23 = vpack.i.bf16 %v498_v20, %v497_v19  ;;  %v500_v25 = vld [vmem:[%s6515_s1 + $0x88] sm:$0xff]  ;;  %v503_v28 = vld [vmem:[%s6515_s1 + $0xa0] sm:$0xff]  ;;  %v501_v30 = vld [vmem:[%s6515_s1 + $0x90] sm:$0xff]  ;;  %vm3834_vm10 = vcmask 908288   ;;  %vm4462_vm11 = vcmask 1040384   ;;  %vm4464_vm12 = vcmask 1041408  }
  0x41   : > { %v6571_v27 = vpack.i.bf16 %v500_v25, %v499_v24  ;;  %v504_v29 = vld [vmem:[%s6515_s1 + $0xa8] sm:$0xff]  ;;  %v502_v31 = vld [vmem:[%s6515_s1 + $0x98] sm:$0xff]  ;;  %v505_v33 = vld [vmem:[%s6515_s1 + $0xb0] sm:$0xff]  ;;  %s4483_s15 = scalar_lea.hbm %s11097_s8, %s4760_s19  ;;  %s4473_s6 = scalar_lea.sflag [#allocation6], %s6511_s3 }
  0x42   : > { %v6583_v32 = vpack.i.bf16 %v504_v29, %v503_v28  ;;  %v506_v34 = vld [vmem:[%s6515_s1 + $0xb8] sm:$0xff]  ;;  %v6587_v35 = vpack.i.bf16 %v502_v31, %v501_v30  ;;  %s6300_s11 = scalar_lea.hbm %s11097_s8, 6 }
  0x43   : > { %v6589_v36 = vpack.i.bf16 %v506_v34, %v505_v33 }
  0x45   : > { %4857 = vrot.lane.b32.xlu1 %v6547_v14, %s6358_s12 }
  0x46   : > { %4847 = vrot.lane.b32.xlu0 %v6551_v17, %s6358_s12 }
  0x47   : > { %4867 = vrot.lane.b32.xlu2 %v6553_v18, %s6358_s12 }
  0x4d   : > { %4877 = vrot.lane.b32.xlu1 %v6565_v23, %s6358_s12 }
  0x4e   : > { %4872 = vrot.lane.b32.xlu0 %v6569_v26, %s6358_s12 }
  0x4f   : > { %4882 = vrot.lane.b32.xlu2 %v6571_v27, %s6358_s12 }
  0x55   : > { %4892 = vrot.lane.b32.xlu1 %v6583_v32, %s6358_s12 }
  0x56   : > { %4887 = vrot.lane.b32.xlu0 %v6587_v35, %s6358_s12 }
  0x57   : > { %4897 = vrot.lane.b32.xlu2 %v6589_v36, %s6358_s12 }
  0x5d   : > { %4907 = vrot.lane.b32.xlu1 %v6551_v17, %s6359_s17 }
  0x5e   : > { %4902 = vrot.lane.b32.xlu0 %v6531_v6, %s6359_s17 }
  0x5f   : > { %4912 = vrot.lane.b32.xlu2 %v6528_v4, %s6359_s17 }
  0x65   : > { %4922 = vrot.lane.b32.xlu1 %v6541_v11, %s6359_s17 }
  0x66   : > { %4917 = vrot.lane.b32.xlu0 %v6547_v14, %s6359_s17 }
  0x67   : > { %4927 = vrot.lane.b32.xlu2 %v6553_v18, %s6359_s17 }
  0x6d   : > { %4937 = vrot.lane.b32.xlu1 %v6565_v23, %s6359_s17 }
  0x6e   : > { %4932 = vrot.lane.b32.xlu0 %v6569_v26, %s6359_s17 }
  0x6f   : > { %4942 = vrot.lane.b32.xlu2 %v6571_v27, %s6359_s17 }
  0x75   : > { %4952 = vrot.lane.b32.xlu1 %v6583_v32, %s6359_s17 }
  0x76   : > { %4947 = vrot.lane.b32.xlu0 %v6587_v35, %s6359_s17 }
  0x77   : > { %4957 = vrot.lane.b32.xlu2 %v6589_v36, %s6359_s17 }
  0x7d   : > { %4967 = vrot.lane.b32.xlu1 %v6551_v17, %s6360_s20 }
  0x7e   : > { %4962 = vrot.lane.b32.xlu0 %v6531_v6, %s6360_s20 }
  0x7f   : > { %4972 = vrot.lane.b32.xlu2 %v6528_v4, %s6360_s20 }
  0x85   : > { %4982 = vrot.lane.b32.xlu1 %v6541_v11, %s6360_s20 }
  0x86   : > { %4977 = vrot.lane.b32.xlu0 %v6547_v14, %s6360_s20 }
  0x87   : > { %4987 = vrot.lane.b32.xlu2 %v6553_v18, %s6360_s20 }
  0x8d   : > { %4997 = vrot.lane.b32.xlu1 %v6565_v23, %s6360_s20 }
  0x8e   : > { %4992 = vrot.lane.b32.xlu0 %v6569_v26, %s6360_s20 }
  0x8f   : > { %5002 = vrot.lane.b32.xlu2 %v6571_v27, %s6360_s20 }
  0x95   : > { %5012 = vrot.lane.b32.xlu1 %v6583_v32, %s6360_s20 }
  0x96   : > { %5007 = vrot.lane.b32.xlu0 %v6587_v35, %s6360_s20 }
  0x97   : > { %5017 = vrot.lane.b32.xlu2 %v6589_v36, %s6360_s20 }
  0x99   : > { %v4863_v37 = vpop.permute.xlu2 %4862 }
  0x9a   : > { %v4865_v0 = vunpack.i.h.bf16 %v4863_v37  ;;  %v6691_v1 = vunpack.i.l.bf16 %v4863_v37 }
  0x9c   : > { %11336 = vst [vmem:[#allocation22_spill] sm:$0xff] %v6691_v1 }
  0xa1   : > { %v4868_v38 = vpop.permute.xlu2 %4867 }
  0xa2   : > { %v6651_v45 = vunpack.i.h.bf16 %v4868_v38  ;;  %v4869_v46 = vunpack.i.l.bf16 %v4868_v38 }
  0xa4   : > { %11331 = vst [vmem:[#allocation17_spill] sm:$0xff] %v6651_v45  ;;  %v6663_v49 = vsel %vm579_vm0, %v4869_v46, %v6651_v45  ;;  %v6708_v12 = vsel %vm579_vm0, %v4865_v0, %v4869_v46 }
  0xa5   : > { %11332 = vst [vmem:[#allocation18_spill] sm:$0xff] %v6663_v49  ;;  %v6669_v56 = vpack.i.bf16 %v6651_v45, %v6663_v49  ;;  %v6725_v25 = vpack.i.bf16 %v6708_v12, %v6691_v1 }
  0xa9   : > { %v4883_v39 = vpop.permute.xlu2 %4882 }
  0xaa   : > { %v6671_v57 = vunpack.i.h.bf16 %v4883_v39  ;;  %v4884_v58 = vunpack.i.l.bf16 %v4883_v39 }
  0xac   : > { %11334 = vst [vmem:[#allocation20_spill] sm:$0xff] %v6671_v57  ;;  %v6701_v5 = vsel %vm579_vm0, %v4884_v58, %v6671_v57 }
  0xad   : > { %11337 = vst [vmem:[#allocation23_spill] sm:$0xff] %v6701_v5  ;;  %v6705_v10 = vpack.i.bf16 %v6671_v57, %v6701_v5 }
  0xaf   : > { %v4853_v40 = vpop.permute.xlu1 %4852 }
  0xb0   : > { %v6645_v41 = vunpack.i.h.bf16 %v4853_v40  ;;  %v4854_v42 = vunpack.i.l.bf16 %v4853_v40  ;;  %v4843_v43 = vpop.permute.xlu0 %4842 }
  0xb1   : > { %v6659_v48 = vpop.permute.xlu2 %4897  ;;  %v4845_v50 = vunpack.i.h.bf16 %v4843_v43  ;;  %v4844_v51 = vunpack.i.l.bf16 %v4843_v43 }
  0xb2   : > { %11329 = vst [vmem:[#allocation15_spill] sm:$0xff] %v6645_v41  ;;  %v6649_v44 = vsel %vm579_vm0, %v4854_v42, %v6645_v41  ;;  %v6718_v16 = vunpack.i.h.bf16 %v6659_v48  ;;  %v4899_v19 = vunpack.i.l.bf16 %v6659_v48 }
  0xb3   : > { %11330 = vst [vmem:[#allocation16_spill] sm:$0xff] %v6649_v44  ;;  %v6655_v47 = vpack.i.bf16 %v6645_v41, %v6649_v44  ;;  %v6677_v60 = vsel %vm579_vm0, %v4844_v51, %v4845_v50 }
  0xb4   : > { %11339 = vst [vmem:[#allocation25_spill] sm:$0xff] %v6718_v16  ;;  %v6739_v29 = vsel %vm579_vm0, %v4899_v19, %v6718_v16 }
  0xb5   : > { %5032 = vrot.lane.b32.xlu2 %v6655_v47, %s6360_s20  ;;  %11341 = vst [vmem:[#allocation27_spill] sm:$0xff] %v6739_v29  ;;  %v6753_v38 = vpack.i.bf16 %v6718_v16, %v6739_v29 }
  0xb7   : > { %v4858_v52 = vpop.permute.xlu1 %4857 }
  0xb8   : > { %v4848_v53 = vpop.permute.xlu0 %4847  ;;  %v4860_v2 = vunpack.i.h.bf16 %v4858_v52  ;;  %v4859_v3 = vunpack.i.l.bf16 %v4858_v52 }
  0xb9   : > { %v4850_v54 = vunpack.i.h.bf16 %v4848_v53  ;;  %v6665_v55 = vunpack.i.l.bf16 %v4848_v53  ;;  %v4913_v8 = vpop.permute.xlu2 %4912 }
  0xba   : > { %v6711_v13 = vsel %vm579_vm0, %v4859_v3, %v4860_v2  ;;  %v6715_v15 = vsel %vm579_vm0, %v4860_v2, %v6691_v1  ;;  %v6763_v43 = vunpack.i.h.bf16 %v4913_v8  ;;  %v4914_v46 = vunpack.i.l.bf16 %v4913_v8 }
  0xbb   : > { %11333 = vst [vmem:[#allocation19_spill] sm:$0xff] %v6665_v55  ;;  %v6674_v59 = vsel %vm579_vm0, %v4850_v54, %v4854_v42  ;;  %v6681_v61 = vsel %vm579_vm0, %v4845_v50, %v6665_v55  ;;  %v6729_v28 = vpack.i.bf16 %v6715_v15, %v6711_v13 }
  0xbc   : > { %11335 = vst [vmem:[#allocation21_spill] sm:$0xff] %v6681_v61  ;;  %v6685_v62 = vpack.i.bf16 %v6674_v59, %v6665_v55  ;;  %v6689_v63 = vpack.i.bf16 %v6681_v61, %v6677_v60  ;;  %v6775_v53 = vsel %vm668_vm1, %v4914_v46, %v6763_v43 }
  0xbd   : > { %5047 = vrot.lane.b32.xlu2 %v6669_v56, %s6360_s20  ;;  %11338 = vst [vmem:[#allocation24_spill] sm:$0xff] %v6715_v15 }
  0xbe   : > { %5027 = vrot.lane.b32.xlu1 %v6685_v62, %s6360_s20  ;;  %5022 = vrot.lane.b32.xlu0 %v6689_v63, %s6360_s20  ;;  %11343 = vst [vmem:[#allocation29_spill] sm:$0xff] %v6763_v43 }
  0xbf   : > { %v4878_v7 = vpop.permute.xlu1 %4877  ;;  %11345 = vst [vmem:[#allocation31_spill] sm:$0xff] %v6775_v53 }
  0xc0   : > { %v4873_v9 = vpop.permute.xlu0 %4872  ;;  %v4880_v20 = vunpack.i.h.bf16 %v4878_v7  ;;  %v6721_v21 = vunpack.i.l.bf16 %v4878_v7  ;;  %v6789_v7 = vpack.i.bf16 %v6763_v43, %v6775_v53 }
  0xc1   : > { %v4875_v22 = vunpack.i.h.bf16 %v4873_v9  ;;  %v4874_v24 = vunpack.i.l.bf16 %v4873_v9  ;;  %v4928_v39 = vpop.permute.xlu2 %4927 }
  0xc2   : > { %11340 = vst [vmem:[#allocation26_spill] sm:$0xff] %v6721_v21  ;;  %v6742_v30 = vsel %vm579_vm0, %v4880_v20, %v4884_v58  ;;  %v4929_v20 = vunpack.i.l.bf16 %v4928_v39 }
  0xc3   : > { %v6745_v31 = vsel %vm579_vm0, %v4874_v24, %v4875_v22  ;;  %v6749_v33 = vsel %vm579_vm0, %v4875_v22, %v6721_v21  ;;  %v6757_v40 = vpack.i.bf16 %v6742_v30, %v6721_v21 }
  0xc4   : > { %11342 = vst [vmem:[#allocation28_spill] sm:$0xff] %v6749_v33  ;;  %v6761_v42 = vpack.i.bf16 %v6749_v33, %v6745_v31 }
  0xc5   : > { %5062 = vrot.lane.b32.xlu2 %v6705_v10, %s6360_s20 }
  0xc6   : > { %5042 = vrot.lane.b32.xlu1 %v6725_v25, %s6360_s20  ;;  %5037 = vrot.lane.b32.xlu0 %v6729_v28, %s6360_s20 }
  0xc7   : > { %v4893_v34 = vpop.permute.xlu1 %4892 }
  0xc8   : > { %v4888_v37 = vpop.permute.xlu0 %4887  ;;  %v4895_v48 = vunpack.i.h.bf16 %v4893_v34  ;;  %v6765_v50 = vunpack.i.l.bf16 %v4893_v34 }
  0xc9   : > { %v4890_v51 = vunpack.i.h.bf16 %v4888_v37  ;;  %v4889_v52 = vunpack.i.l.bf16 %v4888_v37 }
  0xca   : > { %11344 = vst [vmem:[#allocation30_spill] sm:$0xff] %v6765_v50  ;;  %v6778_v54 = vsel %vm579_vm0, %v4895_v48, %v4899_v19  ;;  %v6799_v19 = vunpack.i.h.bf16 %v4928_v39  ;;  %v4943_v48 = vpop.permute.xlu2 %4942 }
  0xcb   : > { %v6781_v58 = vsel %vm579_vm0, %v4889_v52, %v4890_v51  ;;  %v6785_v0 = vsel %vm579_vm0, %v4890_v51, %v6765_v50  ;;  %v6793_v8 = vpack.i.bf16 %v6778_v54, %v6765_v50 }
  0xcc   : > { %11346 = vst [vmem:[#allocation32_spill] sm:$0xff] %v6785_v0  ;;  %v6797_v9 = vpack.i.bf16 %v6785_v0, %v6781_v58  ;;  %v6811_v51 = vsel %vm668_vm1, %v4929_v20, %v6799_v19 }
  0xcd   : > { %5077 = vrot.lane.b32.xlu2 %v6753_v38, %s6360_s20  ;;  %11347 = vst [vmem:[#allocation33_spill] sm:$0xff] %v6799_v19  ;;  %v6825_v44 = vpack.i.bf16 %v6799_v19, %v6811_v51 }
  0xce   : > { %5057 = vrot.lane.b32.xlu1 %v6757_v40, %s6360_s20  ;;  %5052 = vrot.lane.b32.xlu0 %v6761_v42, %s6360_s20  ;;  %11349 = vst [vmem:[#allocation35_spill] sm:$0xff] %v6811_v51 }
  0xcf   : > { %v4908_v2 = vpop.permute.xlu1 %4907 }
  0xd0   : > { %v4903_v3 = vpop.permute.xlu0 %4902  ;;  %v4910_v22 = vunpack.i.h.bf16 %v4908_v2  ;;  %v6801_v24 = vunpack.i.l.bf16 %v4908_v2 }
  0xd1   : > { %v4905_v34 = vunpack.i.h.bf16 %v4903_v3  ;;  %v4904_v37 = vunpack.i.l.bf16 %v4903_v3 }
  0xd2   : > { %11348 = vst [vmem:[#allocation34_spill] sm:$0xff] %v6801_v24  ;;  %v6814_v39 = vsel %vm668_vm1, %v4910_v22, %v4914_v46  ;;  %v6835_v22 = vunpack.i.h.bf16 %v4943_v48  ;;  %v4958_v0 = vpop.permute.xlu2 %4957 }
  0xd3   : > { %v6817_v52 = vsel %vm668_vm1, %v4904_v37, %v4905_v34  ;;  %v6821_v2 = vsel %vm668_vm1, %v4905_v34, %v6801_v24  ;;  %v6829_v15 = vpack.i.bf16 %v6814_v39, %v6801_v24  ;;  %v4944_v37 = vunpack.i.l.bf16 %v4943_v48 }
  0xd4   : > { %11350 = vst [vmem:[#allocation36_spill] sm:$0xff] %v6821_v2  ;;  %v6833_v46 = vpack.i.bf16 %v6821_v2, %v6817_v52 }
  0xd5   : > { %5092 = vrot.lane.b32.xlu2 %v6789_v7, %s6360_s20  ;;  %11351 = vst [vmem:[#allocation37_spill] sm:$0xff] %v6835_v22  ;;  %v6847_v29 = vsel %vm668_vm1, %v4944_v37, %v6835_v22 }
  0xd6   : > { %5072 = vrot.lane.b32.xlu1 %v6793_v8, %s6360_s20  ;;  %5067 = vrot.lane.b32.xlu0 %v6797_v9, %s6360_s20  ;;  %11353 = vst [vmem:[#allocation39_spill] sm:$0xff] %v6847_v29  ;;  %v6861_v2 = vpack.i.bf16 %v6835_v22, %v6847_v29 }
  0xd7   : > { %v4923_v3 = vpop.permute.xlu1 %4922 }
  0xd8   : > { %v4918_v61 = vpop.permute.xlu0 %4917  ;;  %v4925_v49 = vunpack.i.h.bf16 %v4923_v3  ;;  %v6837_v34 = vunpack.i.l.bf16 %v4923_v3 }
  0xd9   : > { %v4920_v33 = vunpack.i.h.bf16 %v4918_v61  ;;  %v4919_v5 = vunpack.i.l.bf16 %v4918_v61 }
  0xda   : > { %11352 = vst [vmem:[#allocation38_spill] sm:$0xff] %v6837_v34  ;;  %v6850_v48 = vsel %vm668_vm1, %v4925_v49, %v4929_v20  ;;  %v4959_v20 = vunpack.i.l.bf16 %v4958_v0  ;;  %v6895_v51 = vpop.permute.xlu2 %4972 }
  0xdb   : > { %v6853_v3 = vsel %vm668_vm1, %v4919_v5, %v4920_v33  ;;  %v6857_v61 = vsel %vm668_vm1, %v4920_v33, %v6837_v34  ;;  %v6865_v1 = vpack.i.bf16 %v6850_v48, %v6837_v34  ;;  %v6871_v5 = vunpack.i.h.bf16 %v4958_v0 }
  0xdc   : > { %11354 = vst [vmem:[#allocation40_spill] sm:$0xff] %v6857_v61  ;;  %v6869_v49 = vpack.i.bf16 %v6857_v61, %v6853_v3 }
  0xdd   : > { %5107 = vrot.lane.b32.xlu2 %v6825_v44, %s6360_s20  ;;  %v6883_v61 = vsel %vm668_vm1, %v4959_v20, %v6871_v5 }
  0xde   : > { %5087 = vrot.lane.b32.xlu1 %v6829_v15, %s6360_s20  ;;  %5082 = vrot.lane.b32.xlu0 %v6833_v46, %s6360_s20  ;;  %11356 = vst [vmem:[#allocation42_spill] sm:$0xff] %v6883_v61  ;;  %v6899_v29 = vpack.i.bf16 %v6871_v5, %v6883_v61 }
  0xdf   : > { %v4938_v55 = vpop.permute.xlu1 %4937 }
  0xe0   : > { %v4933_v41 = vpop.permute.xlu0 %4932  ;;  %v4940_v53 = vunpack.i.h.bf16 %v4938_v55  ;;  %v6873_v33 = vunpack.i.l.bf16 %v4938_v55 }
  0xe1   : > { %v4935_v45 = vunpack.i.h.bf16 %v4933_v41  ;;  %v4934_v21 = vunpack.i.l.bf16 %v4933_v41 }
  0xe2   : > { %11355 = vst [vmem:[#allocation41_spill] sm:$0xff] %v6873_v33  ;;  %v6886_v0 = vsel %vm668_vm1, %v4940_v53, %v4944_v37 }
  0xe3   : > { %v6889_v55 = vsel %vm668_vm1, %v4934_v21, %v4935_v45  ;;  %v6893_v41 = vsel %vm668_vm1, %v4935_v45, %v6873_v33  ;;  %v6903_v16 = vpack.i.bf16 %v6886_v0, %v6873_v33 }
  0xe4   : > { %11357 = vst [vmem:[#allocation43_spill] sm:$0xff] %v6893_v41  ;;  %v6907_v21 = vpack.i.bf16 %v6893_v41, %v6889_v55 }
  0xe5   : > { %5122 = vrot.lane.b32.xlu2 %v6861_v2, %s6360_s20 }
  0xe6   : > { %5102 = vrot.lane.b32.xlu1 %v6865_v1, %s6360_s20  ;;  %5097 = vrot.lane.b32.xlu0 %v6869_v49, %s6360_s20 }
  0xe7   : > { %v4953_v57 = vpop.permute.xlu1 %4952 }
  0xe8   : > { %v4948_v50 = vpop.permute.xlu0 %4947  ;;  %v4955_v53 = vunpack.i.h.bf16 %v4953_v57  ;;  %v6909_v37 = vunpack.i.l.bf16 %v4953_v57 }
  0xe9   : > { %v4950_v45 = vunpack.i.h.bf16 %v4948_v50  ;;  %v4949_v24 = vunpack.i.l.bf16 %v4948_v50  ;;  %v6927_v50 = vpop.permute.xlu2 %4987 }
  0xea   : > { %v6918_v61 = vsel %vm668_vm1, %v4955_v53, %v4959_v20 }
  0xeb   : > { %v6921_v41 = vsel %vm668_vm1, %v4949_v24, %v4950_v45  ;;  %v6925_v57 = vsel %vm668_vm1, %v4950_v45, %v6909_v37  ;;  %v6931_v43 = vpack.i.bf16 %v6918_v61, %v6909_v37 }
  0xec   : > { %11358 = vst [vmem:[#allocation44_spill] sm:$0xff] %v6925_v57  ;;  %v6935_v34 = vpack.i.bf16 %v6925_v57, %v6921_v41 }
  0xed   : > { %5137 = vrot.lane.b32.xlu2 %v6899_v29, %s6360_s20 }
  0xee   : > { %5117 = vrot.lane.b32.xlu1 %v6903_v16, %s6360_s20  ;;  %5112 = vrot.lane.b32.xlu0 %v6907_v21, %s6360_s20 }
  0xf0   : > { %v6959_v20 = vpop.permute.xlu0 %4962 }
  0xf1   : > { %v6943_v24 = vpop.permute.xlu2 %5002 }
  0xf5   : > { %5152 = vrot.lane.b32.xlu2 %v6528_v4, %s6361_s24 }
  0xf6   : > { %5132 = vrot.lane.b32.xlu1 %v6931_v43, %s6360_s20  ;;  %5127 = vrot.lane.b32.xlu0 %v6935_v34, %s6360_s20  ;;  %s4487_s20 = sshll.u32 %s4483_s15, 4  ;;  %s4488_s20 = int_to_ptr.hbm [resolvable:$true] %s4487_s20 }
  0xf9   : > { %v6953_v4 = vpop.permute.xlu2 %5017 }
  0xfd   : > { %5167 = vrot.lane.b32.xlu2 %v6553_v18, %s6361_s24  ;;  %v6961_v18 = vpop.permute.xlu1 %4967 }
  0xfe   : > { %5147 = vrot.lane.b32.xlu1 %v6551_v17, %s6361_s24  ;;  %5142 = vrot.lane.b32.xlu0 %v6531_v6, %s6361_s24  ;;  %v6971_v17 = vpop.permute.xlu0 %4977 }
 0x105   : > { %5182 = vrot.lane.b32.xlu2 %v6571_v27, %s6361_s24 }
 0x106   : > { %5162 = vrot.lane.b32.xlu1 %v6541_v11, %s6361_s24  ;;  %5157 = vrot.lane.b32.xlu0 %v6547_v14, %s6361_s24  ;;  %v6973_v11 = vpop.permute.xlu1 %4982 }
 0x10d   : > { %5197 = vrot.lane.b32.xlu2 %v6589_v36, %s6361_s24 }
 0x10e   : > { %5177 = vrot.lane.b32.xlu1 %v6565_v23, %s6361_s24  ;;  %5172 = vrot.lane.b32.xlu0 %v6569_v26, %s6361_s24  ;;  %v6983_v23 = vpop.permute.xlu0 %4992  ;;  %v6987_v26 = vpop.permute.xlu1 %4997 }
 0x10f   : > { %v6969_v6 = vpop.permute.xlu2 %5032 }
 0x115   : > { %5212 = vrot.lane.b32.xlu2 %v6655_v47, %s6361_s24 }
 0x116   : > { %5192 = vrot.lane.b32.xlu1 %v6583_v32, %s6361_s24  ;;  %5187 = vrot.lane.b32.xlu0 %v6587_v35, %s6361_s24  ;;  %v7001_v32 = vpop.permute.xlu0 %5007  ;;  %v7005_v36 = vpop.permute.xlu1 %5012 }
 0x117   : > { %v6981_v14 = vpop.permute.xlu2 %5047 }
 0x11d   : > { %5227 = vrot.lane.b32.xlu2 %v6669_v56, %s6361_s24 }
 0x11e   : > { %5207 = vrot.lane.b32.xlu1 %v6685_v62, %s6361_s24  ;;  %5202 = vrot.lane.b32.xlu0 %v6689_v63, %s6361_s24 }
 0x11f   : > { %v6993_v27 = vpop.permute.xlu2 %5062 }
 0x125   : > { %5242 = vrot.lane.b32.xlu2 %v6705_v10, %s6361_s24 }
 0x126   : > { %5222 = vrot.lane.b32.xlu1 %v6725_v25, %s6361_s24  ;;  %5217 = vrot.lane.b32.xlu0 %v6729_v28, %s6361_s24 }
 0x127   : > { %v7003_v35 = vpop.permute.xlu2 %5077 }
 0x128   : > { %11359 = vst [vmem:[#allocation45_spill] sm:$0xff] %v7003_v35  ;;  %v11124_v47 = vunpack.i.h.bf16 %v7003_v35  ;;  %v5079_v56 = vunpack.i.l.bf16 %v7003_v35 }
 0x12a   : > { %v885_v62 = vsel %vm853_vm2, %v5079_v56, %v11124_v47 }
 0x12b   : > { %1081 = vmatpush.msra.mxu2 %v885_v62 }
 0x12d   : > { %5257 = vrot.lane.b32.xlu2 %v6753_v38, %s6361_s24 }
 0x12e   : > { %5237 = vrot.lane.b32.xlu1 %v6757_v40, %s6361_s24  ;;  %5232 = vrot.lane.b32.xlu0 %v6761_v42, %s6361_s24 }
 0x12f   : > { %v7018_v63 = vpop.permute.xlu2 %5092 }
 0x130   : > { %v7020_v10 = vpop.permute.xlu1 %5027  ;;  %v7022_v25 = vpop.permute.xlu0 %5022 }
 0x135   : > { %5272 = vrot.lane.b32.xlu2 %v6789_v7, %s6361_s24 }
 0x136   : > { %5252 = vrot.lane.b32.xlu1 %v6793_v8, %s6361_s24  ;;  %5247 = vrot.lane.b32.xlu0 %v6797_v9, %s6361_s24 }
 0x137   : > { %v7030_v28 = vpop.permute.xlu2 %5107 }
 0x138   : > { %v7032_v38 = vpop.permute.xlu1 %5042  ;;  %v7034_v40 = vpop.permute.xlu0 %5037 }
 0x13d   : > { %5287 = vrot.lane.b32.xlu2 %v6825_v44, %s6361_s24 }
 0x13e   : > { %5267 = vrot.lane.b32.xlu1 %v6829_v15, %s6361_s24  ;;  %5262 = vrot.lane.b32.xlu0 %v6833_v46, %s6361_s24 }
 0x13f   : > { %v7042_v42 = vpop.permute.xlu2 %5122 }
 0x140   : > { %v7044_v7 = vpop.permute.xlu1 %5057  ;;  %v5053_v8 = vpop.permute.xlu0 %5052 }
 0x141   : > { %v5060_v22 = vunpack.i.h.bf16 %v7044_v7  ;;  %v11133_v47 = vunpack.i.l.bf16 %v7044_v7  ;;  %v5055_v35 = vunpack.i.h.bf16 %v5053_v8 }
 0x145   : > { %5302 = vrot.lane.b32.xlu2 %v6861_v2, %s6361_s24 }
 0x146   : > { %5282 = vrot.lane.b32.xlu1 %v6865_v1, %s6361_s24  ;;  %5277 = vrot.lane.b32.xlu0 %v6869_v49, %s6361_s24  ;;  %v5064_v1 = vunpack.i.l.bf16 %v6993_v27 }
 0x147   : > { %v7052_v44 = vpop.permute.xlu2 %5137 }
 0x148   : > { %v11130_v15 = vunpack.i.h.bf16 %v7052_v44  ;;  %v11132_v9 = vunpack.i.l.bf16 %v7052_v44  ;;  %v7056_v46 = vpop.permute.xlu1 %5072  ;;  %v5068_v53 = vpop.permute.xlu0 %5067 }
 0x149   : > { %v5075_v45 = vunpack.i.h.bf16 %v7056_v46  ;;  %v11131_v62 = vunpack.i.l.bf16 %v7056_v46  ;;  %v5070_v2 = vunpack.i.h.bf16 %v5068_v53  ;;  %v5069_v57 = vunpack.i.l.bf16 %v5068_v53 }
 0x14a   : > { %v901_v49 = vsel %vm853_vm2, %v11132_v9, %v11130_v15  ;;  %v11134_v53 = vunpack.i.h.bf16 %v6981_v14  ;;  %v5049_v15 = vunpack.i.l.bf16 %v6981_v14 }
 0x14b   : > { %v884_v19 = vsel %vm853_vm2, %v5075_v45, %v5079_v56  ;;  %v883_v33 = vsel %vm853_vm2, %v5070_v2, %v11131_v62  ;;  %1130 = vmatpush.msra.mxu3 %v901_v49  ;;  %v5054_v56 = vunpack.i.l.bf16 %v5053_v8  ;;  %v882_v45 = vsel %vm853_vm2, %v5069_v57, %v5070_v2 }
 0x14c   : > { %999 = vmatpush.msra.mxu0 %v884_v19  ;;  %1082 = vmatpush.msra.mxu2 %v883_v33  ;;  %v11360_v49 = vunpack.i.h.bf16 %v6993_v27  ;;  %v5045_v33 = vunpack.i.h.bf16 %v7032_v38  ;;  %v5040_v62 = vunpack.i.h.bf16 %v7034_v40  ;;  %v879_v57 = vsel %vm853_vm2, %v5055_v35, %v11133_v47 }
 0x14d   : > { %5317 = vrot.lane.b32.xlu2 %v6899_v29, %s6361_s24  ;;  %v11135_v2 = vunpack.i.h.bf16 %v6969_v6  ;;  %v877_v8 = vsel %vm853_vm2, %v5049_v15, %v11134_v53  ;;  %v5025_v47 = vunpack.i.h.bf16 %v7022_v25  ;;  %v5024_v53 = vunpack.i.l.bf16 %v7022_v25 }
 0x14e   : > { %5297 = vrot.lane.b32.xlu1 %v6903_v16, %s6361_s24  ;;  %5292 = vrot.lane.b32.xlu0 %v6907_v21, %s6361_s24  ;;  %v881_v19 = vsel %vm853_vm2, %v5064_v1, %v11360_v49  ;;  %v880_v21 = vsel %vm853_vm2, %v5060_v22, %v5064_v1  ;;  %v5039_v49 = vunpack.i.l.bf16 %v7034_v40  ;;  %v5030_v22 = vunpack.i.h.bf16 %v7020_v10 }
 0x14f   : > { %1000 = vmatpush.msra.mxu0 %v882_v45  ;;  %1083 = vmatpush.msra.mxu2 %v881_v19  ;;  %v7086_v29 = vpop.permute.xlu2 %5152  ;;  %v5034_v45 = vunpack.i.l.bf16 %v6969_v6  ;;  %v878_v19 = vsel %vm853_vm2, %v5054_v56, %v5055_v35  ;;  %v11136_v1 = vunpack.i.l.bf16 %v7020_v10  ;;  %v11138_v35 = vunpack.i.h.bf16 %v6953_v4 }
 0x150   : > { %v7090_v16 = vpop.permute.xlu1 %5087  ;;  %v7092_v9 = vpop.permute.xlu0 %5082  ;;  %v5019_v56 = vunpack.i.l.bf16 %v6953_v4  ;;  %v11137_v25 = vunpack.i.l.bf16 %v7005_v36 }
 0x151   : > { %1001 = vmatpush.msra.mxu0 %v880_v21  ;;  %1084 = vmatpush.msra.mxu2 %v879_v57  ;;  %v876_v21 = vsel %vm853_vm2, %v5045_v33, %v5049_v15  ;;  %v11361_v57 = vunpack.i.l.bf16 %v7032_v38  ;;  %v874_v15 = vsel %vm853_vm2, %v5039_v49, %v5040_v62  ;;  %v873_v33 = vsel %vm853_vm2, %v5034_v45, %v11135_v2 }
 0x152   : > { %v11139_v49 = vunpack.i.h.bf16 %v6943_v24  ;;  %v869_v2 = vsel %vm853_vm2, %v5019_v56, %v11138_v35 }
 0x153   : > { %1002 = vmatpush.msra.mxu0 %v878_v19  ;;  %1085 = vmatpush.msra.mxu2 %v877_v8  ;;  %v875_v40 = vsel %vm853_vm2, %v5040_v62, %v11361_v57  ;;  %v5015_v8 = vunpack.i.h.bf16 %v7005_v36  ;;  %v871_v62 = vsel %vm853_vm2, %v5025_v47, %v11136_v1  ;;  %v4995_v1 = vunpack.i.h.bf16 %v6983_v23 }
 0x155   : > { %1003 = vmatpush.msra.mxu0 %v876_v21  ;;  %1086 = vmatpush.msra.mxu2 %v875_v40  ;;  %v5010_v21 = vunpack.i.h.bf16 %v7001_v32  ;;  %v5004_v40 = vunpack.i.l.bf16 %v6943_v24 }
 0x156   : > { %5312 = vrot.lane.b32.xlu1 %v6931_v43, %s6361_s24  ;;  %5307 = vrot.lane.b32.xlu0 %v6935_v34, %s6361_s24  ;;  %v872_v34 = vsel %vm853_vm2, %v5030_v22, %v5034_v45  ;;  %v5000_v45 = vunpack.i.h.bf16 %v6987_v26  ;;  %v11140_v22 = vunpack.i.l.bf16 %v6987_v26  ;;  %s6294_s24 = sshra.s32 %s4488_s20, 4  ;;  %s6295_s24 = int_to_ptr.hbm [resolvable:$true] %s6294_s24 }
 0x157   : > { %1004 = vmatpush.msra.mxu0 %v874_v15  ;;  %1087 = vmatpush.msra.mxu2 %v873_v33  ;;  %v7124_v19 = vpop.permute.xlu2 %5167  ;;  %v5009_v15 = vunpack.i.l.bf16 %v7001_v32  ;;  %v870_v33 = vsel %vm853_vm2, %v5024_v53, %v5025_v47  ;;  %v867_v32 = vsel %vm853_vm2, %v5010_v21, %v11137_v25  ;;  %v11141_v47 = vunpack.i.h.bf16 %v6927_v50  ;;  %s6296_s25 = scalar_lea.hbm %s6295_s24, 3  ;;  %p6301_p11 = scmp.lt.s32.totalorder %s6295_s24, %s11097_s8 }
 0x158   : > { %v7128_v43 = vpop.permute.xlu1 %5102  ;;  %v7130_v57 = vpop.permute.xlu0 %5097  ;;  %v4989_v53 = vunpack.i.l.bf16 %v6927_v50  ;;  %p6297_p1 = scmp.ne.s32.totalorder %s6295_s24, %s6296_s25  ;;  %p6302_p9 = scmp.lt.s32.totalorder %s6300_s11, %s6296_s25 }
 0x159   : > { %1005 = vmatpush.msra.mxu0 %v872_v34  ;;  %1088 = vmatpush.msra.mxu2 %v871_v62  ;;  %v868_v34 = vsel %vm853_vm2, %v5015_v8, %v5019_v56  ;;  %v4994_v62 = vunpack.i.l.bf16 %v6983_v23  ;;  %v4985_v56 = vunpack.i.h.bf16 %v6973_v11  ;;  %v864_v23 = vsel %vm853_vm2, %v5000_v45, %v5004_v40 }
 0x15a   : > { %v861_v25 = vsel %vm853_vm2, %v4989_v53, %v11141_v47  ;;  %v11142_v45 = vunpack.i.l.bf16 %v6961_v18  ;;  %v7191_v47 = vld [vmem:[#allocation7 + $0x80] sm:$0xff]  ;;  %p6298_p4 = pnand %p6297_p1, %p6481_p3  ;;  %p6303_p2 = por %p6302_p9, %p6301_p11 }
 0x15b   : > { %1006 = vmatpush.msra.mxu0 %v870_v33  ;;  %1089 = vmatpush.msra.mxu2 %v869_v2  ;;  %v866_v2 = vsel %vm853_vm2, %v5009_v15, %v5010_v21  ;;  %v865_v33 = vsel %vm853_vm2, %v5004_v40, %v11139_v49  ;;  %v863_v21 = vsel %vm853_vm2, %v4995_v1, %v11140_v22  ;;  %v11143_v15 = vunpack.i.h.bf16 %v6895_v51 }
 0x15c   : > { %v862_v49 = vsel %vm853_vm2, %v4994_v62, %v4995_v1  ;;  %v4970_v40 = vunpack.i.h.bf16 %v6961_v18  ;;  %v4965_v22 = vunpack.i.h.bf16 %v6959_v20  ;;  %v4964_v1 = vunpack.i.l.bf16 %v6959_v20  ;;  %p6299_p8 = pneg %p6298_p4 }
 0x15d   : > { %1007 = vmatpush.msra.mxu0 %v868_v34  ;;  %1090 = vmatpush.msra.mxu2 %v867_v32  ;;  %v4980_v34 = vunpack.i.h.bf16 %v6971_v17 }
 0x15e   : > { %v855_v20 = vsel %vm853_vm2, %v4965_v22, %v11142_v45  ;;  %v11363_v45 = vunpack.i.l.bf16 %v7052_v44  ;;  %p6304_p10 = pnand %p6303_p2, %p6299_p8 }
 0x15f   : > { %1008 = vmatpush.msra.mxu0 %v866_v2  ;;  %1091 = vmatpush.msra.mxu2 %v865_v33  ;;  %v7158_v8 = vpop.permute.xlu2 %5182  ;;  %v4974_v2 = vunpack.i.l.bf16 %v6895_v51  ;;  %v4979_v33 = vunpack.i.l.bf16 %v6971_v17 }
 0x160   : > { %v7162_v32 = vpop.permute.xlu1 %5117  ;;  %v7164_v35 = vpop.permute.xlu0 %5112 }
 0x161   : > { %1009 = vmatpush.msra.mxu0 %v864_v23  ;;  %1092 = vmatpush.msra.mxu2 %v863_v21  ;;  %v860_v23 = vsel %vm853_vm2, %v4985_v56, %v4989_v53  ;;  %v11362_v21 = vunpack.i.l.bf16 %v6973_v11  ;;  %v858_v62 = vsel %vm853_vm2, %v4979_v33, %v4980_v34 }
 0x163   : > { %1010 = vmatpush.msra.mxu0 %v862_v49  ;;  %1093 = vmatpush.msra.mxu2 %v861_v25  ;;  %v859_v17 = vsel %vm853_vm2, %v4980_v34, %v11362_v21  ;;  %v857_v25 = vsel %vm853_vm2, %v4974_v2, %v11143_v15 }
 0x165   : > { %1011 = vmatpush.msra.mxu0 %v860_v23  ;;  %1094 = vmatpush.msra.mxu2 %v859_v17  ;;  %v856_v23 = vsel %vm853_vm2, %v4970_v40, %v4974_v2  ;;  %v5124_v2 = vunpack.i.l.bf16 %v7042_v42  ;;  %v5120_v40 = vunpack.i.h.bf16 %v7162_v32 }
 0x167   : > { %1012 = vmatpush.msra.mxu0 %v858_v62  ;;  %1095 = vmatpush.msra.mxu2 %v857_v25  ;;  %v7189_v49 = vpop.permute.xlu2 %5197  ;;  %v5125_v62 = vunpack.i.h.bf16 %v7042_v42  ;;  %v854_v25 = vsel %vm853_vm2, %v4964_v1, %v4965_v22  ;;  %v5119_v22 = vunpack.i.l.bf16 %v7162_v32  ;;  %v5115_v1 = vunpack.i.h.bf16 %v7164_v35  ;;  %v6147_v32 = vld [vmem:[%s6515_s1 + $0x60] sm:$0xff] }
 0x168   : > { %v7193_v53 = vpop.permute.xlu1 %5132  ;;  %v5128_v56 = vpop.permute.xlu0 %5127  ;;  %v11373_v42 = vunpack.i.l.bf16 %v7044_v7  ;;  %v6148_v7 = vld [vmem:[%s6515_s1 + $0x48] sm:$0xff] }
 0x169   : > { %v5135_v34 = vunpack.i.h.bf16 %v7193_v53  ;;  %v5134_v33 = vunpack.i.l.bf16 %v7193_v53  ;;  %v5130_v21 = vunpack.i.h.bf16 %v5128_v56  ;;  %v5129_v17 = vunpack.i.l.bf16 %v5128_v56  ;;  %1013 = vmatpush.msra.mxu0 %v856_v23  ;;  %1096 = vmatpush.msra.mxu2 %v855_v20  ;;  %v11370_v53 = vld [vmem:[#allocation41_spill] sm:$0xff] }
 0x16a   : > { %1097 = vmatmul.f32.vlgmr.msra.gmra.mxu2 %v7191_v47  ;;  %v5110_v23 = vunpack.i.h.bf16 %v7030_v28  ;;  %v5114_v20 = vunpack.i.l.bf16 %v7164_v35  ;;  %v5104_v35 = vunpack.i.l.bf16 %v7128_v43 }
 0x16b   : > { %1318 = vmatpush.msrb.mxu2 %v6918_v61  ;;  %1014 = vmatpush.msra.mxu0 %v854_v25  ;;  %v900_v15 = vsel %vm853_vm2, %v5135_v34, %v11363_v45  ;;  %v899_v56 = vsel %vm853_vm2, %v5130_v21, %v5134_v33  ;;  %v898_v61 = vsel %vm853_vm2, %v5129_v17, %v5130_v21  ;;  %v5109_v45 = vunpack.i.l.bf16 %v7030_v28  ;;  %v7230_v34 = vld [vmem:[#allocation7 + $0x90] sm:$0xff] }
 0x16c   : > { %1015 = vmatmul.f32.vlgmr.msra.gmra.mxu0 %v7191_v47  ;;  %1048 = vmatpush.msra.mxu1 %v900_v15  ;;  %v5100_v25 = vunpack.i.h.bf16 %v7130_v57  ;;  %v11376_v28 = vunpack.i.h.bf16 %v6981_v14  ;;  %v7357_v14 = vld [vmem:[#allocation7 + $0xc0] sm:$0xff] }
 0x16d   : > { %1269 = vmatpush.msrb.mxu0 %v6778_v54  ;;  %1319 = vmatpush.msrb.mxu2 %v6921_v41  ;;  %v897_v54 = vsel %vm853_vm2, %v5124_v2, %v5125_v62  ;;  %v896_v41 = vsel %vm853_vm2, %v5120_v40, %v5124_v2  ;;  %v5099_v2 = vunpack.i.l.bf16 %v7130_v57  ;;  %v5095_v40 = vunpack.i.h.bf16 %v7018_v63 }
 0x16e   : > { %1131 = vmatpush.msra.mxu3 %v899_v56  ;;  %1049 = vmatpush.msra.mxu1 %v898_v61  ;;  %v5094_v56 = vunpack.i.l.bf16 %v7018_v63  ;;  %v5090_v61 = vunpack.i.h.bf16 %v7090_v16  ;;  %v5085_v57 = vunpack.i.h.bf16 %v7092_v9 }
 0x16f   : > { %1270 = vmatpush.msrb.mxu0 %v6781_v58  ;;  %1320 = vmatpush.msrb.mxu2 %v6886_v0  ;;  %v7227_v15 = vpop.permute.xlu2 %5212  ;;  %v5105_v58 = vunpack.i.h.bf16 %v7128_v43  ;;  %v895_v0 = vsel %vm853_vm2, %v5115_v1, %v5119_v22  ;;  %v11380_v43 = vunpack.i.h.bf16 %v6969_v6  ;;  %v11382_v6 = vunpack.i.l.bf16 %v7020_v10 }
 0x170   : > { %1132 = vmatpush.msra.mxu3 %v897_v54  ;;  %v7232_v21 = vpop.permute.xlu1 %5147  ;;  %v7234_v17 = vpop.permute.xlu0 %5142  ;;  %1050 = vmatpush.msra.mxu1 %v896_v41  ;;  %v5084_v41 = vunpack.i.l.bf16 %v7092_v9  ;;  %v11366_v9 = vld [vmem:[#allocation45_spill] sm:$0xff]  ;;  %v11388_v10 = vunpack.i.l.bf16 %v7005_v36  ;;  %v11394_v36 = vld [vmem:[#allocation26_spill] sm:$0xff] }
 0x171   : > { %1271 = vmatpush.msrb.mxu0 %v6742_v30  ;;  %1321 = vmatpush.msrb.mxu2 %v6889_v55  ;;  %v894_v30 = vsel %vm853_vm2, %v5114_v20, %v5115_v1  ;;  %v893_v55 = vsel %vm853_vm2, %v5109_v45, %v5110_v23  ;;  %v891_v1 = vsel %vm853_vm2, %v5100_v25, %v5104_v35 }
 0x172   : > { %1133 = vmatpush.msra.mxu3 %v895_v0  ;;  %1100 = vmatmul.f32.gmra.mxu2 %v7230_v34  ;;  %v890_v20 = vsel %vm853_vm2, %v5099_v2, %v5100_v25  ;;  %v7281_v0 = vld [vmem:[#allocation7 + $0x88] sm:$0xff]  ;;  %v11367_v25 = vunpack.i.h.bf16 %v11366_v9  ;;  %v11387_v9 = vld [vmem:[#allocation30_spill] sm:$0xff] }
 0x173   : > { %1272 = vmatpush.msrb.mxu0 %v6745_v31  ;;  %1322 = vmatpush.msrb.mxu2 %v6850_v48  ;;  %v892_v31 = vsel %vm853_vm2, %v5105_v58, %v5109_v45  ;;  %v5089_v48 = vunpack.i.l.bf16 %v7090_v16  ;;  %v7279_v58 = vld [vmem:[#allocation7 + $0xa0] sm:$0xff]  ;;  %v6144_v2 = vld [vmem:[%s6515_s1 + $0xa8] sm:$0xff] }
 0x174   : > { %1051 = vmatpush.msra.mxu1 %v894_v30  ;;  %1134 = vmatpush.msra.mxu3 %v893_v55  ;;  %v11369_v30 = vunpack.i.l.bf16 %v7056_v46  ;;  %v6145_v55 = vld [vmem:[%s6515_s1 + $0x90] sm:$0xff]  ;;  %v6146_v46 = vld [vmem:[%s6515_s1 + $0x78] sm:$0xff]  ;;  %v6151_v16 = vld [vmem:[%s6515_s1] sm:$0xff] }
 0x175   : > { %1018 = vmatmul.f32.gmra.mxu0 %v7230_v34  ;;  %1323 = vmatpush.msrb.mxu2 %v6853_v3  ;;  %v889_v3 = vsel %vm853_vm2, %v5094_v56, %v5095_v40 }
 0x176   : > { %1273 = vmatpush.msrb.mxu0 %v6708_v12  ;;  %1052 = vmatpush.msra.mxu1 %v892_v31  ;;  %v11372_v31 = vld [vmem:[#allocation33_spill] sm:$0xff] }
 0x177   : > { %1135 = vmatpush.msra.mxu3 %v891_v1  ;;  %1324 = vmatpush.msrb.mxu2 %v6814_v39  ;;  %v7266_v54 = vpop.permute.xlu2 %5227  ;;  %v888_v39 = vsel %vm853_vm2, %v5090_v61, %v5094_v56  ;;  %v7319_v56 = vld [vmem:[#allocation7 + $0x98] sm:$0xff]  ;;  %v11371_v61 = vunpack.i.h.bf16 %v6993_v27  ;;  %v11378_v1 = vunpack.i.l.bf16 %v7032_v38 }
 0x178   : > { %1274 = vmatpush.msrb.mxu0 %v6711_v13  ;;  %1053 = vmatpush.msra.mxu1 %v890_v20  ;;  %v7272_v12 = vpop.permute.xlu1 %5162  ;;  %v7274_v45 = vpop.permute.xlu0 %5157  ;;  %v887_v13 = vsel %vm853_vm2, %v5085_v57, %v5089_v48  ;;  %v6149_v20 = vld [vmem:[%s6515_s1 + $0x30] sm:$0xff]  ;;  %v6150_v38 = vld [vmem:[%s6515_s1 + $0x18] sm:$0xff] }
 0x179   : > { %1136 = vmatpush.msra.mxu3 %v889_v3  ;;  %1325 = vmatpush.msrb.mxu2 %v6817_v52  ;;  %v11364_v52 = vunpack.i.h.bf16 %v7052_v44  ;;  %v11379_v3 = vld [vmem:[#allocation34_spill] sm:$0xff] }
 0x17a   : > { %1275 = vmatpush.msrb.mxu0 %v6674_v59  ;;  %1054 = vmatpush.msra.mxu1 %v888_v39  ;;  %v886_v59 = vsel %vm853_vm2, %v5084_v41, %v5085_v57  ;;  %v7359_v41 = vld [vmem:[#allocation7 + $0xa8] sm:$0xff] }
 0x17b   : > { %1137 = vmatpush.msra.mxu3 %v887_v13  ;;  %1482 = vmatpush.msra.mxu2 %v6871_v5  ;;  %v11384_v13 = vld [vmem:[#allocation25_spill] sm:$0xff] }
 0x17c   : > { %1103 = vmatmul.f32.gmra.mxu2 %v7279_v58  ;;  %4594 = vmatmul.msk.f32.vlgmr.msra.gmra.mxu3 %vm974_vm3, %v7281_v0 }
 0x17d   : > { %1212 = vmatpush.msrb.mxu3 %v11364_v52  ;;  %1276 = vmatpush.msrb.mxu0 %v6677_v60  ;;  %v11385_v52 = vunpack.i.h.bf16 %v6953_v4  ;;  %v11391_v4 = vunpack.i.h.bf16 %v6943_v24  ;;  %v11397_v24 = vld [vmem:[#allocation17_spill] sm:$0xff] }
 0x17e   : > { %1055 = vmatpush.msra.mxu1 %v886_v59  ;;  %1483 = vmatpush.msra.mxu2 %v6909_v37  ;;  %v11368_v37 = vld [vmem:[#allocation37_spill] sm:$0xff]  ;;  %v11386_v59 = vld [vmem:[#allocation39_spill] sm:$0xff] }
 0x17f   : > { %1021 = vmatmul.f32.gmra.mxu0 %v7279_v58  ;;  %4586 = vmatmul.msk.f32.vlgmr.msra.gmra.mxu1 %vm974_vm3, %v7281_v0  ;;  %v7299_v5 = vpop.permute.xlu2 %5242 }
 0x180   : > { %11365 = vst [vmem:[#allocation46_spill] sm:$0xff] %v7299_v5  ;;  %1163 = vmatpush.msrb.mxu1 %v11367_v25  ;;  %1213 = vmatpush.msrb.mxu3 %v5134_v33  ;;  %v7305_v60 = vpop.permute.xlu1 %5177  ;;  %v7307_v44 = vpop.permute.xlu0 %5172  ;;  %v7317_v33 = vld [vmem:[#allocation7 + $0xb0] sm:$0xff]  ;;  %v11389_v25 = vld [vmem:[#allocation43_spill] sm:$0xff] }
 0x181   : > { %1277 = vmatpush.msrb.mxu0 %v6144_v2  ;;  %1484 = vmatpush.msra.mxu2 %v11368_v37  ;;  %v7391_v2 = vld [vmem:[#allocation7 + $0xd0] sm:$0xff] }
 0x182   : > { %1164 = vmatpush.msrb.mxu1 %v11369_v30  ;;  %1214 = vmatpush.msrb.mxu3 %v5125_v62  ;;  %v11375_v62 = vld [vmem:[#allocation38_spill] sm:$0xff]  ;;  %v11390_v37 = vld [vmem:[#allocation20_spill] sm:$0xff] }
 0x183   : > { %1278 = vmatpush.msrb.mxu0 %v6145_v55  ;;  %1485 = vmatpush.msra.mxu2 %v11370_v53  ;;  %v7394_v30 = vld [vmem:[#allocation7 + $0xb8] sm:$0xff]  ;;  %v11392_v53 = vld [vmem:[#allocation35_spill] sm:$0xff] }
 0x184   : > { %1165 = vmatpush.msrb.mxu1 %v11371_v61  ;;  %1215 = vmatpush.msrb.mxu3 %v5119_v22 }
 0x185   : > { %1279 = vmatpush.msrb.mxu0 %v6146_v46  ;;  %1486 = vmatpush.msra.mxu2 %v11372_v31  ;;  %v11395_v31 = vunpack.i.l.bf16 %v6987_v26  ;;  %v11401_v26 = vunpack.i.l.bf16 %v6973_v11  ;;  %v11406_v11 = vld [vmem:[#allocation19_spill] sm:$0xff] }
 0x186   : > { %1106 = vmatmul.f32.gmra.mxu2 %v7317_v33  ;;  %4595 = vmatmul.msk.f32.gmra.mxu3 %vm974_vm3, %v7319_v56 }
 0x187   : > { %1166 = vmatpush.msrb.mxu1 %v11373_v42  ;;  %1216 = vmatpush.msrb.mxu3 %v5110_v23  ;;  %v7334_v27 = vpop.permute.xlu2 %5257  ;;  %v11377_v23 = vld [vmem:[#allocation29_spill] sm:$0xff]  ;;  %v11396_v42 = vld [vmem:[#allocation40_spill] sm:$0xff] }
 0x188   : > { %11374 = vst [vmem:[#allocation45_spill] sm:$0xff] %v7334_v27  ;;  %1280 = vmatpush.msrb.mxu0 %v6147_v32  ;;  %1487 = vmatpush.msra.mxu2 %v11375_v62  ;;  %v7338_v22 = vpop.permute.xlu1 %5192  ;;  %v7340_v57 = vpop.permute.xlu0 %5187  ;;  %v11398_v32 = vunpack.i.h.bf16 %v6927_v50  ;;  %v11399_v62 = vld [vmem:[#allocation31_spill] sm:$0xff] }
 0x189   : > { %1024 = vmatmul.f32.gmra.mxu0 %v7317_v33  ;;  %4587 = vmatmul.msk.f32.gmra.mxu1 %vm974_vm3, %v7319_v56 }
 0x18a   : > { %1167 = vmatpush.msrb.mxu1 %v11376_v28  ;;  %1217 = vmatpush.msrb.mxu3 %v5104_v35  ;;  %v11381_v35 = vld [vmem:[#allocation42_spill] sm:$0xff] }
 0x18b   : > { %1281 = vmatpush.msrb.mxu0 %v6148_v7  ;;  %1488 = vmatpush.msra.mxu2 %v11377_v23  ;;  %v11400_v28 = vld [vmem:[#allocation22_spill] sm:$0xff]  ;;  %v11402_v23 = vld [vmem:[#allocation36_spill] sm:$0xff] }
 0x18c   : > { %1168 = vmatpush.msrb.mxu1 %v11378_v1  ;;  %1218 = vmatpush.msrb.mxu3 %v5095_v40  ;;  %v7420_v7 = vld [vmem:[#allocation7 + $0xe0] sm:$0xff]  ;;  %v7425_v1 = vld [vmem:[#allocation7 + $0xc8] sm:$0xff] }
 0x18d   : > { %1282 = vmatpush.msrb.mxu0 %v6149_v20  ;;  %1489 = vmatpush.msra.mxu2 %v11379_v3  ;;  %v11403_v3 = vld [vmem:[#allocation15_spill] sm:$0xff] }
 0x18e   : > { %1169 = vmatpush.msrb.mxu1 %v11380_v43  ;;  %1219 = vmatpush.msrb.mxu3 %v5089_v48  ;;  %v11383_v48 = vld [vmem:[#allocation44_spill] sm:$0xff] }
 0x18f   : > { %1283 = vmatpush.msrb.mxu0 %v6150_v38  ;;  %v7367_v63 = vpop.permute.xlu2 %5272  ;;  %1109 = vmatmul.f32.gmra.mxu2 %v7357_v14  ;;  %v11405_v38 = vunpack.i.h.bf16 %v6895_v51  ;;  %v6152_v51 = vld [vmem:[%s6515_s1 + $0xb8] sm:$0xff] }
 0x190   : > { %1400 = vmatpush.msra.mxu3 %v11381_v35  ;;  %v7372_v40 = vpop.permute.xlu1 %5207  ;;  %v7374_v39 = vpop.permute.xlu0 %5202  ;;  %1170 = vmatpush.msrb.mxu1 %v11382_v6  ;;  %v11407_v35 = vunpack.i.l.bf16 %v6961_v18  ;;  %v11408_v6 = vld [vmem:[#allocation27_spill] sm:$0xff] }
 0x191   : > { %4596 = vmatmul.msk.f32.gmra.mxu3 %vm974_vm3, %v7359_v41  ;;  %1284 = vmatpush.msrb.mxu0 %v6151_v16  ;;  %v11409_v16 = vld [vmem:[#allocation32_spill] sm:$0xff]  ;;  %v11411_v18 = vld [vmem:[#allocation23_spill] sm:$0xff] }
 0x192   : > { %1401 = vmatpush.msra.mxu3 %v11383_v48  ;;  %1027 = vmatmul.f32.gmra.mxu0 %v7357_v14  ;;  %v7448_v48 = vld [vmem:[#allocation7 + $0xf0] sm:$0xff] }
 0x193   : > { %1433 = vmatpush.msra.mxu0 %v11384_v13  ;;  %4588 = vmatmul.msk.f32.gmra.mxu1 %vm974_vm3, %v7359_v41  ;;  %11410 = vst [vmem:[#allocation33_spill] sm:$0xff] %v7448_v48  ;;  %v6153_v13 = vld [vmem:[%s6515_s1 + $0xa0] sm:$0xff] }
 0x194   : > { %1171 = vmatpush.msrb.mxu1 %v11385_v52  ;;  %1402 = vmatpush.msra.mxu3 %v11386_v59  ;;  %v7451_v52 = vld [vmem:[#allocation7 + $0xd8] sm:$0xff] }
 0x195   : > { %1434 = vmatpush.msra.mxu0 %v11387_v9 }
 0x196   : > { %1172 = vmatpush.msrb.mxu1 %v11388_v10  ;;  %1403 = vmatpush.msra.mxu3 %v11389_v25  ;;  %v6154_v10 = vld [vmem:[%s6515_s1 + $0x88] sm:$0xff] }
 0x197   : > { %1435 = vmatpush.msra.mxu0 %v11390_v37  ;;  %v7396_v55 = vpop.permute.xlu2 %5287  ;;  %1112 = vmatmul.f32.gmra.mxu2 %v7391_v2  ;;  %v11413_v37 = vld [vmem:[#allocation28_spill] sm:$0xff] }
 0x198   : > { %1173 = vmatpush.msrb.mxu1 %v11391_v4  ;;  %1404 = vmatpush.msra.mxu3 %v11392_v53  ;;  %v7401_v61 = vpop.permute.xlu1 %5222  ;;  %v7403_v46 = vpop.permute.xlu0 %5217  ;;  %v6155_v4 = vld [vmem:[%s6515_s1 + $0x70] sm:$0xff]  ;;  %v11414_v53 = vld [vmem:[#allocation18_spill] sm:$0xff] }
 0x199   : > { %11393 = vst [vmem:[#allocation37_spill] sm:$0xff] %v7401_v61  ;;  %1436 = vmatpush.msra.mxu0 %v11394_v36  ;;  %4597 = vmatmul.msk.f32.gmra.mxu3 %vm974_vm3, %v7394_v30 }
 0x19a   : > { %1174 = vmatpush.msrb.mxu1 %v11395_v31  ;;  %1405 = vmatpush.msra.mxu3 %v11396_v42  ;;  %v6156_v42 = vld [vmem:[%s6515_s1 + $0x58] sm:$0xff] }
 0x19b   : > { %1437 = vmatpush.msra.mxu0 %v11397_v24  ;;  %4589 = vmatmul.msk.f32.gmra.mxu1 %vm974_vm3, %v7394_v30  ;;  %v11415_v24 = vld [vmem:[#allocation24_spill] sm:$0xff] }
 0x19c   : > { %1030 = vmatmul.f32.gmra.mxu0 %v7391_v2  ;;  %1175 = vmatpush.msrb.mxu1 %v11398_v32  ;;  %v7474_v32 = vld [vmem:[#allocation7 + $0x8] sm:$0xff] }
 0x19d   : > { %1406 = vmatpush.msra.mxu3 %v11399_v62  ;;  %1438 = vmatpush.msra.mxu0 %v11400_v28  ;;  %v11145_v62 = vunpack.i.h.bf16 %v7334_v27  ;;  %v6157_v28 = vld [vmem:[%s6515_s1 + $0x40] sm:$0xff] }
 0x19e   : > { %1176 = vmatpush.msrb.mxu1 %v11401_v26  ;;  %v7478_v26 = vld [vmem:[#allocation7 + $0xe8] sm:$0xff] }
 0x19f   : > { %1407 = vmatpush.msra.mxu3 %v11402_v23  ;;  %v7427_v20 = vpop.permute.xlu2 %5302  ;;  %1439 = vmatpush.msra.mxu0 %v11403_v3  ;;  %v11151_v23 = vunpack.i.l.bf16 %v7334_v27  ;;  %v11416_v3 = vld [vmem:[#allocation16_spill] sm:$0xff] }
 0x1a0   : > { %v7430_v50 = vpop.permute.xlu1 %5237  ;;  %v7432_v43 = vpop.permute.xlu0 %5232  ;;  %1177 = vmatpush.msrb.mxu1 %v11405_v38  ;;  %1115 = vmatmul.f32.gmra.mxu2 %v7420_v7 }
 0x1a1   : > { %11404 = vst [vmem:[#allocation41_spill] sm:$0xff] %v7430_v50  ;;  %1440 = vmatpush.msra.mxu0 %v11406_v11  ;;  %4598 = vmatmul.msk.f32.gmra.mxu3 %vm974_vm3, %v7425_v1 }
 0x1a2   : > { %1178 = vmatpush.msrb.mxu1 %v11407_v35 }
 0x1a3   : > { %4590 = vmatmul.msk.f32.gmra.mxu1 %vm974_vm3, %v7425_v1  ;;  %1441 = vmatpush.msra.mxu0 %v6152_v51 }
 0x1a4   : > { %1351 = vmatpush.msra.mxu1 %v11408_v6  ;;  %1033 = vmatmul.f32.gmra.mxu0 %v7420_v7 }
 0x1a5   : > { %1442 = vmatpush.msra.mxu0 %v6153_v13  ;;  %v7496_v13 = vld [vmem:[#allocation7] sm:$0xff] }
 0x1a6   : > { %1352 = vmatpush.msra.mxu1 %v11409_v16  ;;  %v6158_v16 = vld [vmem:[%s6515_s1 + $0x28] sm:$0xff] }
 0x1a7   : > { %1443 = vmatpush.msra.mxu0 %v6154_v10  ;;  %v7460_v25 = vpop.permute.xlu2 %5317  ;;  %v6159_v10 = vld [vmem:[%s6515_s1 + $0x10] sm:$0xff] }
 0x1a8   : > { %1353 = vmatpush.msra.mxu1 %v11411_v18  ;;  %v7454_v59 = vpop.permute.xlu1 %5252  ;;  %v7456_v9 = vpop.permute.xlu0 %5247  ;;  %1118 = vmatmul.f32.gmra.mxu2 %v7448_v48  ;;  %v11146_v36 = vunpack.i.h.bf16 %v7460_v25  ;;  %v11147_v31 = vunpack.i.l.bf16 %v7460_v25  ;;  %v11417_v18 = vld [vmem:[#allocation21_spill] sm:$0xff] }
 0x1a9   : > { %11412 = vst [vmem:[#allocation38_spill] sm:$0xff] %v7454_v59  ;;  %4599 = vmatmul.msk.f32.gmra.mxu3 %vm974_vm3, %v7451_v52  ;;  %1444 = vmatpush.msra.mxu0 %v6155_v4  ;;  %v11144_v38 = vunpack.i.l.bf16 %v7454_v59  ;;  %v11150_v11 = vunpack.i.h.bf16 %v7456_v9  ;;  %v11149_v4 = vunpack.i.l.bf16 %v7299_v5 }
 0x1aa   : > { %1354 = vmatpush.msra.mxu1 %v11413_v37  ;;  %v1707_v35 = vsel %vm1659_vm4, %v11147_v31, %v11146_v36  ;;  %v11148_v37 = vunpack.i.h.bf16 %v7299_v5  ;;  %v11156_v36 = vunpack.i.l.bf16 %v7401_v61  ;;  %v11157_v31 = vunpack.i.h.bf16 %v7403_v46 }
 0x1ab   : > { %4591 = vmatmul.msk.f32.gmra.mxu1 %vm974_vm3, %v7451_v52  ;;  %1445 = vmatpush.msra.mxu0 %v6156_v42  ;;  %v6160_v42 = vld [vmem:[%s6515_s1 + $0xb0] sm:$0xff] }
 0x1ac   : > { %1355 = vmatpush.msra.mxu1 %v11414_v53  ;;  %1036 = vmatmul.f32.gmra.mxu0 %v7448_v48  ;;  %v1691_v53 = vsel %vm1659_vm4, %v11151_v23, %v11145_v62  ;;  %v6164_v23 = vld [vmem:[%s6515_s1 + $0x50] sm:$0xff]  ;;  %v11424_v48 = vunpack.i.l.bf16 %v7338_v22 }
 0x1ad   : > { %1446 = vmatpush.msra.mxu0 %v6157_v28  ;;  %v11152_v28 = vunpack.i.l.bf16 %v7430_v50 }
 0x1ae   : > { %1356 = vmatpush.msra.mxu1 %v11415_v24  ;;  %v1689_v24 = vsel %vm1659_vm4, %v11150_v11, %v11144_v38  ;;  %v6162_v38 = vld [vmem:[%s6515_s1 + $0x80] sm:$0xff] }
 0x1af   : > { %1447 = vmatpush.msra.mxu0 %v6158_v16  ;;  %v7521_v16 = vld [vmem:[#allocation7 + $0x18] sm:$0xff] }
 0x1b0   : > { %1357 = vmatpush.msra.mxu1 %v11416_v3  ;;  %v7489_v6 = vpop.permute.xlu1 %5267  ;;  %v7491_v51 = vpop.permute.xlu0 %5262  ;;  %4610 = vmatmul.msk.f32.vlgmr.msrb.gmra.mxu2 %vm974_vm3, %v7474_v32  ;;  %v11153_v3 = vunpack.i.h.bf16 %v7432_v43 }
 0x1b1   : > { %4600 = vmatmul.msk.f32.gmra.mxu3 %vm974_vm3, %v7478_v26  ;;  %1448 = vmatpush.msra.mxu0 %v6159_v10  ;;  %v11154_v10 = vunpack.i.h.bf16 %v7266_v54 }
 0x1b2   : > { %1358 = vmatpush.msra.mxu1 %v11417_v18  ;;  %1935 = vmatpush.msrb.mxu2 %v1707_v35  ;;  %v6161_v35 = vld [vmem:[%s6515_s1 + $0x98] sm:$0xff] }
 0x1b3   : > { %4592 = vmatmul.msk.f32.gmra.mxu1 %vm974_vm3, %v7478_v26  ;;  %v7523_v18 = vld [vmem:[#allocation7 + $0xf8] sm:$0xff] }
 0x1b4   : > { %1285 = vmatmul.f32.vlgmr.msrb.gmra.mxu0 %v7496_v13  ;;  %1359 = vmatpush.msra.mxu1 %v6160_v42  ;;  %v11155_v42 = vunpack.i.l.bf16 %v7266_v54 }
 0x1b5   : > { %1886 = vmatpush.msrb.mxu0 %v1691_v53  ;;  %v1687_v53 = vsel %vm1659_vm4, %v11149_v4, %v11148_v37  ;;  %v6163_v37 = vld [vmem:[%s6515_s1 + $0x68] sm:$0xff]  ;;  %v11159_v4 = vunpack.i.l.bf16 %v7227_v15 }
 0x1b6   : > { %1360 = vmatpush.msra.mxu1 %v6161_v35  ;;  %v1683_v11 = vsel %vm1659_vm4, %v11155_v42, %v11154_v10  ;;  %v1681_v10 = vsel %vm1659_vm4, %v11157_v31, %v11156_v36  ;;  %v6165_v42 = vld [vmem:[%s6515_s1 + $0x38] sm:$0xff]  ;;  %v5249_v31 = vunpack.i.l.bf16 %v7456_v9 }
 0x1b7   : > { %1887 = vmatpush.msrb.mxu0 %v1689_v24  ;;  %v7539_v24 = vld [vmem:[#allocation7 + $0x10] sm:$0xff] }
 0x1b8   : > { %1361 = vmatpush.msra.mxu1 %v6162_v38  ;;  %v7533_v62 = vpop.permute.xlu1 %5282  ;;  %v7535_v35 = vpop.permute.xlu0 %5277  ;;  %4611 = vmatmul.msk.f32.gmra.mxu2 %vm974_vm3, %v7521_v16  ;;  %v1685_v38 = vsel %vm1659_vm4, %v11153_v3, %v11152_v28  ;;  %v6166_v3 = vld [vmem:[%s6515_s1 + $0x20] sm:$0xff] }
 0x1b9   : > { %1888 = vmatpush.msrb.mxu0 %v1687_v53  ;;  %4601 = vmatmul.msk.f32.gmra.mxu3 %vm974_vm3, %v7523_v18  ;;  %v11158_v53 = vunpack.i.h.bf16 %v7227_v15 }
 0x1ba   : > { %1362 = vmatpush.msra.mxu1 %v6163_v37  ;;  %v11428_v37 = vunpack.i.l.bf16 %v7158_v8 }
 0x1bb   : > { %1889 = vmatpush.msrb.mxu0 %v1685_v38  ;;  %4593 = vmatmul.msk.f32.gmra.mxu1 %vm974_vm3, %v7523_v18  ;;  %v1679_v28 = vsel %vm1659_vm4, %v11159_v4, %v11158_v53  ;;  %v11421_v53 = vunpack.i.h.bf16 %v7374_v39 }
 0x1bc   : > { %1288 = vmatmul.f32.gmra.mxu0 %v7539_v24  ;;  %1363 = vmatpush.msra.mxu1 %v6164_v23  ;;  %v7572_v23 = vld [vmem:[#allocation7 + $0x28] sm:$0xff] }
 0x1bd   : > { %1890 = vmatpush.msrb.mxu0 %v1683_v11  ;;  %11418 = vst [vmem:[#allocation29_spill] sm:$0xff] %v7572_v23  ;;  %v6167_v11 = vld [vmem:[%s6515_s1 + $0x8] sm:$0xff] }
 0x1be   : > { %1364 = vmatpush.msra.mxu1 %v6165_v42  ;;  %v5255_v42 = vunpack.i.h.bf16 %v7454_v59  ;;  %v11423_v59 = vunpack.i.l.bf16 %v7189_v49 }
 0x1bf   : > { %1891 = vmatpush.msrb.mxu0 %v1681_v10  ;;  %v7589_v10 = vld [vmem:[#allocation7 + $0x20] sm:$0xff] }
 0x1c0   : > { %1365 = vmatpush.msra.mxu1 %v6166_v3  ;;  %v7582_v38 = vpop.permute.xlu1 %5297  ;;  %v7584_v36 = vpop.permute.xlu0 %5292  ;;  %4612 = vmatmul.msk.f32.gmra.mxu2 %vm974_vm3, %v7572_v23  ;;  %11419 = vst [vmem:[#allocation34_spill] sm:$0xff] %v7589_v10  ;;  %v11420_v3 = vunpack.i.l.bf16 %v7372_v40 }
 0x1c1   : > { %1892 = vmatpush.msrb.mxu0 %v1679_v28  ;;  %4602 = vmatmul.msk.f32.vlgmr.msrb.gmra.mxu3 %vm974_vm3, %v7281_v0  ;;  %v11422_v28 = vunpack.i.h.bf16 %v7189_v49  ;;  %v11427_v0 = vunpack.i.h.bf16 %v7158_v8 }
 0x1c2   : > { %v1677_v4 = vsel %vm1659_vm4, %v11421_v53, %v11420_v3  ;;  %1366 = vmatpush.msra.mxu1 %v6167_v11  ;;  %v11425_v53 = vunpack.i.h.bf16 %v7340_v57  ;;  %v5240_v3 = vunpack.i.h.bf16 %v7430_v50  ;;  %v11429_v50 = vunpack.i.h.bf16 %v7456_v9 }
 0x1c3   : > { %v1675_v23 = vsel %vm1659_vm4, %v11423_v59, %v11422_v28  ;;  %1893 = vmatpush.msrb.mxu0 %v1677_v4  ;;  %1179 = vmatmul.f32.vlgmr.msrb.gmra.mxu1 %v7191_v47  ;;  %v11426_v59 = vunpack.i.l.bf16 %v7334_v27  ;;  %v7620_v28 = vld [vmem:[#allocation7 + $0x38] sm:$0xff]  ;;  %v5234_v47 = vunpack.i.l.bf16 %v7432_v43  ;;  %v11432_v9 = vunpack.i.l.bf16 %v7299_v5 }
 0x1c4   : > { %1291 = vmatmul.f32.gmra.mxu0 %v7589_v10  ;;  %v1673_v11 = vsel %vm1659_vm4, %v11425_v53, %v11424_v48  ;;  %v1671_v10 = vsel %vm1659_vm4, %v11428_v37, %v11427_v0  ;;  %v11430_v0 = vunpack.i.l.bf16 %v7305_v60  ;;  %v11431_v53 = vunpack.i.h.bf16 %v7307_v44 }
 0x1c5   : > { %v1690_v4 = vsel %vm1659_vm4, %v5255_v42, %v11426_v59  ;;  %1894 = vmatpush.msrb.mxu0 %v1675_v23  ;;  %v1688_v42 = vsel %vm1659_vm4, %v5249_v31, %v11429_v50  ;;  %v1686_v50 = vsel %vm1659_vm4, %v5240_v3, %v11432_v9  ;;  %v7648_v31 = vld [vmem:[#allocation7 + $0x30] sm:$0xff]  ;;  %v11433_v3 = vunpack.i.h.bf16 %v7432_v43 }
 0x1c6   : > { %1804 = vmatpush.msrb.mxu1 %v1690_v4  ;;  %v5225_v4 = vunpack.i.h.bf16 %v7401_v61  ;;  %v1669_v48 = vsel %vm1659_vm4, %v11431_v53, %v11430_v0  ;;  %v5219_v0 = vunpack.i.l.bf16 %v7403_v46  ;;  %v11434_v23 = vunpack.i.l.bf16 %v7460_v25 }
 0x1c7   : > { %1895 = vmatpush.msrb.mxu0 %v1673_v11  ;;  %v1684_v9 = vsel %vm1659_vm4, %v5234_v47, %v11433_v3  ;;  %v5300_v5 = vunpack.i.h.bf16 %v7582_v38  ;;  %v5210_v47 = vunpack.i.h.bf16 %v7372_v40  ;;  %v11440_v3 = vunpack.i.h.bf16 %v7274_v45 }
 0x1c8   : > { %1805 = vmatpush.msrb.mxu1 %v1688_v42  ;;  %v7636_v27 = vpop.permute.xlu1 %5312  ;;  %v5308_v37 = vpop.permute.xlu0 %5307  ;;  %4613 = vmatmul.msk.f32.gmra.mxu2 %vm974_vm3, %v7620_v28  ;;  %v11435_v42 = vunpack.i.h.bf16 %v7124_v19 }
 0x1c9   : > { %v5315_v11 = vunpack.i.h.bf16 %v7636_v27  ;;  %v5310_v59 = vunpack.i.h.bf16 %v5308_v37  ;;  %1896 = vmatpush.msrb.mxu0 %v1671_v10  ;;  %4603 = vmatmul.msk.f32.gmra.mxu3 %vm974_vm3, %v7319_v56  ;;  %v5309_v53 = vunpack.i.l.bf16 %v5308_v37  ;;  %v11436_v10 = vunpack.i.l.bf16 %v7124_v19  ;;  %v7686_v56 = vld [vmem:[#allocation7 + $0x48] sm:$0xff] }
 0x1ca   : > { %1806 = vmatpush.msrb.mxu1 %v1686_v50  ;;  %v11437_v43 = vunpack.i.l.bf16 %v7636_v27  ;;  %v5305_v37 = vunpack.i.h.bf16 %v7427_v20 }
 0x1cb   : > { %1897 = vmatpush.msrb.mxu0 %v1669_v48  ;;  %v1706_v61 = vsel %vm1659_vm4, %v5315_v11, %v11434_v23  ;;  %v1667_v50 = vsel %vm1659_vm4, %v11436_v10, %v11435_v42  ;;  %1182 = vmatmul.f32.gmra.mxu1 %v7230_v34  ;;  %v11438_v23 = vunpack.i.l.bf16 %v7266_v54  ;;  %v11439_v42 = vunpack.i.l.bf16 %v7272_v12 }
 0x1cc   : > { %1807 = vmatpush.msrb.mxu1 %v1684_v9  ;;  %1294 = vmatmul.f32.gmra.mxu0 %v7648_v31  ;;  %v1705_v48 = vsel %vm1659_vm4, %v5310_v59, %v11437_v43  ;;  %v5304_v43 = vunpack.i.l.bf16 %v7427_v20  ;;  %v1704_v34 = vsel %vm1659_vm4, %v5309_v53, %v5310_v59  ;;  %v11170_v10 = vunpack.i.l.bf16 %v7582_v38  ;;  %v11468_v20 = vld [vmem:[#allocation41_spill] sm:$0xff] }
 0x1cd   : > { %v1682_v11 = vsel %vm1659_vm4, %v5225_v4, %v11438_v23  ;;  %1853 = vmatpush.msrb.mxu3 %v1706_v61  ;;  %v1665_v9 = vsel %vm1659_vm4, %v11440_v3, %v11439_v42  ;;  %1898 = vmatpush.msrb.mxu0 %v1667_v50  ;;  %v5195_v4 = vunpack.i.h.bf16 %v7338_v22  ;;  %v5204_v23 = vunpack.i.l.bf16 %v7374_v39 }
 0x1ce   : > { %1808 = vmatpush.msrb.mxu1 %v1682_v11  ;;  %v11441_v42 = vunpack.i.h.bf16 %v7403_v46  ;;  %1936 = vmatpush.msrb.mxu2 %v1705_v48  ;;  %v5295_v11 = vunpack.i.h.bf16 %v7584_v36  ;;  %v1702_v59 = vsel %vm1659_vm4, %v5300_v5, %v5304_v43  ;;  %v11442_v53 = vunpack.i.h.bf16 %v7086_v29 }
 0x1cf   : > { %1854 = vmatpush.msrb.mxu3 %v1704_v34  ;;  %1899 = vmatpush.msrb.mxu0 %v1665_v9  ;;  %v11443_v50 = vunpack.i.l.bf16 %v7086_v29  ;;  %v5189_v46 = vunpack.i.l.bf16 %v7340_v57  ;;  %v11444_v48 = vunpack.i.l.bf16 %v7227_v15  ;;  %v7710_v9 = vld [vmem:[#allocation7 + $0x40] sm:$0xff]  ;;  %v5290_v5 = vunpack.i.h.bf16 %v7396_v55 }
 0x1d0   : > { %v1680_v3 = vsel %vm1659_vm4, %v5219_v0, %v11441_v42  ;;  %v5294_v0 = vunpack.i.l.bf16 %v7584_v36  ;;  %4614 = vmatmul.msk.f32.gmra.mxu2 %vm974_vm3, %v7686_v56  ;;  %v5289_v42 = vunpack.i.l.bf16 %v7396_v55  ;;  %v1703_v36 = vsel %vm1659_vm4, %v5304_v43, %v5305_v37 }
 0x1d1   : > { %1809 = vmatpush.msrb.mxu1 %v1680_v3  ;;  %v1663_v61 = vsel %vm1659_vm4, %v11443_v50, %v11442_v53  ;;  %v1678_v34 = vsel %vm1659_vm4, %v5210_v47, %v11444_v48  ;;  %1855 = vmatpush.msrb.mxu3 %v1702_v59  ;;  %v5180_v47 = vunpack.i.h.bf16 %v7305_v60  ;;  %v5285_v3 = vunpack.i.h.bf16 %v7533_v62 }
 0x1d2   : > { %4604 = vmatmul.msk.f32.gmra.mxu3 %vm974_vm3, %v7359_v41  ;;  %v11445_v53 = vunpack.i.h.bf16 %v7374_v39  ;;  %v11446_v50 = vunpack.i.l.bf16 %v7189_v49  ;;  %1937 = vmatpush.msrb.mxu2 %v1703_v36  ;;  %v1701_v41 = vsel %vm1659_vm4, %v5295_v11, %v11170_v10  ;;  %v11447_v43 = vunpack.i.l.bf16 %v7232_v21  ;;  %v7745_v10 = vld [vmem:[#allocation7 + $0x58] sm:$0xff] }
 0x1d3   : > { %1810 = vmatpush.msrb.mxu1 %v1678_v34  ;;  %1900 = vmatpush.msrb.mxu0 %v1663_v61  ;;  %v11448_v34 = vunpack.i.h.bf16 %v7234_v17  ;;  %v1700_v36 = vsel %vm1659_vm4, %v5294_v0, %v5295_v11  ;;  %v1698_v0 = vsel %vm1659_vm4, %v5285_v3, %v5289_v42  ;;  %v5265_v3 = vunpack.i.h.bf16 %v7491_v51 }
 0x1d4   : > { %v1676_v59 = vsel %vm1659_vm4, %v5204_v23, %v11445_v53  ;;  %v1674_v48 = vsel %vm1659_vm4, %v5195_v4, %v11446_v50  ;;  %1297 = vmatmul.f32.gmra.mxu0 %v7710_v9  ;;  %v5174_v23 = vunpack.i.l.bf16 %v7307_v44  ;;  %1185 = vmatmul.f32.gmra.mxu1 %v7279_v58  ;;  %v11449_v4 = vunpack.i.h.bf16 %v7340_v57 }
 0x1d5   : > { %1811 = vmatpush.msrb.mxu1 %v1676_v59  ;;  %v1661_v39 = vsel %vm1659_vm4, %v11448_v34, %v11447_v43  ;;  %1938 = vmatpush.msrb.mxu2 %v1701_v41  ;;  %v5284_v53 = vunpack.i.l.bf16 %v7533_v62  ;;  %v5280_v59 = vunpack.i.h.bf16 %v7535_v35  ;;  %v5279_v50 = vunpack.i.l.bf16 %v7535_v35 }
 0x1d6   : > { %v1672_v61 = vsel %vm1659_vm4, %v5189_v46, %v11449_v4  ;;  %1856 = vmatpush.msrb.mxu3 %v1700_v36  ;;  %v1699_v58 = vsel %vm1659_vm4, %v5289_v42, %v5290_v5  ;;  %v5165_v57 = vunpack.i.h.bf16 %v7272_v12  ;;  %v11450_v46 = vunpack.i.l.bf16 %v7158_v8  ;;  %1901 = vmatpush.msrb.mxu0 %v1661_v39  ;;  %v7764_v39 = vld [vmem:[#allocation7 + $0x50] sm:$0xff] }
 0x1d7   : > { %1812 = vmatpush.msrb.mxu1 %v1674_v48  ;;  %1939 = vmatpush.msrb.mxu2 %v1699_v58  ;;  %v5275_v35 = vunpack.i.h.bf16 %v7367_v63  ;;  %v5274_v48 = vunpack.i.l.bf16 %v7367_v63  ;;  %v5159_v41 = vunpack.i.l.bf16 %v7274_v45  ;;  %v5270_v43 = vunpack.i.h.bf16 %v7489_v6 }
 0x1d8   : > { %v1670_v11 = vsel %vm1659_vm4, %v5180_v47, %v11450_v46  ;;  %1857 = vmatpush.msrb.mxu3 %v1698_v0  ;;  %4615 = vmatmul.msk.f32.gmra.mxu2 %vm974_vm3, %v7745_v10  ;;  %v11451_v34 = vunpack.i.h.bf16 %v7307_v44  ;;  %v5269_v42 = vunpack.i.l.bf16 %v7489_v6  ;;  %v1697_v4 = vsel %vm1659_vm4, %v5280_v59, %v5284_v53  ;;  %v7791_v46 = vld [vmem:[#allocation7 + $0x68] sm:$0xff] }
 0x1d9   : > { %1813 = vmatpush.msrb.mxu1 %v1672_v61  ;;  %v1696_v61 = vsel %vm1659_vm4, %v5279_v50, %v5280_v59  ;;  %v5264_v44 = vunpack.i.l.bf16 %v7491_v51  ;;  %1940 = vmatpush.msrb.mxu2 %v1697_v4  ;;  %v5150_v58 = vunpack.i.h.bf16 %v7232_v21  ;;  %v11453_v59 = vunpack.i.h.bf16 %v7274_v45 }
 0x1da   : > { %v1668_v47 = vsel %vm1659_vm4, %v5174_v23, %v11451_v34  ;;  %4605 = vmatmul.msk.f32.gmra.mxu3 %vm974_vm3, %v7394_v30  ;;  %v11452_v23 = vunpack.i.l.bf16 %v7124_v19  ;;  %v1695_v30 = vsel %vm1659_vm4, %v5274_v48, %v5275_v35  ;;  %v1694_v50 = vsel %vm1659_vm4, %v5270_v43, %v5274_v48  ;;  %v7800_v48 = vld [vmem:[#allocation7 + $0x60] sm:$0xff]  ;;  %v7809_v34 = vld [vmem:[#allocation7 + $0x78] sm:$0xff] }
 0x1db   : > { %1814 = vmatpush.msrb.mxu1 %v1670_v11  ;;  %1858 = vmatpush.msrb.mxu3 %v1696_v61  ;;  %v1664_v51 = vsel %vm1659_vm4, %v5159_v41, %v11453_v59  ;;  %v5144_v11 = vunpack.i.l.bf16 %v7234_v17  ;;  %v11454_v45 = vunpack.i.l.bf16 %v7086_v29  ;;  %v11455_v41 = vunpack.i.h.bf16 %v7234_v17 }
 0x1dc   : > { %v1666_v36 = vsel %vm1659_vm4, %v5165_v57, %v11452_v23  ;;  %1300 = vmatmul.f32.gmra.mxu0 %v7764_v39  ;;  %1188 = vmatmul.f32.gmra.mxu1 %v7317_v33  ;;  %v1693_v57 = vsel %vm1659_vm4, %v5265_v3, %v5269_v42  ;;  %v1692_v33 = vsel %vm1659_vm4, %v5264_v44, %v5265_v3  ;;  %v11457_v44 = vld [vmem:[#allocation29_spill] sm:$0xff]  ;;  %v11460_v23 = vunpack.i.l.bf16 %v7636_v27 }
 0x1dd   : > { %1815 = vmatpush.msrb.mxu1 %v1668_v47  ;;  %1941 = vmatpush.msrb.mxu2 %v1695_v30  ;;  %v1662_v0 = vsel %vm1659_vm4, %v5150_v58, %v11454_v45  ;;  %v1660_v43 = vsel %vm1659_vm4, %v5144_v11, %v11455_v41  ;;  %v7813_v47 = vld [vmem:[#allocation7 + $0x70] sm:$0xff]  ;;  %v11473_v62 = vunpack.i.h.bf16 %v7227_v15  ;;  %v11475_v6 = vunpack.i.h.bf16 %v7189_v49 }
 0x1de   : > { %1859 = vmatpush.msrb.mxu3 %v1694_v50  ;;  %v11466_v50 = vld [vmem:[#allocation46_spill] sm:$0xff]  ;;  %v11476_v15 = vunpack.i.l.bf16 %v7338_v22  ;;  %v11478_v45 = vunpack.i.l.bf16 %v7305_v60  ;;  %v11481_v60 = vunpack.i.h.bf16 %v7086_v29 }
 0x1df   : > { %1816 = vmatpush.msrb.mxu1 %v1666_v36  ;;  %1942 = vmatpush.msrb.mxu2 %v1693_v57  ;;  %v11461_v36 = vld [vmem:[#allocation45_spill] sm:$0xff]  ;;  %v11467_v57 = vunpack.i.h.bf16 %v11466_v50  ;;  %v458_v29 = vld [vmem:[%s11091_s2] sm:$0xff] }
 0x1e0   : > { %1860 = vmatpush.msrb.mxu3 %v1692_v33  ;;  %4616 = vmatmul.msk.f32.gmra.mxu2 %vm974_vm3, %v7791_v46  ;;  %v11462_v30 = vunpack.i.h.bf16 %v11461_v36 }
 0x1e1   : > { %1817 = vmatpush.msrb.mxu1 %v1664_v51  ;;  %v11465_v51 = vunpack.i.l.bf16 %v7582_v38  ;;  %v11470_v38 = vunpack.i.h.bf16 %v7266_v54 }
 0x1e2   : > { %4606 = vmatmul.msk.f32.gmra.mxu3 %vm974_vm3, %v7425_v1 }
 0x1e3   : > { %1818 = vmatpush.msrb.mxu1 %v1662_v0  ;;  %v11479_v0 = vunpack.i.h.bf16 %v7124_v19  ;;  %v11482_v19 = vunpack.i.l.bf16 %v7232_v21 }
 0x1e4   : > { %1303 = vmatmul.f32.gmra.mxu0 %v7800_v48  ;;  %1191 = vmatmul.f32.gmra.mxu1 %v7357_v14 }
 0x1e5   : > { %1819 = vmatpush.msrb.mxu1 %v1660_v43 }
 0x1e8   : > { %4617 = vmatmul.msk.f32.gmra.mxu2 %vm974_vm3, %v7809_v34 }
 0x1e9   : > { %v7815_v3 = vpop.f32.mrf.mxu0 }
 0x1ea   : > { %4607 = vmatmul.msk.f32.gmra.mxu3 %vm974_vm3, %v7451_v52 }
 0x1ec   : > { %1306 = vmatmul.f32.gmra.mxu0 %v7813_v47  ;;  %1194 = vmatmul.f32.gmra.mxu1 %v7391_v2 }
 0x1ed   : > { %v7821_v17 = vpop.f32.mrf.mxu2 }
 0x1f0   : > { %4626 = vmatmul.msk.f32.vlgmr.msra.gmra.mxu2 %vm974_vm3, %v7474_v32 }
 0x1f2   : > { %4608 = vmatmul.msk.f32.gmra.mxu3 %vm974_vm3, %v7478_v26  ;;  %v7827_v14 = vpop.f32.mrf.mxu0  ;;  %v11456_v26 = vld [vmem:[#allocation33_spill] sm:$0xff] }
 0x1f4   : > { %1449 = vmatmul.f32.vlgmr.msra.gmra.mxu0 %v7496_v13  ;;  %1197 = vmatmul.f32.gmra.mxu1 %v7420_v7  ;;  %v11458_v7 = vunpack.i.h.bf16 %v7460_v25 }
 0x1f5   : > { %v1101_v1 = vpop.f32.mrf.mxu2 }
 0x1f8   : > { %4627 = vmatmul.msk.f32.gmra.mxu2 %vm974_vm3, %v7521_v16 }
 0x1fa   : > { %4609 = vmatmul.msk.f32.gmra.mxu3 %vm974_vm3, %v7523_v18  ;;  %v11459_v18 = vld [vmem:[#allocation34_spill] sm:$0xff] }
 0x1fc   : > { %1452 = vmatmul.f32.gmra.mxu0 %v7539_v24  ;;  %v7836_v2 = vpop.f32.mrf.mxu0  ;;  %v7838_v52 = vpop.f32.mrf.mxu1  ;;  %1200 = vmatmul.f32.gmra.mxu1 %v11456_v26  ;;  %v6362_v26 = vmov 0  }
 0x1fd   : > { %5321 = vset.pattern.permute.xlu0 %v6362_v26  ;;  %5322 = vset.pattern.permute.xlu1 %v6362_v26 }
 0x1fe   : > { %2076 = vperm.xlu0 %5321, %v458_v29   ;;  %5323 = vset.pattern.permute.xlu2 %v6362_v26  ;;  %v8059_v26 = vld [vmem:[#allocation7 + $0x158] sm:$0xff] }
 0x1ff   : > { %v1104_v4 = vpop.f32.mrf.mxu2  ;;  %v7841_v61 = vpop.f32.mrf.mxu3 }
 0x200   : > { %4628 = vmatmul.msk.f32.gmra.mxu2 %vm974_vm3, %v11457_v44 }
 0x202   : > { %4618 = vmatmul.msk.f32.vlgmr.msra.gmra.mxu3 %vm974_vm3, %v7474_v32  ;;  %v11463_v32 = vld [vmem:[#allocation38_spill] sm:$0xff] }
 0x203   : > { %2017 = vmatpush.msra.mxu3 %v11458_v7  ;;  %v11464_v25 = vunpack.i.l.bf16 %v11463_v32  ;;  %v7960_v7 = vld [vmem:[#allocation7 + $0x108] sm:$0xff] }
 0x204   : > { %1455 = vmatmul.f32.gmra.mxu0 %v11459_v18  ;;  %1367 = vmatmul.f32.vlgmr.msra.gmra.mxu1 %v7496_v13 }
 0x205   : > { %2018 = vmatpush.msra.mxu3 %v11460_v23  ;;  %1968 = vmatpush.msra.mxu1 %v11462_v30 }
 0x206   : > { %v7855_v58 = vpop.f32.mrf.mxu0  ;;  %v7857_v59 = vpop.f32.mrf.mxu1 }
 0x207   : > { %2019 = vmatpush.msra.mxu3 %v5305_v37  ;;  %1969 = vmatpush.msra.mxu1 %v11464_v25  ;;  %v11469_v37 = vunpack.i.l.bf16 %v11468_v20  ;;  %v7981_v25 = vld [vmem:[#allocation7 + $0x118] sm:$0xff] }
 0x208   : > { %4629 = vmatmul.msk.f32.gmra.mxu2 %vm974_vm3, %v7620_v28 }
 0x209   : > { %2020 = vmatpush.msra.mxu3 %v11465_v51  ;;  %v1107_v27 = vpop.f32.mrf.mxu2  ;;  %v1142_v13 = vpop.f32.mrf.mxu3  ;;  %1970 = vmatpush.msra.mxu1 %v11467_v57  ;;  %v461_v51 = vld [vmem:[%s11091_s2 + $0x18] sm:$0xff] }
 0x20a   : > { %4619 = vmatmul.msk.f32.gmra.mxu3 %vm974_vm3, %v7521_v16  ;;  %v7871_v11 = vadd.f32 %v1142_v13, %v1101_v1  ;;  %v11471_v16 = vld [vmem:[#allocation37_spill] sm:$0xff] }
 0x20b   : > { %2021 = vmatpush.msra.mxu3 %v5290_v5  ;;  %1971 = vmatpush.msra.mxu1 %v11469_v37  ;;  %v11472_v33 = vunpack.i.l.bf16 %v11471_v16  ;;  %v8005_v37 = vld [vmem:[#allocation7 + $0x128] sm:$0xff] }
 0x20c   : > { %1458 = vmatmul.f32.gmra.mxu0 %v7648_v31  ;;  %1370 = vmatmul.f32.gmra.mxu1 %v7539_v24  ;;  %v11474_v24 = vunpack.i.l.bf16 %v7372_v40  ;;  %v11477_v40 = vunpack.i.h.bf16 %v7158_v8  ;;  %v11480_v8 = vunpack.i.l.bf16 %v7272_v12 }
 0x20d   : > { %2022 = vmatpush.msra.mxu3 %v5284_v53  ;;  %1972 = vmatpush.msra.mxu1 %v11470_v38  ;;  %v464_v38 = vld [vmem:[%s11091_s2 + $0x30] sm:$0xff] }
 0x20f   : > { %2023 = vmatpush.msra.mxu3 %v5275_v35  ;;  %1973 = vmatpush.msra.mxu1 %v11472_v33  ;;  %v7887_v55 = vpop.f32.mrf.mxu0 }
 0x210   : > { %v7889_v5 = vpop.f32.mrf.mxu1  ;;  %4630 = vmatmul.msk.f32.gmra.mxu2 %vm974_vm3, %v7686_v56 }
 0x211   : > { %2024 = vmatpush.msra.mxu3 %v5269_v42  ;;  %1974 = vmatpush.msra.mxu1 %v11473_v62 }
 0x212   : > { %4620 = vmatmul.msk.f32.gmra.mxu3 %vm974_vm3, %v11457_v44  ;;  %v1110_v54 = vpop.f32.mrf.mxu2 }
 0x213   : > { %1975 = vmatpush.msra.mxu1 %v11474_v24 }
 0x214   : > { %v1145_v63 = vpop.f32.mrf.mxu3  ;;  %1461 = vmatmul.f32.gmra.mxu0 %v7710_v9  ;;  %1373 = vmatmul.f32.gmra.mxu1 %v11459_v18  ;;  %v459_v18 = vld [vmem:[%s11091_s2 + $0x8] sm:$0xff] }
 0x215   : > { %v7902_v53 = vadd.f32 %v1145_v63, %v1104_v4  ;;  %1976 = vmatpush.msra.mxu1 %v11475_v6  ;;  %2081 = vperm.xlu1 %5322, %v459_v18   ;;  %v8024_v63 = vld [vmem:[#allocation7 + $0x138] sm:$0xff]  ;;  %v8030_v6 = vld [vmem:[#allocation7 + $0x130] sm:$0xff] }
 0x217   : > { %1977 = vmatpush.msra.mxu1 %v11476_v15 }
 0x218   : > { %v7911_v42 = vpop.f32.mrf.mxu1  ;;  %4631 = vmatmul.msk.f32.gmra.mxu2 %vm974_vm3, %v7745_v10 }
 0x219   : > { %v7909_v35 = vpop.f32.mrf.mxu0  ;;  %1978 = vmatpush.msra.mxu1 %v11477_v40 }
 0x21a   : > { %4621 = vmatmul.msk.f32.gmra.mxu3 %vm974_vm3, %v7620_v28  ;;  %v1113_v49 = vpop.f32.mrf.mxu2 }
 0x21b   : > { %1979 = vmatpush.msra.mxu1 %v11478_v45 }
 0x21c   : > { %1464 = vmatmul.f32.gmra.mxu0 %v7764_v39  ;;  %1376 = vmatmul.f32.gmra.mxu1 %v7648_v31  ;;  %v1148_v22 = vpop.f32.mrf.mxu3 }
 0x21d   : > { %1980 = vmatpush.msra.mxu1 %v11479_v0  ;;  %v7925_v41 = vadd.f32 %v1148_v22, %v1107_v27  ;;  %v463_v27 = vld [vmem:[%s11091_s2 + $0x28] sm:$0xff]  ;;  %2091 = vperm.xlu1 %5322, %v461_v51   ;;  %v460_v0 = vld [vmem:[%s11091_s2 + $0x10] sm:$0xff] }
 0x21e   : > { %2101 = vperm.xlu0 %5321, %v463_v27   ;;  %v8040_v22 = vld [vmem:[#allocation7 + $0x148] sm:$0xff]  ;;  %2086 = vperm.xlu2 %5323, %v460_v0  }
 0x21f   : > { %1981 = vmatpush.msra.mxu1 %v11480_v8 }
 0x220   : > { %4632 = vmatmul.msk.f32.gmra.mxu2 %vm974_vm3, %v7791_v46  ;;  %v7935_v28 = vpop.f32.mrf.mxu1 }
 0x221   : > { %v7929_v43 = vpop.f32.mrf.mxu0  ;;  %1982 = vmatpush.msra.mxu1 %v11481_v60  ;;  %v8049_v60 = vld [vmem:[#allocation7 + $0x140] sm:$0xff] }
 0x222   : > { %4622 = vmatmul.msk.f32.gmra.mxu3 %vm974_vm3, %v7686_v56 }
 0x223   : > { %1983 = vmatpush.msra.mxu1 %v11482_v19  ;;  %v1116_v12 = vpop.f32.mrf.mxu2 }
 0x224   : > { %1467 = vmatmul.f32.gmra.mxu0 %v7800_v48  ;;  %1379 = vmatmul.f32.gmra.mxu1 %v7710_v9  ;;  %v1151_v31 = vpop.f32.mrf.mxu3 }
 0x225   : > { %v7943_v1 = vadd.f32 %v1151_v31, %v1110_v54  ;;  %2106 = vperm.xlu1 %5322, %v464_v38   ;;  %v462_v38 = vld [vmem:[%s11091_s2 + $0x20] sm:$0xff] }
 0x226   : > { %2096 = vperm.xlu2 %5323, %v462_v38   ;;  %v8103_v38 = vld [vmem:[#allocation7 + $0x170] sm:$0xff] }
 0x228   : > { %4633 = vmatmul.msk.f32.gmra.mxu2 %vm974_vm3, %v7809_v34  ;;  %v7952_v21 = vpop.f32.mrf.mxu1 }
 0x229   : > { %v7948_v56 = vpop.f32.mrf.mxu0 }
 0x22a   : > { %11483 = vst [vmem:[#allocation42_spill] sm:$0xff] %v7948_v56  ;;  %4623 = vmatmul.msk.f32.gmra.mxu3 %vm974_vm3, %v7745_v10  ;;  %v7969_v10 = vld [vmem:[#allocation7 + $0x100] sm:$0xff] }
 0x22b   : > { %v1119_v9 = vpop.f32.mrf.mxu2 }
 0x22c   : > { %1470 = vmatmul.f32.gmra.mxu0 %v7813_v47  ;;  %1382 = vmatmul.f32.gmra.mxu1 %v7764_v39  ;;  %v1154_v4 = vpop.f32.mrf.mxu3 }
 0x22d   : > { %v7958_v44 = vadd.f32 %v1154_v4, %v1113_v49  ;;  %v8065_v4 = vld [vmem:[#allocation7 + $0x150] sm:$0xff] }
 0x230   : > { %4642 = vmatmul.msk.f32.vlgmr.msrb.gmra.mxu2 %vm974_vm3, %v7960_v7  ;;  %v7971_v36 = vpop.f32.mrf.mxu1 }
 0x231   : > { %v7965_v23 = vpop.f32.mrf.mxu0 }
 0x232   : > { %4624 = vmatmul.msk.f32.gmra.mxu3 %vm974_vm3, %v7791_v46 }
 0x233   : > { %v7975_v39 = vpop.f32.mrf.mxu2 }
 0x234   : > { %1902 = vmatmul.f32.vlgmr.msrb.gmra.mxu0 %v7969_v10  ;;  %1385 = vmatmul.f32.gmra.mxu1 %v7800_v48  ;;  %v1157_v30 = vpop.f32.mrf.mxu3  ;;  %v7993_v48 = vld [vmem:[#allocation7 + $0x110] sm:$0xff] }
 0x235   : > { %v7979_v32 = vadd.f32 %v1157_v30, %v1116_v12 }
 0x238   : > { %4643 = vmatmul.msk.f32.gmra.mxu2 %vm974_vm3, %v7981_v25  ;;  %v7995_v13 = vpop.f32.mrf.mxu1 }
 0x239   : > { %v7989_v46 = vpop.f32.mrf.mxu0  ;;  %11484 = vst [vmem:[#allocation44_spill] sm:$0xff] %v7995_v13 }
 0x23a   : > { %4625 = vmatmul.msk.f32.gmra.mxu3 %vm974_vm3, %v7809_v34  ;;  %v8014_v34 = vld [vmem:[#allocation7 + $0x120] sm:$0xff] }
 0x23b   : > { %v7999_v50 = vpop.f32.mrf.mxu2 }
 0x23c   : > { %1905 = vmatmul.f32.gmra.mxu0 %v7993_v48  ;;  %1388 = vmatmul.f32.gmra.mxu1 %v7813_v47  ;;  %v1160_v57 = vpop.f32.mrf.mxu3 }
 0x23d   : > { %v8003_v20 = vadd.f32 %v1160_v57, %v1119_v9  ;;  %v8075_v57 = vld [vmem:[#allocation7 + $0x168] sm:$0xff] }
 0x240   : > { %4644 = vmatmul.msk.f32.gmra.mxu2 %vm974_vm3, %v8005_v37  ;;  %v1180_v33 = vpop.f32.mrf.mxu1 }
 0x241   : > { %v8010_v16 = vpop.f32.mrf.mxu0 }
 0x242   : > { %4634 = vmatmul.msk.f32.vlgmr.msrb.gmra.mxu3 %vm974_vm3, %v7960_v7 }
 0x243   : > { %v8018_v47 = vpop.f32.mrf.mxu2 }
 0x244   : > { %1908 = vmatmul.f32.gmra.mxu0 %v8014_v34  ;;  %v1221_v62 = vpop.f32.mrf.mxu3  ;;  %1820 = vmatmul.f32.vlgmr.msrb.gmra.mxu1 %v7969_v10 }
 0x245   : > { %v8022_v54 = vadd.f32 %v1221_v62, %v1180_v33  ;;  %v8084_v62 = vld [vmem:[#allocation7 + $0x160] sm:$0xff] }
 0x247   : > { %11485 = vst [vmem:[#allocation25_spill] sm:$0xff] %v8022_v54 }
 0x248   : > { %4645 = vmatmul.msk.f32.gmra.mxu2 %vm974_vm3, %v8024_v63  ;;  %v1183_v15 = vpop.f32.mrf.mxu1 }
 0x249   : > { %v8026_v24 = vpop.f32.mrf.mxu0 }
 0x24a   : > { %4635 = vmatmul.msk.f32.gmra.mxu3 %vm974_vm3, %v7981_v25 }
 0x24b   : > { %v8034_v40 = vpop.f32.mrf.mxu2 }
 0x24c   : > { %1911 = vmatmul.f32.gmra.mxu0 %v8030_v6  ;;  %v1224_v45 = vpop.f32.mrf.mxu3  ;;  %1823 = vmatmul.f32.gmra.mxu1 %v7993_v48 }
 0x24d   : > { %v8038_v49 = vadd.f32 %v1224_v45, %v1183_v15 }
 0x24f   : > { %11486 = vst [vmem:[#allocation39_spill] sm:$0xff] %v8038_v49 }
 0x250   : > { %4646 = vmatmul.msk.f32.gmra.mxu2 %vm974_vm3, %v8040_v22 }
 0x251   : > { %v8045_v8 = vpop.f32.mrf.mxu0  ;;  %v1186_v19 = vpop.f32.mrf.mxu1 }
 0x252   : > { %4636 = vmatmul.msk.f32.gmra.mxu3 %vm974_vm3, %v8005_v37 }
 0x253   : > { %v8053_v12 = vpop.f32.mrf.mxu2 }
 0x254   : > { %1914 = vmatmul.f32.gmra.mxu0 %v8049_v60  ;;  %1826 = vmatmul.f32.gmra.mxu1 %v8014_v34 }
 0x255   : > { %v1227_v31 = vpop.f32.mrf.mxu3 }
 0x256   : > { %v8057_v29 = vadd.f32 %v1227_v31, %v1186_v19  ;;  %v8094_v31 = vld [vmem:[#allocation7 + $0x178] sm:$0xff] }
 0x258   : > { %11487 = vst [vmem:[#allocation30_spill] sm:$0xff] %v8057_v29  ;;  %4647 = vmatmul.msk.f32.gmra.mxu2 %vm974_vm3, %v8059_v26 }
 0x259   : > { %v8061_v9 = vpop.f32.mrf.mxu0  ;;  %v1189_v18 = vpop.f32.mrf.mxu1 }
 0x25a   : > { %4637 = vmatmul.msk.f32.gmra.mxu3 %vm974_vm3, %v8024_v63 }
 0x25b   : > { %v8069_v30 = vpop.f32.mrf.mxu2 }
 0x25c   : > { %1917 = vmatmul.f32.gmra.mxu0 %v8065_v4  ;;  %1829 = vmatmul.f32.gmra.mxu1 %v8030_v6 }
 0x25d   : > { %v1230_v51 = vpop.f32.mrf.mxu3 }
 0x25e   : > { %v8073_v27 = vadd.f32 %v1230_v51, %v1189_v18  ;;  %v465_v18 = vld [vmem:[%s11091_s2 + $0x38] sm:$0xff] }
 0x25f   : > { %2111 = vperm.xlu2 %5323, %v465_v18  }
 0x260   : > { %11488 = vst [vmem:[#allocation43_spill] sm:$0xff] %v8073_v27  ;;  %4648 = vmatmul.msk.f32.gmra.mxu2 %vm974_vm3, %v8075_v57 }
 0x261   : > { %v8080_v33 = vpop.f32.mrf.mxu0  ;;  %v1192_v15 = vpop.f32.mrf.mxu1 }
 0x262   : > { %4638 = vmatmul.msk.f32.gmra.mxu3 %vm974_vm3, %v8040_v22 }
 0x263   : > { %v8088_v45 = vpop.f32.mrf.mxu2 }
 0x264   : > { %11489 = vst [vmem:[#allocation20_spill] sm:$0xff] %v8088_v45  ;;  %1920 = vmatmul.f32.gmra.mxu0 %v8084_v62  ;;  %1832 = vmatmul.f32.gmra.mxu1 %v8049_v60 }
 0x265   : > { %v1233_v0 = vpop.f32.mrf.mxu3 }
 0x266   : > { %v8092_v19 = vadd.f32 %v1233_v0, %v1192_v15 }
 0x268   : > { %11490 = vst [vmem:[#allocation35_spill] sm:$0xff] %v8092_v19  ;;  %4649 = vmatmul.msk.f32.gmra.mxu2 %vm974_vm3, %v8094_v31 }
 0x269   : > { %v8099_v51 = vpop.f32.mrf.mxu0  ;;  %v1195_v27 = vpop.f32.mrf.mxu1 }
 0x26a   : > { %11491 = vst [vmem:[#allocation26_spill] sm:$0xff] %v8099_v51  ;;  %4639 = vmatmul.msk.f32.gmra.mxu3 %vm974_vm3, %v8059_v26 }
 0x26b   : > { %v8107_v15 = vpop.f32.mrf.mxu2 }
 0x26c   : > { %11492 = vst [vmem:[#allocation40_spill] sm:$0xff] %v8107_v15  ;;  %1923 = vmatmul.f32.gmra.mxu0 %v8103_v38  ;;  %1835 = vmatmul.f32.gmra.mxu1 %v8065_v4 }
 0x26d   : > { %v1236_v0 = vpop.f32.mrf.mxu3 }
 0x26e   : > { %v8111_v19 = vadd.f32 %v1236_v0, %v1195_v27 }
 0x270   : > { %11493 = vst [vmem:[#allocation17_spill] sm:$0xff] %v8111_v19 }
 0x271   : > { %v8113_v18 = vpop.f32.mrf.mxu0  ;;  %v1198_v29 = vpop.f32.mrf.mxu1 }
 0x272   : > { %11494 = vst [vmem:[#allocation31_spill] sm:$0xff] %v8113_v18  ;;  %4640 = vmatmul.msk.f32.gmra.mxu3 %vm974_vm3, %v8075_v57 }
 0x273   : > { %v8117_v49 = vpop.f32.mrf.mxu2 }
 0x274   : > { %11495 = vst [vmem:[#allocation22_spill] sm:$0xff] %v8117_v49  ;;  %1838 = vmatmul.f32.gmra.mxu1 %v8084_v62 }
 0x275   : > { %v1239_v54 = vpop.f32.mrf.mxu3 }
 0x276   : > { %v8120_v51 = vadd.f32 %v1239_v54, %v1198_v29 }
 0x278   : > { %11496 = vst [vmem:[#allocation36_spill] sm:$0xff] %v8120_v51 }
 0x279   : > { %v8122_v15 = vpop.f32.mrf.mxu0  ;;  %v1201_v13 = vpop.f32.mrf.mxu1 }
 0x27a   : > { %11497 = vst [vmem:[#allocation15_spill] sm:$0xff] %v8122_v15  ;;  %4641 = vmatmul.msk.f32.gmra.mxu3 %vm974_vm3, %v8094_v31 }
 0x27b   : > { %v8126_v27 = vpop.f32.mrf.mxu2 }
 0x27c   : > { %11498 = vst [vmem:[#allocation19_spill] sm:$0xff] %v8126_v27  ;;  %1841 = vmatmul.f32.gmra.mxu1 %v8103_v38 }
 0x27d   : > { %v1242_v0 = vpop.f32.mrf.mxu3 }
 0x27e   : > { %v8129_v19 = vadd.f32 %v1242_v0, %v1201_v13 }
 0x280   : > { %11499 = vst [vmem:[#allocation27_spill] sm:$0xff] %v8129_v19 }
 0x281   : > { %v8131_v18 = vpop.f32.mrf.mxu0  ;;  %v1368_v49 = vpop.f32.mrf.mxu1 }
 0x282   : > { %11500 = vst [vmem:[#allocation32_spill] sm:$0xff] %v8131_v18  ;;  %4650 = vmatmul.msk.f32.vlgmr.msra.gmra.mxu3 %vm974_vm3, %v7960_v7  ;;  %v8214_v18 = vpop.permute.xlu0 %2076 }
 0x283   : > { %v8135_v54 = vpop.f32.mrf.mxu2 }
 0x284   : > { %11501 = vst [vmem:[#allocation23_spill] sm:$0xff] %v8135_v54  ;;  %1984 = vmatmul.f32.vlgmr.msra.gmra.mxu1 %v7969_v10 }
 0x285   : > { %v1409_v29 = vpop.f32.mrf.mxu3 }
 0x289   : > { %v8138_v51 = vpop.f32.mrf.mxu0  ;;  %v1371_v15 = vpop.f32.mrf.mxu1 }
 0x28a   : > { %11502 = vst [vmem:[#allocation28_spill] sm:$0xff] %v8138_v51  ;;  %4651 = vmatmul.msk.f32.gmra.mxu3 %vm974_vm3, %v7981_v25 }
 0x28b   : > { %v8142_v27 = vpop.f32.mrf.mxu2 }
 0x28c   : > { %11503 = vst [vmem:[#allocation18_spill] sm:$0xff] %v8142_v27  ;;  %1987 = vmatmul.f32.gmra.mxu1 %v7993_v48 }
 0x28d   : > { %v1412_v13 = vpop.f32.mrf.mxu3 }
 0x291   : > { %v8145_v0 = vpop.f32.mrf.mxu0  ;;  %v8147_v19 = vpop.f32.mrf.mxu1 }
 0x292   : > { %11504 = vst [vmem:[#allocation24_spill] sm:$0xff] %v8145_v0  ;;  %4652 = vmatmul.msk.f32.gmra.mxu3 %vm974_vm3, %v8005_v37 }
 0x293   : > { %v8151_v7 = vpop.f32.mrf.mxu2 }
 0x294   : > { %11505 = vst [vmem:[#allocation16_spill] sm:$0xff] %v8151_v7  ;;  %1990 = vmatmul.f32.gmra.mxu1 %v8014_v34 }
 0x295   : > { %v8153_v10 = vpop.f32.mrf.mxu3 }
 0x299   : > { %v8156_v51 = vpop.f32.mrf.mxu0  ;;  %v8158_v25 = vpop.f32.mrf.mxu1 }
 0x29a   : > { %11506 = vst [vmem:[#allocation21_spill] sm:$0xff] %v8156_v51  ;;  %4653 = vmatmul.msk.f32.gmra.mxu3 %vm974_vm3, %v8024_v63 }
 0x29b   : > { %v8162_v48 = vpop.f32.mrf.mxu2 }
 0x29c   : > { %11507 = vst [vmem:[#allocation33_spill] sm:$0xff] %v8162_v48  ;;  %1993 = vmatmul.f32.gmra.mxu1 %v8030_v6  ;;  %v11171_v6 = vmov 0.0  }
 0x29d   : > { %v8164_v0 = vpop.f32.mrf.mxu3  ;;  %2194 = vst.msk [vmem:[#allocation2] sm:$0xff] %vm2193_vm5, %v11171_v6 }
 0x29e   : > { %2195 = vst.msk [vmem:[#allocation2 + $0x20] sm:$0xff] %vm2193_vm5, %v11171_v6 }
 0x29f   : > { %2196 = vst.msk [vmem:[#allocation2 + $0x40] sm:$0xff] %vm2193_vm5, %v11171_v6 }
 0x2a0   : > { %2197 = vst.msk [vmem:[#allocation2 + $0x60] sm:$0xff] %vm2193_vm5, %v11171_v6 }
 0x2a1   : > { %v8167_v37 = vpop.f32.mrf.mxu0  ;;  %v8169_v7 = vpop.f32.mrf.mxu1  ;;  %2198 = vst.msk [vmem:[#allocation2 + $0x80] sm:$0xff] %vm2193_vm5, %v11171_v6 }
 0x2a2   : > { %11508 = vst [vmem:[#allocation29_spill] sm:$0xff] %v8167_v37  ;;  %4654 = vmatmul.msk.f32.gmra.mxu3 %vm974_vm3, %v8040_v22 }
 0x2a3   : > { %v8173_v34 = vpop.f32.mrf.mxu2  ;;  %2199 = vst.msk [vmem:[#allocation2 + $0xa0] sm:$0xff] %vm2193_vm5, %v11171_v6 }
 0x2a4   : > { %11509 = vst [vmem:[#allocation34_spill] sm:$0xff] %v8173_v34  ;;  %1996 = vmatmul.f32.gmra.mxu1 %v8049_v60 }
 0x2a5   : > { %v8175_v51 = vpop.f32.mrf.mxu3  ;;  %2200 = vst.msk [vmem:[#allocation2 + $0xc0] sm:$0xff] %vm2193_vm5, %v11171_v6 }
 0x2a6   : > { %2201 = vst.msk [vmem:[#allocation2 + $0xe0] sm:$0xff] %vm2193_vm5, %v11171_v6 }
 0x2a9   : > { %v8178_v63 = vpop.f32.mrf.mxu0  ;;  %v8180_v48 = vpop.f32.mrf.mxu1 }
 0x2aa   : > { %11510 = vst [vmem:[#allocation45_spill] sm:$0xff] %v8178_v63  ;;  %4655 = vmatmul.msk.f32.gmra.mxu3 %vm974_vm3, %v8059_v26  ;;  %v1140_v26 = vadd.f32 %v7841_v61, %v7821_v17  ;;  %v8219_v17 = vld [vmem:[%s11096_s7] sm:$0x7] }
 0x2ab   : > { %v8188_v22 = vpop.f32.mrf.mxu2 }
 0x2ac   : > { %11511 = vst [vmem:[#allocation38_spill] sm:$0xff] %v8188_v22  ;;  %1999 = vmatmul.f32.gmra.mxu1 %v8065_v4  ;;  %v1369_v63 = vadd.f32 %v1368_v49, %v1140_v26 }
 0x2ad   : > { %v8192_v60 = vpop.f32.mrf.mxu3 }
 0x2ae   : > { %v1410_v37 = vadd.f32 %v1409_v29, %v1369_v63 }
 0x2b1   : > { %v1903_v22 = vpop.f32.mrf.mxu0  ;;  %v8207_v4 = vpop.f32.mrf.mxu1 }
 0x2b2   : > { %4656 = vmatmul.msk.f32.gmra.mxu3 %vm974_vm3, %v8075_v57  ;;  %v8223_v57 = vperm.slane %v8219_v17, 1 }
 0x2b3   : > { %v1944_v34 = vpop.f32.mrf.mxu2 }
 0x2b4   : > { %v1945_v54 = vadd.f32 %v1944_v34, %v1903_v22  ;;  %2002 = vmatmul.f32.gmra.mxu1 %v8084_v62  ;;  %v1372_v62 = vadd.f32 %v1371_v15, %v7871_v11  ;;  %v1058_v11 = vadd.f32 %v7838_v52, %v7815_v3 }
 0x2b5   : > { %v8211_v27 = vpop.f32.mrf.mxu3 }
 0x2b6   : > { %v2051_v61 = vadd.f32 %v1945_v54, %v1410_v37  ;;  %v1413_v22 = vadd.f32 %v1412_v13, %v1372_v62  ;;  %v1375_v13 = vadd.f32 %v8147_v19, %v7902_v53  ;;  %v1061_v19 = vadd.f32 %v7857_v59, %v7827_v14 }
 0x2b8   : > { %v2115_v6 = vadd.f32 %v8214_v18, %v2051_v61  ;;  %v8236_v61 = vpop.permute.xlu1 %2081 }
 0x2b9   : > { %v1906_v49 = vpop.f32.mrf.mxu0  ;;  %v8225_v29 = vpop.f32.mrf.mxu1 }
 0x2ba   : > { %4657 = vmatmul.msk.f32.gmra.mxu3 %vm974_vm3, %v8094_v31  ;;  %v2139_v34 = vmax.f32 %v2115_v6, 0.0 }
 0x2bb   : > { %v1947_v63 = vpop.f32.mrf.mxu2 }
 0x2bc   : > { %v8231_v26 = vmul.f32 %v8223_v57, %v2139_v34  ;;  %v1948_v37 = vadd.f32 %v1947_v63, %v1906_v49  ;;  %2005 = vmatmul.f32.gmra.mxu1 %v8103_v38  ;;  %v1287_v49 = vadd.f32 %v7965_v23, %v1058_v11  ;;  %v1416_v38 = vadd.f32 %v8153_v10, %v1375_v13 }
 0x2bd   : > { %v8233_v54 = vpop.f32.mrf.mxu3 }
 0x2be   : > { %11512 = vst [vmem:[#allocation46_spill] sm:$0xff] %v8231_v26  ;;  %v2054_v56 = vadd.f32 %v1948_v37, %v1413_v22 }
 0x2bf   : > { %2212 = vst [vmem:[#allocation2 + $0x10] sm:$0xff] %v8231_v26  ;;  %v8250_v26 = vpop.permute.xlu2 %2086 }
 0x2c0   : > { %v2118_v31 = vadd.f32 %v8236_v61, %v2054_v56  ;;  %v1328_v56 = vadd.f32 %v7975_v39, %v1287_v49  ;;  %v1378_v39 = vadd.f32 %v8158_v25, %v7925_v41 }
 0x2c1   : > { %v1909_v45 = vpop.f32.mrf.mxu0  ;;  %v1821_v15 = vpop.f32.mrf.mxu1 }
 0x2c2   : > { %v2142_v6 = vmax.f32 %v2118_v31, 0.0  ;;  %v8258_v31 = vperm.slane %v8219_v17, 0  ;;  %v1419_v49 = vadd.f32 %v8164_v0, %v1378_v39 }
 0x2c3   : > { %v1950_v62 = vpop.f32.mrf.mxu2 }
 0x2c4   : > { %v8247_v34 = vmul.f32 %v8223_v57, %v2142_v6  ;;  %v1951_v22 = vadd.f32 %v1950_v62, %v1909_v45 }
 0x2c5   : > { %v1862_v63 = vpop.f32.mrf.mxu3 }
 0x2c6   : > { %v1863_v37 = vadd.f32 %v1862_v63, %v1821_v15  ;;  %2216 = vst [vmem:[#allocation2 + $0x30] sm:$0xff] %v8247_v34  ;;  %v2057_v3 = vadd.f32 %v1951_v22, %v1416_v38  ;;  %v1290_v15 = vadd.f32 %v7989_v46, %v1061_v19  ;;  %v2236_v38 = vld [vmem:[#allocation2] sm:$0xff]  ;;  %v8270_v46 = vpop.permute.xlu1 %2091 }
 0x2c8   : > { %v2050_v52 = vadd.f32 %v1863_v37, %v1328_v56  ;;  %v2121_v53 = vadd.f32 %v8250_v26, %v2057_v3  ;;  %v1331_v63 = vadd.f32 %v7999_v50, %v1290_v15 }
 0x2c9   : > { %v1912_v23 = vpop.f32.mrf.mxu0  ;;  %v1824_v45 = vpop.f32.mrf.mxu1 }
 0x2ca   : > { %v2114_v10 = vadd.f32 %v8214_v18, %v2050_v52  ;;  %v2145_v11 = vmax.f32 %v2121_v53, 0.0  ;;  %v1064_v52 = vadd.f32 %v7889_v5, %v7836_v2 }
 0x2cb   : > { %v1953_v6 = vpop.f32.mrf.mxu2 }
 0x2cc   : > { %v2138_v13 = vmax.f32 %v2114_v10, 0.0  ;;  %v8265_v62 = vmul.f32 %v8223_v57, %v2145_v11  ;;  %v1954_v59 = vadd.f32 %v1953_v6, %v1912_v23  ;;  %v1381_v23 = vadd.f32 %v8169_v7, %v7943_v1  ;;  %v8288_v7 = vpop.permute.xlu2 %2096 }
 0x2cd   : > { %v1865_v14 = vpop.f32.mrf.mxu3  ;;  %v1293_v10 = vadd.f32 %v8010_v16, %v1064_v52 }
 0x2ce   : > { %v2169_v22 = vmul.f32 %v8258_v31, %v2138_v13  ;;  %v1866_v56 = vadd.f32 %v1865_v14, %v1824_v45  ;;  %2219 = vst [vmem:[#allocation2 + $0x50] sm:$0xff] %v8265_v62  ;;  %v2060_v41 = vadd.f32 %v1954_v59, %v1419_v49  ;;  %v1422_v2 = vadd.f32 %v8175_v51, %v1381_v23  ;;  %v2240_v13 = vld [vmem:[#allocation2 + $0x20] sm:$0xff] }
 0x2cf   : > { %v1334_v6 = vadd.f32 %v8018_v47, %v1293_v10 }
 0x2d0   : > { %2211 = vst [vmem:[#allocation2 + $0x8] sm:$0xff] %v2169_v22  ;;  %v2053_v25 = vadd.f32 %v1866_v56, %v1331_v63  ;;  %v5334_v37 = vpack.i.bf16 %v2169_v22, %v2236_v38  ;;  %v2124_v0 = vadd.f32 %v8270_v46, %v2060_v41  ;;  %v1067_v63 = vadd.f32 %v7911_v42, %v7855_v58 }
 0x2d1   : > { %v1915_v3 = vpop.f32.mrf.mxu0  ;;  %v1827_v50 = vpop.f32.mrf.mxu1  ;;  %v1384_v56 = vadd.f32 %v8180_v48, %v7958_v44 }
 0x2d2   : > { %v2117_v53 = vadd.f32 %v8236_v61, %v2053_v25  ;;  %5335 = vrot.lane.b32.xlu2 %v5334_v37, %s6364_s21  ;;  %5330 = vrot.lane.b32.xlu1 %v5334_v37, %s6359_s17  ;;  %v2148_v19 = vmax.f32 %v2124_v0, 0.0  ;;  %v1296_v25 = vadd.f32 %v8026_v24, %v1067_v63 }
 0x2d3   : > { %5325 = vrot.lane.b32.xlu0 %v5334_v37, %s6358_s12  ;;  %v1956_v39 = vpop.f32.mrf.mxu2  ;;  %v1425_v58 = vadd.f32 %v8192_v60, %v1384_v56 }
 0x2d4   : > { %v2141_v45 = vmax.f32 %v2117_v53, 0.0  ;;  %v8284_v5 = vmul.f32 %v8223_v57, %v2148_v19  ;;  %v1957_v15 = vadd.f32 %v1956_v39, %v1915_v3  ;;  %v8308_v19 = vpop.permute.xlu0 %2101  ;;  %v1070_v39 = vadd.f32 %v7935_v28, %v7887_v55 }
 0x2d5   : > { %v1868_v11 = vpop.f32.mrf.mxu3 }
 0x2d6   : > { %v2172_v49 = vmul.f32 %v8258_v31, %v2141_v45  ;;  %v1869_v1 = vadd.f32 %v1868_v11, %v1827_v50  ;;  %2222 = vst [vmem:[#allocation2 + $0x70] sm:$0xff] %v8284_v5  ;;  %v2063_v16 = vadd.f32 %v1957_v15, %v1422_v2  ;;  %v1337_v50 = vadd.f32 %v8034_v40, %v1296_v25 }
 0x2d7   : > { %v1387_v11 = vadd.f32 %v8207_v4, %v7979_v32 }
 0x2d8   : > { %2215 = vst [vmem:[#allocation2 + $0x28] sm:$0xff] %v2172_v49  ;;  %v2056_v14 = vadd.f32 %v1869_v1, %v1334_v6  ;;  %v5354_v59 = vpack.i.bf16 %v2172_v49, %v2240_v13  ;;  %v2127_v51 = vadd.f32 %v8288_v7, %v2063_v16  ;;  %v1299_v13 = vadd.f32 %v8045_v8, %v1070_v39 }
 0x2d9   : > { %v1918_v38 = vpop.f32.mrf.mxu0  ;;  %v1830_v47 = vpop.f32.mrf.mxu1  ;;  %v1428_v55 = vadd.f32 %v8211_v27, %v1387_v11  ;;  %v2256_v11 = vld [vmem:[#allocation2 + $0xa0] sm:$0xff] }
 0x2da   : > { %v2120_v22 = vadd.f32 %v8250_v26, %v2056_v14  ;;  %5340 = vrot.lane.b32.xlu2 %v5334_v37, %s6365_s22  ;;  %5355 = vrot.lane.b32.xlu1 %v5354_v59, %s6364_s21  ;;  %v2151_v41 = vmax.f32 %v2127_v51, 0.0  ;;  %v2244_v37 = vld [vmem:[#allocation2 + $0x40] sm:$0xff] }
 0x2db   : > { %5350 = vrot.lane.b32.xlu0 %v5354_v59, %s6359_s17  ;;  %v1959_v3 = vpop.f32.mrf.mxu2  ;;  %v2248_v14 = vld [vmem:[#allocation2 + $0x60] sm:$0xff] }
 0x2dc   : > { %v2144_v0 = vmax.f32 %v2120_v22, 0.0  ;;  %v8303_v42 = vmul.f32 %v8223_v57, %v2151_v41  ;;  %v1960_v53 = vadd.f32 %v1959_v3, %v1918_v38  ;;  %v8330_v38 = vpop.permute.xlu1 %2106  ;;  %v1073_v22 = vadd.f32 %v7952_v21, %v7909_v35 }
 0x2dd   : > { %v1871_v52 = vpop.f32.mrf.mxu3  ;;  %v1390_v41 = vadd.f32 %v8225_v29, %v8003_v20 }
 0x2de   : > { %v2175_v23 = vmul.f32 %v8258_v31, %v2144_v0  ;;  %v1872_v44 = vadd.f32 %v1871_v52, %v1830_v47  ;;  %2225 = vst [vmem:[#allocation2 + $0x90] sm:$0xff] %v8303_v42  ;;  %v2066_v48 = vadd.f32 %v1960_v53, %v1425_v58  ;;  %v1302_v0 = vadd.f32 %v8061_v9, %v1073_v22  ;;  %v8354_v9 = vpop.permute.xlu2 %2111  ;;  %v11518_v22 = vld [vmem:[#allocation40_spill] sm:$0xff] }
 0x2df   : > { %v1431_v3 = vadd.f32 %v8233_v54, %v1390_v41 }
 0x2e0   : > { %2218 = vst [vmem:[#allocation2 + $0x48] sm:$0xff] %v2175_v23  ;;  %v2059_v24 = vadd.f32 %v1872_v44, %v1337_v50  ;;  %v8310_v10 = vpack.i.bf16 %v2175_v23, %v2244_v37  ;;  %v2130_v60 = vadd.f32 %v8308_v19, %v2066_v48  ;;  %v2252_v37 = vld [vmem:[#allocation2 + $0x80] sm:$0xff]  ;;  %v1343_v50 = vadd.f32 %v8069_v30, %v1302_v0 }
 0x2e1   : > { %v1921_v45 = vpop.f32.mrf.mxu0  ;;  %v1833_v2 = vpop.f32.mrf.mxu1  ;;  %v1076_v30 = vadd.f32 %v7971_v36, %v7929_v43 }
 0x2e2   : > { %v2123_v40 = vadd.f32 %v8270_v46, %v2059_v24  ;;  %5345 = vrot.lane.b32.xlu2 %v5354_v59, %s6358_s12  ;;  %5360 = vrot.lane.b32.xlu1 %v5354_v59, %s6365_s22  ;;  %v2154_v15 = vmax.f32 %v2130_v60, 0.0  ;;  %v1340_v59 = vadd.f32 %v8053_v12, %v1299_v13  ;;  %v11513_v24 = vmov 0.0  }
 0x2e3   : > { %5375 = vrot.lane.b32.xlu0 %v8310_v10, %s6364_s21  ;;  %v1962_v49 = vpop.f32.mrf.mxu2  ;;  %2203 = vst.msk [vmem:[#allocation2 + $0x18] sm:$0xff] %vm2202_vm6, %v11513_v24  ;;  %v1305_v43 = vadd.f32 %v8080_v33, %v1076_v30 }
 0x2e4   : > { %v2147_v6 = vmax.f32 %v2123_v40, 0.0  ;;  %v8325_v28 = vmul.f32 %v8223_v57, %v2154_v15  ;;  %v1963_v16 = vadd.f32 %v1962_v49, %v1921_v45  ;;  %2204 = vst.msk [vmem:[#allocation2 + $0x38] sm:$0xff] %vm2202_vm6, %v11513_v24  ;;  %v11514_v15 = vld [vmem:[#allocation20_spill] sm:$0xff] }
 0x2e5   : > { %v1874_v1 = vpop.f32.mrf.mxu3  ;;  %2205 = vst.msk [vmem:[#allocation2 + $0x58] sm:$0xff] %vm2202_vm6, %v11513_v24  ;;  %v1346_v13 = vadd.f32 %v11514_v15, %v1305_v43 }
 0x2e6   : > { %v2178_v32 = vmul.f32 %v8258_v31, %v2147_v6  ;;  %v1875_v4 = vadd.f32 %v1874_v1, %v1833_v2  ;;  %2228 = vst [vmem:[#allocation2 + $0xb0] sm:$0xff] %v8325_v28  ;;  %v2069_v51 = vadd.f32 %v1963_v16, %v1428_v55  ;;  %v11516_v1 = vld [vmem:[#allocation44_spill] sm:$0xff] }
 0x2e7   : > { %2206 = vst.msk [vmem:[#allocation2 + $0x78] sm:$0xff] %vm2202_vm6, %v11513_v24 }
 0x2e8   : > { %2221 = vst [vmem:[#allocation2 + $0x68] sm:$0xff] %v2178_v32  ;;  %v2062_v8 = vadd.f32 %v1875_v4, %v1340_v59  ;;  %v8332_v63 = vpack.i.bf16 %v2178_v32, %v2248_v14  ;;  %v2133_v27 = vadd.f32 %v8330_v38, %v2069_v51  ;;  %v11517_v32 = vld [vmem:[#allocation26_spill] sm:$0xff] }
 0x2e9   : > { %v1836_v12 = vpop.f32.mrf.mxu1  ;;  %v1924_v56 = vpop.f32.mrf.mxu0  ;;  %2207 = vst.msk [vmem:[#allocation2 + $0x98] sm:$0xff] %vm2202_vm6, %v11513_v24 }
 0x2ea   : > { %v2126_v47 = vadd.f32 %v8288_v7, %v2062_v8  ;;  %5370 = vrot.lane.b32.xlu2 %v8310_v10, %s6359_s17  ;;  %5365 = vrot.lane.b32.xlu1 %v8310_v10, %s6358_s12  ;;  %v2157_v25 = vmax.f32 %v2133_v27, 0.0  ;;  %2208 = vst.msk [vmem:[#allocation2 + $0xb8] sm:$0xff] %vm2202_vm6, %v11513_v24  ;;  %v2260_v27 = vld [vmem:[#allocation2 + $0xc0] sm:$0xff] }
 0x2eb   : > { %5380 = vrot.lane.b32.xlu0 %v8332_v63, %s6358_s12  ;;  %v1965_v21 = vpop.f32.mrf.mxu2  ;;  %2209 = vst.msk [vmem:[#allocation2 + $0xd8] sm:$0xff] %vm2202_vm6, %v11513_v24 }
 0x2ec   : > { %v2150_v35 = vmax.f32 %v2126_v47, 0.0  ;;  %v8349_v58 = vmul.f32 %v8223_v57, %v2157_v25  ;;  %v1966_v53 = vadd.f32 %v1965_v21, %v1924_v56  ;;  %2210 = vst.msk [vmem:[#allocation2 + $0xf8] sm:$0xff] %vm2202_vm6, %v11513_v24  ;;  %v11519_v21 = vld [vmem:[#allocation25_spill] sm:$0xff] }
 0x2ed   : > { %v1877_v52 = vpop.f32.mrf.mxu3 }
 0x2ee   : > { %v2181_v20 = vmul.f32 %v8258_v31, %v2150_v35  ;;  %v1878_v29 = vadd.f32 %v1877_v52, %v1836_v12  ;;  %2231 = vst [vmem:[#allocation2 + $0xd0] sm:$0xff] %v8349_v58  ;;  %v2072_v23 = vadd.f32 %v1966_v53, %v1431_v3  ;;  %v11520_v3 = vld [vmem:[#allocation31_spill] sm:$0xff] }
 0x2ef   : > { %v1451_v52 = vadd.f32 %v11520_v3, %v11519_v21  ;;  %v11532_v3 = vld [vmem:[#allocation18_spill] sm:$0xff] }
 0x2f0   : > { %2224 = vst [vmem:[#allocation2 + $0x88] sm:$0xff] %v2181_v20  ;;  %v2065_v44 = vadd.f32 %v1878_v29, %v1343_v50  ;;  %v8356_v54 = vpack.i.bf16 %v2181_v20, %v2252_v37  ;;  %v2136_v48 = vadd.f32 %v8354_v9, %v2072_v23  ;;  %v2264_v50 = vld [vmem:[#allocation2 + $0xe0] sm:$0xff] }
 0x2f1   : > { %v1839_v45 = vpop.f32.mrf.mxu1  ;;  %v11521_v20 = vld [vmem:[#allocation22_spill] sm:$0xff] }
 0x2f2   : > { %v2129_v60 = vadd.f32 %v8308_v19, %v2065_v44  ;;  %5390 = vrot.lane.b32.xlu2 %v8332_v63, %s6364_s21  ;;  %5385 = vrot.lane.b32.xlu1 %v8332_v63, %s6359_s17  ;;  %v2160_v39 = vmax.f32 %v2136_v48, 0.0  ;;  %v1492_v29 = vadd.f32 %v11521_v20, %v1451_v52 }
 0x2f3   : > { %5400 = vrot.lane.b32.xlu0 %v8356_v54, %s6359_s17 }
 0x2f4   : > { %v2153_v36 = vmax.f32 %v2129_v60, 0.0  ;;  %v8378_v40 = vmul.f32 %v8223_v57, %v2160_v39  ;;  %v11515_v57 = vld [vmem:[#allocation42_spill] sm:$0xff]  ;;  %v8422_v60 = vperm.slane %v8219_v17, 2  ;;  %v11523_v39 = vld [vmem:[#allocation15_spill] sm:$0xff] }
 0x2f5   : > { %v1880_v2 = vpop.f32.mrf.mxu3  ;;  %v1079_v16 = vadd.f32 %v11516_v1, %v11515_v57  ;;  %v11526_v57 = vld [vmem:[#allocation32_spill] sm:$0xff] }
 0x2f6   : > { %v2184_v6 = vmul.f32 %v8258_v31, %v2153_v36  ;;  %v1881_v49 = vadd.f32 %v1880_v2, %v1839_v45  ;;  %2234 = vst [vmem:[#allocation2 + $0xf0] sm:$0xff] %v8378_v40 }
 0x2f7   : > { %v1308_v4 = vadd.f32 %v11517_v32, %v1079_v16 }
 0x2f8   : > { %2227 = vst [vmem:[#allocation2 + $0xa8] sm:$0xff] %v2184_v6  ;;  %v2068_v33 = vadd.f32 %v1881_v49, %v1346_v13  ;;  %v8387_v55 = vpack.i.bf16 %v2184_v6, %v2256_v11 }
 0x2f9   : > { %v1842_v59 = vpop.f32.mrf.mxu1  ;;  %v1349_v47 = vadd.f32 %v11518_v22, %v1308_v4 }
 0x2fa   : > { %v2132_v14 = vadd.f32 %v8330_v38, %v2068_v33  ;;  %5395 = vrot.lane.b32.xlu2 %v8356_v54, %s6358_s12  ;;  %5405 = vrot.lane.b32.xlu1 %v8356_v54, %s6364_s21  ;;  %v11525_v33 = vld [vmem:[#allocation30_spill] sm:$0xff] }
 0x2fb   : > { %5420 = vrot.lane.b32.xlu0 %v8387_v55, %s6364_s21  ;;  %v1457_v1 = vadd.f32 %v11526_v57, %v11525_v33 }
 0x2fc   : > { %v2156_v51 = vmax.f32 %v2132_v14, 0.0 }
 0x2fd   : > { %v1883_v8 = vpop.f32.mrf.mxu3 }
 0x2fe   : > { %v2187_v12 = vmul.f32 %v8258_v31, %v2156_v51  ;;  %v1884_v56 = vadd.f32 %v1883_v8, %v1842_v59  ;;  %v11527_v59 = vld [vmem:[#allocation23_spill] sm:$0xff] }
 0x2ff   : > { %v1498_v32 = vadd.f32 %v11527_v59, %v1457_v1  ;;  %v11540_v1 = vld [vmem:[#allocation33_spill] sm:$0xff] }
 0x300   : > { %2230 = vst [vmem:[#allocation2 + $0xc8] sm:$0xff] %v2187_v12  ;;  %v2071_v41 = vadd.f32 %v1884_v56, %v1349_v47  ;;  %v8405_v25 = vpack.i.bf16 %v2187_v12, %v2260_v27  ;;  %v11529_v27 = vld [vmem:[#allocation46_spill] sm:$0xff]  ;;  %v11530_v56 = vld [vmem:[#allocation43_spill] sm:$0xff] }
 0x301   : > { %v1985_v35 = vpop.f32.mrf.mxu1 }
 0x302   : > { %v2135_v0 = vadd.f32 %v8354_v9, %v2071_v41  ;;  %5415 = vrot.lane.b32.xlu2 %v8387_v55, %s6359_s17  ;;  %5410 = vrot.lane.b32.xlu1 %v8387_v55, %s6358_s12  ;;  %v11531_v41 = vld [vmem:[#allocation28_spill] sm:$0xff] }
 0x303   : > { %5425 = vrot.lane.b32.xlu0 %v8405_v25, %s6358_s12 }
 0x304   : > { %v2159_v53 = vmax.f32 %v2135_v0, 0.0  ;;  %v1460_v0 = vadd.f32 %v11531_v41, %v11530_v56  ;;  %v11544_v41 = vld [vmem:[#allocation34_spill] sm:$0xff] }
 0x305   : > { %v2026_v37 = vpop.f32.mrf.mxu3 }
 0x306   : > { %v2190_v23 = vmul.f32 %v8258_v31, %v2159_v53  ;;  %v2027_v44 = vadd.f32 %v2026_v37, %v1985_v35  ;;  %v11522_v31 = vld [vmem:[#allocation39_spill] sm:$0xff]  ;;  %v1501_v52 = vadd.f32 %v11532_v3, %v1460_v0 }
 0x307   : > { %v1454_v43 = vadd.f32 %v11523_v39, %v11522_v31  ;;  %v11536_v39 = vld [vmem:[#allocation16_spill] sm:$0xff] }
 0x308   : > { %2233 = vst [vmem:[#allocation2 + $0xe8] sm:$0xff] %v2190_v23  ;;  %v2052_v48 = vadd.f32 %v2027_v44, %v1492_v29  ;;  %v8418_v24 = vpack.i.bf16 %v2190_v23, %v2264_v50 }
 0x309   : > { %v1988_v45 = vpop.f32.mrf.mxu1 }
 0x30a   : > { %v2116_v30 = vadd.f32 %v8214_v18, %v2052_v48  ;;  %5435 = vrot.lane.b32.xlu2 %v8405_v25, %s6364_s21  ;;  %5430 = vrot.lane.b32.xlu1 %v8405_v25, %s6359_s17  ;;  %v11524_v18 = vld [vmem:[#allocation19_spill] sm:$0xff] }
 0x30b   : > { %5445 = vrot.lane.b32.xlu0 %v8418_v24, %s6359_s17  ;;  %v1495_v11 = vadd.f32 %v11524_v18, %v1454_v43  ;;  %v11534_v48 = vld [vmem:[#allocation35_spill] sm:$0xff] }
 0x30c   : > { %v2140_v36 = vmax.f32 %v2116_v30, 0.0  ;;  %v11535_v30 = vld [vmem:[#allocation24_spill] sm:$0xff] }
 0x30d   : > { %v2029_v2 = vpop.f32.mrf.mxu3 }
 0x30e   : > { %v2171_v17 = vmul.f32 %v8422_v60, %v2140_v36  ;;  %v2030_v15 = vadd.f32 %v2029_v2, %v1988_v45  ;;  %v1463_v45 = vadd.f32 %v11535_v30, %v11534_v48 }
 0x310   : > { %2214 = vst.msk [vmem:[#allocation2 + $0x18] sm:$0xff] %vm2213_vm7, %v2171_v17  ;;  %v2055_v13 = vadd.f32 %v2030_v15, %v1495_v11  ;;  %v1504_v43 = vadd.f32 %v11536_v39, %v1463_v45  ;;  %v11547_v45 = vld [vmem:[#allocation38_spill] sm:$0xff] }
 0x311   : > { %v1991_v49 = vpop.f32.mrf.mxu1 }
 0x312   : > { %v2119_v6 = vadd.f32 %v8236_v61, %v2055_v13  ;;  %5440 = vrot.lane.b32.xlu2 %v8418_v24, %s6358_s12  ;;  %5450 = vrot.lane.b32.xlu1 %v8418_v24, %s6364_s21  ;;  %v11537_v13 = vld [vmem:[#allocation17_spill] sm:$0xff] }
 0x314   : > { %v2143_v16 = vmax.f32 %v2119_v6, 0.0  ;;  %v11538_v6 = vld [vmem:[#allocation21_spill] sm:$0xff] }
 0x315   : > { %v2032_v14 = vpop.f32.mrf.mxu3 }
 0x316   : > { %v2174_v4 = vmul.f32 %v8422_v60, %v2143_v16  ;;  %v2033_v51 = vadd.f32 %v2032_v14, %v1991_v49  ;;  %v1466_v49 = vadd.f32 %v11538_v6, %v11537_v13 }
 0x317   : > { %v8444_v8 = vld [vmem:[#allocation2 + $0x18] sm:$0xff] }
 0x318   : > { %11528 = vst [vmem:[#allocation41_spill] sm:$0xff] %v8444_v8  ;;  %v2058_v61 = vadd.f32 %v2033_v51, %v1498_v32  ;;  %v5464_v22 = vpack.i.bf16 %v8444_v8, %v11529_v27  ;;  %v1507_v16 = vadd.f32 %v11540_v1, %v1466_v49  ;;  %v11541_v27 = vld [vmem:[#allocation36_spill] sm:$0xff] }
 0x319   : > { %2217 = vst.msk [vmem:[#allocation2 + $0x38] sm:$0xff] %vm2213_vm7, %v2174_v4  ;;  %v1994_v12 = vpop.f32.mrf.mxu1 }
 0x31a   : > { %v2122_v47 = vadd.f32 %v8250_v26, %v2058_v61  ;;  %5465 = vrot.lane.b32.xlu0 %v5464_v22, %s6364_s21  ;;  %5460 = vrot.lane.b32.xlu2 %v5464_v22, %s6359_s17 }
 0x31b   : > { %5455 = vrot.lane.b32.xlu1 %v5464_v22, %s6358_s12 }
 0x31c   : > { %v2146_v35 = vmax.f32 %v2122_v47, 0.0 }
 0x31d   : > { %v2035_v21 = vpop.f32.mrf.mxu3 }
 0x31e   : > { %v2177_v53 = vmul.f32 %v8422_v60, %v2146_v35  ;;  %v2036_v37 = vadd.f32 %v2035_v21, %v1994_v12 }
 0x320   : > { %v8457_v50 = vld [vmem:[#allocation2 + $0x38] sm:$0xff]  ;;  %2220 = vst.msk [vmem:[#allocation2 + $0x58] sm:$0xff] %vm2213_vm7, %v2177_v53  ;;  %v2061_v26 = vadd.f32 %v2036_v37, %v1501_v52 }
 0x321   : > { %11533 = vst [vmem:[#allocation37_spill] sm:$0xff] %v8457_v50  ;;  %v8462_v20 = vpack.i.bf16 %v8457_v50, %v8247_v34  ;;  %v1997_v44 = vpop.f32.mrf.mxu1 }
 0x322   : > { %v2125_v23 = vadd.f32 %v8270_v46, %v2061_v26  ;;  %5470 = vrot.lane.b32.xlu0 %v5464_v22, %s6365_s22  ;;  %v11542_v22 = vld [vmem:[#allocation29_spill] sm:$0xff]  ;;  %v11545_v26 = vld [vmem:[#allocation27_spill] sm:$0xff] }
 0x323   : > { %5485 = vrot.lane.b32.xlu2 %v8462_v20, %s6364_s21  ;;  %5480 = vrot.lane.b32.xlu1 %v8462_v20, %s6359_s17  ;;  %v1469_v47 = vadd.f32 %v11542_v22, %v11541_v27 }
 0x324   : > { %v2149_v31 = vmax.f32 %v2125_v23, 0.0  ;;  %v11546_v23 = vld [vmem:[#allocation45_spill] sm:$0xff] }
 0x325   : > { %v2038_v34 = vpop.f32.mrf.mxu3  ;;  %v1510_v0 = vadd.f32 %v11544_v41, %v1469_v47 }
 0x326   : > { %v2180_v36 = vmul.f32 %v8422_v60, %v2149_v31  ;;  %v2039_v2 = vadd.f32 %v2038_v34, %v1997_v44  ;;  %v1472_v44 = vadd.f32 %v11546_v23, %v11545_v26 }
 0x327   : > { %v2247_v46 = vld [vmem:[#allocation2 + $0x58] sm:$0xff] }
 0x328   : > { %2223 = vst.msk [vmem:[#allocation2 + $0x78] sm:$0xff] %vm2213_vm7, %v2180_v36  ;;  %v2064_v18 = vadd.f32 %v2039_v2, %v1504_v43  ;;  %v8478_v11 = vpack.i.bf16 %v2247_v46, %v8265_v62  ;;  %v1513_v31 = vadd.f32 %v11547_v45, %v1472_v44 }
 0x329   : > { %v2000_v15 = vpop.f32.mrf.mxu1 }
 0x32a   : > { %v2128_v17 = vadd.f32 %v8288_v7, %v2064_v18  ;;  %5475 = vrot.lane.b32.xlu0 %v8462_v20, %s6358_s12 }
 0x32b   : > { %5490 = vrot.lane.b32.xlu2 %v8478_v11, %s6358_s12  ;;  %5500 = vrot.lane.b32.xlu1 %v8478_v11, %s6364_s21 }
 0x32c   : > { %v2152_v33 = vmax.f32 %v2128_v17, 0.0  ;;  %v8489_v57 = vpop.permute.xlu2 %5335 }
 0x32d   : > { %11539 = vst [vmem:[#allocation20_spill] sm:$0xff] %v8489_v57  ;;  %v2041_v62 = vpop.f32.mrf.mxu3 }
 0x32e   : > { %v2183_v7 = vmul.f32 %v8422_v60, %v2152_v33  ;;  %v2042_v14 = vadd.f32 %v2041_v62, %v2000_v15 }
 0x32f   : > { %v2251_v59 = vld [vmem:[#allocation2 + $0x78] sm:$0xff] }
 0x330   : > { %2226 = vst.msk [vmem:[#allocation2 + $0x98] sm:$0xff] %vm2213_vm7, %v2183_v7  ;;  %v2067_v32 = vadd.f32 %v2042_v14, %v1507_v16  ;;  %v8495_v4 = vpack.i.bf16 %v2251_v59, %v8284_v5 }
 0x331   : > { %v2003_v61 = vpop.f32.mrf.mxu1 }
 0x332   : > { %v2131_v51 = vadd.f32 %v8308_v19, %v2067_v32  ;;  %5495 = vrot.lane.b32.xlu0 %v8478_v11, %s6359_s17 }
 0x333   : > { %5510 = vrot.lane.b32.xlu2 %v8495_v4, %s6359_s17  ;;  %5505 = vrot.lane.b32.xlu1 %v8495_v4, %s6358_s12 }
 0x334   : > { %v2155_v12 = vmax.f32 %v2131_v51, 0.0  ;;  %v8506_v56 = vpop.permute.xlu2 %5340 }
 0x335   : > { %11543 = vst [vmem:[#allocation42_spill] sm:$0xff] %v8506_v56  ;;  %v2044_v5 = vpop.f32.mrf.mxu3 }
 0x336   : > { %v2186_v19 = vmul.f32 %v8422_v60, %v2155_v12  ;;  %v2045_v35 = vadd.f32 %v2044_v5, %v2003_v61 }
 0x337   : > { %v2255_v21 = vld [vmem:[#allocation2 + $0x98] sm:$0xff] }
 0x338   : > { %2229 = vst.msk [vmem:[#allocation2 + $0xb8] sm:$0xff] %vm2213_vm7, %v2186_v19  ;;  %v2070_v3 = vadd.f32 %v2045_v35, %v1510_v0  ;;  %v8512_v52 = vpack.i.bf16 %v2255_v21, %v8303_v42 }
 0x339   : > { %v2006_v37 = vpop.f32.mrf.mxu1 }
 0x33a   : > { %v2134_v53 = vadd.f32 %v8330_v38, %v2070_v3  ;;  %5515 = vrot.lane.b32.xlu0 %v8495_v4, %s6364_s21 }
 0x33b   : > { %5530 = vrot.lane.b32.xlu2 %v8512_v52, %s6364_s21  ;;  %5525 = vrot.lane.b32.xlu1 %v8512_v52, %s6359_s17 }
 0x33c   : > { %v2158_v48 = vmax.f32 %v2134_v53, 0.0  ;;  %v8523_v30 = vpop.permute.xlu2 %5345 }
 0x33d   : > { %v2047_v42 = vpop.f32.mrf.mxu3 }
 0x33e   : > { %v2189_v38 = vmul.f32 %v8422_v60, %v2158_v48  ;;  %v2048_v34 = vadd.f32 %v2047_v42, %v2006_v37 }
 0x33f   : > { %v2259_v39 = vld [vmem:[#allocation2 + $0xb8] sm:$0xff] }
 0x340   : > { %2232 = vst.msk [vmem:[#allocation2 + $0xd8] sm:$0xff] %vm2213_vm7, %v2189_v38  ;;  %v2073_v43 = vadd.f32 %v2048_v34, %v1513_v31  ;;  %v8529_v36 = vpack.i.bf16 %v2259_v39, %v8325_v28 }
 0x342   : > { %v2137_v2 = vadd.f32 %v8354_v9, %v2073_v43  ;;  %5520 = vrot.lane.b32.xlu0 %v8512_v52, %s6358_s12 }
 0x343   : > { %5535 = vrot.lane.b32.xlu2 %v8529_v36, %s6358_s12  ;;  %5545 = vrot.lane.b32.xlu1 %v8529_v36, %s6364_s21 }
 0x344   : > { %v2161_v46 = vmax.f32 %v2137_v2, 0.0  ;;  %v8538_v18 = vpop.permute.xlu2 %5370  ;;  %v5331_v17 = vpop.permute.xlu1 %5330 }
 0x345   : > { %11548 = vst [vmem:[#allocation44_spill] sm:$0xff] %v8538_v18  ;;  %v8540_v15 = vpop.permute.xlu0 %5325  ;;  %v5333_v47 = vunpack.i.h.bf16 %v5331_v17  ;;  %v5332_v12 = vunpack.i.l.bf16 %v5331_v17 }
 0x346   : > { %v2192_v28 = vmul.f32 %v8422_v60, %v2161_v46 }
 0x347   : > { %v2263_v13 = vld [vmem:[#allocation2 + $0xd8] sm:$0xff]  ;;  %v8595_v35 = vsel %vm668_vm1, %v5332_v12, %v5333_v47 }
 0x348   : > { %2235 = vst.msk [vmem:[#allocation2 + $0xf8] sm:$0xff] %vm2213_vm7, %v2192_v28  ;;  %v8545_v9 = vpack.i.bf16 %v2263_v13, %v8349_v58 }
 0x349   : > { %11559 = vst [vmem:[#allocation23_spill] sm:$0xff] %v8595_v35 }
 0x34a   : > { %5540 = vrot.lane.b32.xlu0 %v8529_v36, %s6359_s17 }
 0x34b   : > { %5555 = vrot.lane.b32.xlu2 %v8545_v9, %s6359_s17  ;;  %5550 = vrot.lane.b32.xlu1 %v8545_v9, %s6358_s12 }
 0x34c   : > { %v8553_v6 = vpop.permute.xlu2 %5390  ;;  %v8555_v49 = vpop.permute.xlu1 %5355 }
 0x34d   : > { %11549 = vst [vmem:[#allocation26_spill] sm:$0xff] %v8553_v6  ;;  %v8557_v60 = vpop.permute.xlu0 %5350 }
 0x34e   : > { %11550 = vst [vmem:[#allocation40_spill] sm:$0xff] %v8555_v49  ;;  %v8693_v8 = vunpack.i.h.bf16 %v8557_v60 }
 0x34f   : > { %11551 = vst [vmem:[#allocation25_spill] sm:$0xff] %v8557_v60  ;;  %v2267_v33 = vld [vmem:[#allocation2 + $0xf8] sm:$0xff] }
 0x350   : > { %v8560_v62 = vpack.i.bf16 %v2267_v33, %v8378_v40  ;;  %11574 = vst [vmem:[#allocation45_spill] sm:$0xff] %v8693_v8 }
 0x352   : > { %5560 = vrot.lane.b32.xlu0 %v8545_v9, %s6364_s21 }
 0x353   : > { %5575 = vrot.lane.b32.xlu2 %v8560_v62, %s6364_s21  ;;  %5570 = vrot.lane.b32.xlu1 %v8560_v62, %s6359_s17  ;;  %s4759_s17 = smul.u32 3, %s6511_s3 }
 0x354   : > { %v8568_v58 = vpop.permute.xlu2 %5395  ;;  %v8570_v1 = vpop.permute.xlu1 %5360 }
 0x355   : > { %11552 = vst [vmem:[#allocation31_spill] sm:$0xff] %v8570_v1  ;;  %v8572_v16 = vpop.permute.xlu0 %5375  ;;  %s360_s23 = scalar_lea.vmem [#allocation10], %s4759_s17 }
 0x356   : > { %11553 = vst [vmem:[#allocation22_spill] sm:$0xff] %v8572_v16  ;;  %s4485_s1 = sshll.u32 %s360_s23, 4  ;;  %s4486_s1 = int_to_ptr.vmem [resolvable:$true] %s4485_s1 }
 0x35a   : > { %5565 = vrot.lane.b32.xlu0 %v8560_v62, %s6358_s12  ;;  %s6366_s12 = smov 111  }
 0x35c   : > { %v8576_v40 = vpop.permute.xlu2 %5415  ;;  %v5366_v7 = vpop.permute.xlu1 %5365 }
 0x35d   : > { %v8578_v14 = vpop.permute.xlu0 %5380  ;;  %v5368_v42 = vunpack.i.h.bf16 %v5366_v7  ;;  %v5367_v45 = vunpack.i.l.bf16 %v5366_v7 }
 0x35e   : > { %v8773_v57 = vunpack.i.h.bf16 %v8578_v14 }
 0x35f   : > { %v8623_v2 = vsel %vm579_vm0, %v5367_v45, %v5368_v42 }
 0x360   : > { %11585 = vst [vmem:[#allocation56_spill] sm:$0xff] %v8773_v57 }
 0x364   : > { %v8580_v59 = vpop.permute.xlu2 %5435  ;;  %v5386_v32 = vpop.permute.xlu1 %5385 }
 0x365   : > { %11554 = vst [vmem:[#allocation39_spill] sm:$0xff] %v8580_v59  ;;  %v8582_v51 = vpop.permute.xlu0 %5400 }
 0x366   : > { %11555 = vst [vmem:[#allocation15_spill] sm:$0xff] %v8582_v51 }
 0x36c   : > { %v8584_v61 = vpop.permute.xlu2 %5440  ;;  %v8586_v27 = vpop.permute.xlu1 %5405 }
 0x36d   : > { %11556 = vst [vmem:[#allocation19_spill] sm:$0xff] %v8586_v27  ;;  %v8588_v22 = vpop.permute.xlu0 %5420  ;;  %v11182_v1 = vunpack.i.h.bf16 %v8586_v27 }
 0x36e   : > { %11557 = vst [vmem:[#allocation30_spill] sm:$0xff] %v8588_v22 }
 0x374   : > { %v5461_v5 = vpop.permute.xlu2 %5460  ;;  %v8590_v41 = vpop.permute.xlu1 %5410 }
 0x375   : > { %v8592_v0 = vunpack.i.h.bf16 %v5461_v5  ;;  %v5462_v19 = vunpack.i.l.bf16 %v5461_v5  ;;  %v8607_v26 = vpop.permute.xlu0 %5425  ;;  %v5388_v5 = vunpack.i.h.bf16 %v5386_v32 }
 0x376   : > { %11562 = vst [vmem:[#allocation28_spill] sm:$0xff] %v8607_v26 }
 0x377   : > { %11558 = vst [vmem:[#allocation32_spill] sm:$0xff] %v8592_v0  ;;  %v8598_v21 = vsel %vm668_vm1, %v5333_v47, %v5462_v19  ;;  %v8602_v3 = vsel %vm668_vm1, %v5462_v19, %v8592_v0  ;;  %v5387_v19 = vunpack.i.l.bf16 %v5386_v32 }
 0x378   : > { %11560 = vst [vmem:[#allocation46_spill] sm:$0xff] %v8598_v21  ;;  %v5584_v53 = vpack.i.bf16 %v8598_v21, %v5333_v47 }
 0x379   : > { %11561 = vst [vmem:[#allocation43_spill] sm:$0xff] %v8602_v3  ;;  %v8670_v37 = vsel %vm668_vm1, %v5387_v19, %v5388_v5 }
 0x37a   : > { %5585 = vrot.lane.b32.xlu1 %v5584_v53, %s6364_s21  ;;  %11571 = vst [vmem:[#allocation29_spill] sm:$0xff] %v8670_v37 }
 0x37c   : > { %v8614_v48 = vpop.permute.xlu1 %5430 }
 0x37d   : > { %v8612_v44 = vpop.permute.xlu2 %5485  ;;  %v8616_v31 = vpop.permute.xlu0 %5445 }
 0x37e   : > { %11563 = vst [vmem:[#allocation18_spill] sm:$0xff] %v8612_v44 }
 0x384   : > { %v8618_v34 = vpop.permute.xlu1 %5450 }
 0x385   : > { %v5491_v38 = vpop.permute.xlu2 %5490  ;;  %11564 = vst [vmem:[#allocation35_spill] sm:$0xff] %v8618_v34 }
 0x386   : > { %v8620_v39 = vunpack.i.h.bf16 %v5491_v38  ;;  %v5492_v43 = vunpack.i.l.bf16 %v5491_v38  ;;  %v8647_v38 = vunpack.i.h.bf16 %v8540_v15 }
 0x388   : > { %11565 = vst [vmem:[#allocation24_spill] sm:$0xff] %v8620_v39  ;;  %v8626_v46 = vsel %vm579_vm0, %v5368_v42, %v5492_v43  ;;  %v8630_v17 = vsel %vm579_vm0, %v5492_v43, %v8620_v39 }
 0x389   : > { %11566 = vst [vmem:[#allocation16_spill] sm:$0xff] %v8630_v17  ;;  %v5599_v28 = vpack.i.bf16 %v8626_v46, %v5368_v42  ;;  %v8635_v13 = vpack.i.bf16 %v8620_v39, %v8630_v17 }
 0x38b   : > { %5600 = vrot.lane.b32.xlu1 %v5599_v28, %s6364_s21 }
 0x38c   : > { %v8642_v47 = vpop.permute.xlu0 %5465 }
 0x38d   : > { %11567 = vst [vmem:[#allocation17_spill] sm:$0xff] %v8642_v47  ;;  %v5511_v12 = vpop.permute.xlu2 %5510  ;;  %v5456_v45 = vpop.permute.xlu1 %5455 }
 0x38e   : > { %v8644_v53 = vunpack.i.h.bf16 %v5511_v12  ;;  %v5512_v42 = vunpack.i.l.bf16 %v5511_v12  ;;  %v8649_v43 = vunpack.i.h.bf16 %v5456_v45  ;;  %v5457_v29 = vunpack.i.l.bf16 %v5456_v45 }
 0x390   : > { %11568 = vst [vmem:[#allocation21_spill] sm:$0xff] %v8649_v43  ;;  %v8652_v23 = vsel %vm668_vm1, %v5388_v5, %v5512_v42  ;;  %v8656_v28 = vsel %vm668_vm1, %v5512_v42, %v8644_v53  ;;  %v8660_v32 = vsel %vm579_vm0, %v8647_v38, %v5457_v29  ;;  %v8664_v12 = vsel %vm579_vm0, %v5457_v29, %v8649_v43 }
 0x391   : > { %11569 = vst [vmem:[#allocation33_spill] sm:$0xff] %v8652_v23  ;;  %v5614_v7 = vpack.i.bf16 %v8652_v23, %v5388_v5  ;;  %v5579_v42 = vpack.i.bf16 %v8660_v32, %v8647_v38  ;;  %v8676_v33 = vpack.i.bf16 %v8649_v43, %v8664_v12 }
 0x392   : > { %11570 = vst [vmem:[#allocation36_spill] sm:$0xff] %v8664_v12 }
 0x393   : > { %5615 = vrot.lane.b32.xlu1 %v5614_v7, %s6364_s21  ;;  %5580 = vrot.lane.b32.xlu0 %v5579_v42, %s6364_s21 }
 0x394   : > { %v8686_v5 = vpop.permute.xlu0 %5470 }
 0x395   : > { %11572 = vst [vmem:[#allocation34_spill] sm:$0xff] %v8686_v5  ;;  %v8688_v19 = vpop.permute.xlu2 %5530  ;;  %v5481_v7 = vpop.permute.xlu1 %5480 }
 0x396   : > { %11573 = vst [vmem:[#allocation27_spill] sm:$0xff] %v8688_v19  ;;  %v11181_v50 = vunpack.i.l.bf16 %v8688_v19  ;;  %v8695_v29 = vunpack.i.h.bf16 %v5481_v7  ;;  %v5482_v56 = vunpack.i.l.bf16 %v5481_v7 }
 0x398   : > { %11575 = vst [vmem:[#allocation38_spill] sm:$0xff] %v8695_v29  ;;  %v8702_v42 = vsel %vm2668_vm8, %v11182_v1, %v11181_v50  ;;  %v8706_v45 = vsel %vm668_vm1, %v8693_v8, %v5482_v56  ;;  %v8710_v5 = vsel %vm668_vm1, %v5482_v56, %v8695_v29  ;;  %v8722_v1 = vunpack.i.h.bf16 %v8523_v30 }
 0x399   : > { %11576 = vst [vmem:[#allocation47_spill] sm:$0xff] %v8702_v42  ;;  %v5594_v7 = vpack.i.bf16 %v8706_v45, %v8693_v8  ;;  %v5413_v56 = vunpack.i.h.bf16 %v8590_v41  ;;  %v5412_v42 = vunpack.i.l.bf16 %v8590_v41 }
 0x39a   : > { %11577 = vst [vmem:[#allocation48_spill] sm:$0xff] %v8706_v45 }
 0x39b   : > { %11578 = vst [vmem:[#allocation49_spill] sm:$0xff] %v8710_v5  ;;  %5595 = vrot.lane.b32.xlu0 %v5594_v7, %s6364_s21 }
 0x39c   : > { %v5476_v19 = vpop.permute.xlu0 %5475 }
 0x39d   : > { %v5536_v47 = vpop.permute.xlu2 %5535  ;;  %v8726_v12 = vunpack.i.h.bf16 %v5476_v19  ;;  %v5477_v17 = vunpack.i.l.bf16 %v5476_v19  ;;  %v8730_v37 = vpop.permute.xlu1 %5500  ;;  %v8748_v19 = vsel %vm579_vm0, %v5412_v42, %v5413_v56 }
 0x39e   : > { %v8728_v8 = vunpack.i.h.bf16 %v5536_v47  ;;  %v5537_v44 = vunpack.i.l.bf16 %v5536_v47  ;;  %11581 = vst [vmem:[#allocation52_spill] sm:$0xff] %v8730_v37 }
 0x39f   : > { %11579 = vst [vmem:[#allocation50_spill] sm:$0xff] %v8726_v12  ;;  %v8734_v7 = vsel %vm579_vm0, %v8722_v1, %v5477_v17  ;;  %v8738_v50 = vsel %vm579_vm0, %v5477_v17, %v8726_v12 }
 0x3a0   : > { %11580 = vst [vmem:[#allocation51_spill] sm:$0xff] %v8728_v8  ;;  %v8741_v41 = vsel %vm579_vm0, %v5413_v56, %v5537_v44  ;;  %v8745_v45 = vsel %vm579_vm0, %v5537_v44, %v8728_v8  ;;  %v5589_v47 = vpack.i.bf16 %v8734_v7, %v8722_v1  ;;  %v8761_v60 = vpack.i.bf16 %v8726_v12, %v8738_v50 }
 0x3a1   : > { %11582 = vst [vmem:[#allocation53_spill] sm:$0xff] %v8738_v50  ;;  %v5629_v37 = vpack.i.bf16 %v8741_v41, %v5413_v56  ;;  %v8755_v23 = vpack.i.bf16 %v8728_v8, %v8745_v45  ;;  %v8770_v56 = vunpack.i.h.bf16 %v8538_v18  ;;  %v8840_v18 = vunpack.i.h.bf16 %v8582_v51 }
 0x3a2   : > { %11583 = vst [vmem:[#allocation54_spill] sm:$0xff] %v8745_v45  ;;  %5590 = vrot.lane.b32.xlu2 %v5589_v47, %s6364_s21  ;;  %v5432_v45 = vunpack.i.l.bf16 %v8614_v48 }
 0x3a3   : > { %5630 = vrot.lane.b32.xlu1 %v5629_v37, %s6364_s21  ;;  %11584 = vst [vmem:[#allocation55_spill] sm:$0xff] %v8770_v56  ;;  %v5433_v37 = vunpack.i.h.bf16 %v8614_v48 }
 0x3a4   : > { %v5496_v17 = vpop.permute.xlu0 %5495  ;;  %11593 = vst [vmem:[#allocation64_spill] sm:$0xff] %v8840_v18 }
 0x3a5   : > { %v5556_v49 = vpop.permute.xlu2 %5555  ;;  %v8775_v16 = vunpack.i.h.bf16 %v5496_v17  ;;  %v5497_v6 = vunpack.i.l.bf16 %v5496_v17  ;;  %v5506_v47 = vpop.permute.xlu1 %5505  ;;  %v8813_v35 = vsel %vm668_vm1, %v5432_v45, %v5433_v37 }
 0x3a6   : > { %v8777_v27 = vunpack.i.h.bf16 %v5556_v49  ;;  %v5557_v44 = vunpack.i.l.bf16 %v5556_v49  ;;  %v8781_v42 = vunpack.i.h.bf16 %v5506_v47  ;;  %v5507_v50 = vunpack.i.l.bf16 %v5506_v47  ;;  %11591 = vst [vmem:[#allocation62_spill] sm:$0xff] %v8813_v35 }
 0x3a7   : > { %v8785_v22 = vsel %vm668_vm1, %v8770_v56, %v5497_v6  ;;  %v8789_v59 = vsel %vm668_vm1, %v5497_v6, %v8775_v16 }
 0x3a8   : > { %11586 = vst [vmem:[#allocation57_spill] sm:$0xff] %v8777_v27  ;;  %v8793_v17 = vsel %vm668_vm1, %v5557_v44, %v8777_v27  ;;  %v5604_v49 = vpack.i.bf16 %v8785_v22, %v8770_v56  ;;  %v8798_v48 = vsel %vm668_vm1, %v5433_v37, %v5557_v44  ;;  %v8802_v47 = vsel %vm579_vm0, %v8773_v57, %v5507_v50 }
 0x3a9   : > { %11587 = vst [vmem:[#allocation58_spill] sm:$0xff] %v8781_v42  ;;  %v8806_v34 = vsel %vm579_vm0, %v5507_v50, %v8781_v42  ;;  %v5609_v6 = vpack.i.bf16 %v8802_v47, %v8773_v57  ;;  %v5654_v50 = vpack.i.bf16 %v8798_v48, %v5433_v37 }
 0x3aa   : > { %11588 = vst [vmem:[#allocation59_spill] sm:$0xff] %v8785_v22  ;;  %5605 = vrot.lane.b32.xlu2 %v5604_v49, %s6364_s21  ;;  %v8820_v44 = vpack.i.bf16 %v8781_v42, %v8806_v34  ;;  %v8862_v49 = vunpack.i.h.bf16 %v8568_v58  ;;  %v5649_v22 = vpack.i.bf16 %v8592_v0, %v8602_v3 }
 0x3ab   : > { %11589 = vst [vmem:[#allocation60_spill] sm:$0xff] %v8798_v48  ;;  %5640 = vrot.lane.b32.xlu1 %v8676_v33, %s6364_s21  ;;  %5610 = vrot.lane.b32.xlu0 %v5609_v6, %s6364_s21  ;;  %v5689_v48 = vpack.i.bf16 %v8695_v29, %v8710_v5  ;;  %v8967_v29 = vunpack.i.h.bf16 %v8584_v61 }
 0x3ac   : > { %11590 = vst [vmem:[#allocation61_spill] sm:$0xff] %v8806_v34  ;;  %v8831_v56 = vpop.permute.xlu0 %5515 }
 0x3ad   : > { %11592 = vst [vmem:[#allocation63_spill] sm:$0xff] %v8831_v56  ;;  %v5526_v35 = vpop.permute.xlu1 %5525 }
 0x3ae   : > { %v8842_v57 = vunpack.i.h.bf16 %v5526_v35  ;;  %v5527_v45 = vunpack.i.l.bf16 %v5526_v35 }
 0x3b0   : > { %11594 = vst [vmem:[#allocation65_spill] sm:$0xff] %v8842_v57  ;;  %v8848_v56 = vsel %vm668_vm1, %v8840_v18, %v5527_v45  ;;  %v8852_v6 = vsel %vm668_vm1, %v5527_v45, %v8842_v57 }
 0x3b1   : > { %11595 = vst [vmem:[#allocation66_spill] sm:$0xff] %v8848_v56  ;;  %v5624_v21 = vpack.i.bf16 %v8848_v56, %v8840_v18  ;;  %v8895_v18 = vunpack.i.h.bf16 %v8607_v26  ;;  %v8939_v26 = vunpack.i.h.bf16 %v8616_v31 }
 0x3b2   : > { %11596 = vst [vmem:[#allocation67_spill] sm:$0xff] %v8852_v6 }
 0x3b3   : > { %5655 = vrot.lane.b32.xlu1 %v5654_v50, %s6364_s21  ;;  %5625 = vrot.lane.b32.xlu0 %v5624_v21, %s6364_s21  ;;  %11600 = vst [vmem:[#allocation71_spill] sm:$0xff] %v8895_v18 }
 0x3b4   : > { %v5521_v35 = vpop.permute.xlu0 %5520 }
 0x3b5   : > { %v8864_v43 = vunpack.i.h.bf16 %v5521_v35  ;;  %v5522_v45 = vunpack.i.l.bf16 %v5521_v35  ;;  %v8866_v39 = vpop.permute.xlu1 %5545 }
 0x3b6   : > { %11598 = vst [vmem:[#allocation69_spill] sm:$0xff] %v8866_v39  ;;  %v8890_v39 = vunpack.i.h.bf16 %v8576_v40 }
 0x3b7   : > { %11597 = vst [vmem:[#allocation68_spill] sm:$0xff] %v8864_v43  ;;  %v8870_v37 = vsel %vm579_vm0, %v8862_v49, %v5522_v45  ;;  %v8874_v42 = vsel %vm579_vm0, %v5522_v45, %v8864_v43 }
 0x3b8   : > { %11599 = vst [vmem:[#allocation70_spill] sm:$0xff] %v8874_v42  ;;  %v5619_v50 = vpack.i.bf16 %v8870_v37, %v8862_v49  ;;  %v8882_v34 = vpack.i.bf16 %v8864_v43, %v8874_v42 }
 0x3ba   : > { %5620 = vrot.lane.b32.xlu2 %v5619_v50, %s6364_s21 }
 0x3bb   : > { %5680 = vrot.lane.b32.xlu1 %v8478_v11, %s6365_s22 }
 0x3bc   : > { %v5541_v45 = vpop.permute.xlu0 %5540 }
 0x3bd   : > { %v8892_v21 = vunpack.i.h.bf16 %v5541_v45  ;;  %v5542_v8 = vunpack.i.l.bf16 %v5541_v45  ;;  %v5551_v56 = vpop.permute.xlu1 %5550 }
 0x3be   : > { %v8897_v43 = vunpack.i.h.bf16 %v5551_v56  ;;  %v5552_v51 = vunpack.i.l.bf16 %v5551_v56 }
 0x3bf   : > { %v8901_v50 = vsel %vm668_vm1, %v8890_v39, %v5542_v8  ;;  %v8905_v11 = vsel %vm668_vm1, %v5542_v8, %v8892_v21 }
 0x3c0   : > { %11601 = vst [vmem:[#allocation72_spill] sm:$0xff] %v8897_v43  ;;  %v5634_v45 = vpack.i.bf16 %v8901_v50, %v8890_v39  ;;  %v8913_v42 = vsel %vm579_vm0, %v8895_v18, %v5552_v51  ;;  %v8917_v56 = vsel %vm579_vm0, %v5552_v51, %v8897_v43 }
 0x3c1   : > { %11602 = vst [vmem:[#allocation73_spill] sm:$0xff] %v8901_v50  ;;  %v5644_v8 = vpack.i.bf16 %v8913_v42, %v8895_v18  ;;  %v8925_v35 = vpack.i.bf16 %v8897_v43, %v8917_v56  ;;  %v5417_v43 = vunpack.i.l.bf16 %v8576_v40 }
 0x3c2   : > { %5635 = vrot.lane.b32.xlu2 %v5634_v45, %s6364_s21 }
 0x3c3   : > { %5690 = vrot.lane.b32.xlu1 %v5689_v48, %s6364_s21  ;;  %5645 = vrot.lane.b32.xlu0 %v5644_v8, %s6364_s21 }
 0x3c4   : > { %v8936_v5 = vpop.permute.xlu0 %5560 }
 0x3c5   : > { %11603 = vst [vmem:[#allocation74_spill] sm:$0xff] %v8936_v5  ;;  %v5571_v18 = vpop.permute.xlu1 %5570 }
 0x3c6   : > { %v8941_v45 = vunpack.i.h.bf16 %v5571_v18  ;;  %v5572_v48 = vunpack.i.l.bf16 %v5571_v18 }
 0x3c8   : > { %11604 = vst [vmem:[#allocation75_spill] sm:$0xff] %v8941_v45  ;;  %v8947_v51 = vsel %vm668_vm1, %v8939_v26, %v5572_v48  ;;  %v8951_v8 = vsel %vm668_vm1, %v5572_v48, %v8941_v45 }
 0x3c9   : > { %11605 = vst [vmem:[#allocation76_spill] sm:$0xff] %v8947_v51 }
 0x3ca   : > { %5650 = vrot.lane.b32.xlu2 %v5649_v22, %s6364_s21  ;;  %v5694_v22 = vpack.i.bf16 %v8947_v51, %v8939_v26 }
 0x3cb   : > { %5705 = vrot.lane.b32.xlu1 %v8356_v54, %s6365_s22  ;;  %5660 = vrot.lane.b32.xlu0 %v8761_v60, %s6364_s21 }
 0x3cc   : > { %v5566_v48 = vpop.permute.xlu0 %5565 }
 0x3cd   : > { %v8969_v3 = vunpack.i.h.bf16 %v5566_v48  ;;  %v5567_v5 = vunpack.i.l.bf16 %v5566_v48  ;;  %v11617_v48 = vld [vmem:[#allocation46_spill] sm:$0xff] }
 0x3cf   : > { %11606 = vst [vmem:[#allocation77_spill] sm:$0xff] %v8969_v3  ;;  %v8973_v18 = vsel %vm579_vm0, %v8967_v29, %v5567_v5  ;;  %v8977_v54 = vsel %vm579_vm0, %v5567_v5, %v8969_v3  ;;  %v5739_v5 = vpack.i.bf16 %v8842_v57, %v8852_v6 }
 0x3d0   : > { %11607 = vst [vmem:[#allocation78_spill] sm:$0xff] %v8973_v18  ;;  %v5664_v0 = vpack.i.bf16 %v8973_v18, %v8967_v29  ;;  %v8985_v12 = vpack.i.bf16 %v8969_v3, %v8977_v54  ;;  %v5397_v3 = vunpack.i.l.bf16 %v8568_v58  ;;  %v2467_v58 = vsel %vm668_vm1, %v5417_v43, %v8890_v39 }
 0x3d1   : > { %11608 = vst [vmem:[#allocation79_spill] sm:$0xff] %v8977_v54 }
 0x3d2   : > { %5665 = vrot.lane.b32.xlu2 %v5664_v0, %s6364_s21  ;;  %v5719_v0 = vpack.i.bf16 %v8775_v16, %v8789_v59 }
 0x3d3   : > { %5725 = vrot.lane.b32.xlu1 %v8820_v44, %s6364_s21  ;;  %5675 = vrot.lane.b32.xlu0 %v8310_v10, %s6365_s22  ;;  %v5774_v10 = vpack.i.bf16 %v8941_v45, %v8951_v8 }
 0x3da   : > { %5670 = vrot.lane.b32.xlu2 %v8462_v20, %s6365_s22  ;;  %v9024_v20 = vpop.permute.xlu2 %5575 }
 0x3db   : > { %5740 = vrot.lane.b32.xlu1 %v5739_v5, %s6364_s21  ;;  %5695 = vrot.lane.b32.xlu0 %v5694_v22, %s6364_s21  ;;  %11609 = vst [vmem:[#allocation80_spill] sm:$0xff] %v9024_v20  ;;  %v11612_v5 = vpack.i.bf16 %v8777_v27, %v8793_v17 }
 0x3e2   : > { %5685 = vrot.lane.b32.xlu2 %v8332_v63, %s6365_s22  ;;  %v5749_v63 = vpack.i.bf16 %v8892_v21, %v8905_v11 }
 0x3e3   : > { %5755 = vrot.lane.b32.xlu1 %v8925_v35, %s6364_s21  ;;  %5700 = vrot.lane.b32.xlu0 %v8495_v4, %s6365_s22 }
 0x3ea   : > { %5710 = vrot.lane.b32.xlu2 %v8512_v52, %s6365_s22  ;;  %v11610_v52 = vpack.i.bf16 %v8644_v53, %v8656_v28 }
 0x3eb   : > { %5775 = vrot.lane.b32.xlu1 %v5774_v10, %s6364_s21  ;;  %5720 = vrot.lane.b32.xlu0 %v5719_v0, %s6364_s21 }
 0x3ec   : > { %v9026_v4 = vpop.permute.xlu1 %5585 }
 0x3f2   : > { %5715 = vrot.lane.b32.xlu2 %v8635_v13, %s6364_s21 }
 0x3f3   : > { %5780 = vrot.lane.b32.xlu1 %v8529_v36, %s6365_s22  ;;  %5735 = vrot.lane.b32.xlu0 %v8882_v34, %s6364_s21 }
 0x3fa   : > { %5730 = vrot.lane.b32.xlu2 %v11610_v52, %s6364_s21 }
 0x3fb   : > { %5795 = vrot.lane.b32.xlu1 %v8418_v24, %s6365_s22  ;;  %5750 = vrot.lane.b32.xlu0 %v5749_v63, %s6364_s21  ;;  %v11613_v24 = vpack.i.bf16 %v8626_v46, %v8623_v2  ;;  %v5327_v2 = vunpack.i.l.bf16 %v8540_v15 }
 0x3fc   : > { %v9035_v36 = vpop.permute.xlu2 %5590 }
 0x3fd   : > { %11611 = vst [vmem:[#allocation81_spill] sm:$0xff] %v9035_v36  ;;  %v9039_v22 = vpop.permute.xlu1 %5600  ;;  %v2364_v52 = vsel %vm579_vm0, %v5327_v2, %v8647_v38 }
 0x402   : > { %5745 = vrot.lane.b32.xlu2 %v8755_v23, %s6364_s21 }
 0x403   : > { %5810 = vrot.lane.b32.xlu1 %v8676_v33, %s6365_s22  ;;  %5765 = vrot.lane.b32.xlu0 %v8985_v12, %s6364_s21 }
 0x404   : > { %v9055_v10 = vpop.permute.xlu2 %5605 }
 0x405   : > { %v9057_v0 = vpop.permute.xlu1 %5615  ;;  %v9059_v33 = vpop.permute.xlu0 %5580 }
 0x406   : > { %v11243_v38 = vunpack.i.h.bf16 %v9059_v33 }
 0x40a   : > { %5760 = vrot.lane.b32.xlu2 %v11612_v5, %s6364_s21  ;;  %v5804_v5 = vpack.i.bf16 %v8660_v32, %v2364_v52 }
 0x40b   : > { %5825 = vrot.lane.b32.xlu1 %v11613_v24, %s6365_s22  ;;  %5770 = vrot.lane.b32.xlu0 %v8387_v55, %s6365_s22 }
 0x40d   : > { %v9082_v15 = vpop.permute.xlu0 %5595 }
 0x412   : > { %5785 = vrot.lane.b32.xlu2 %v8405_v25, %s6365_s22  ;;  %v11614_v25 = vpack.i.bf16 %v8741_v41, %v8748_v19 }
 0x413   : > { %5840 = vrot.lane.b32.xlu1 %v8820_v44, %s6365_s22  ;;  %5790 = vrot.lane.b32.xlu0 %v8545_v9, %s6365_s22  ;;  %v5347_v9 = vunpack.i.l.bf16 %v8523_v30 }
 0x414   : > { %v9068_v63 = vpop.permute.xlu2 %5620 }
 0x415   : > { %v9070_v55 = vpop.permute.xlu1 %5630 }
 0x41a   : > { %5800 = vrot.lane.b32.xlu2 %v8560_v62, %s6365_s22  ;;  %v2367_v62 = vsel %vm579_vm0, %v5347_v9, %v8722_v1  ;;  %v5382_v1 = vunpack.i.l.bf16 %v8578_v14  ;;  %v11247_v9 = vunpack.i.h.bf16 %v9026_v4 }
 0x41b   : > { %5855 = vrot.lane.b32.xlu1 %v11614_v25, %s6365_s22  ;;  %5805 = vrot.lane.b32.xlu0 %v5804_v5, %s6365_s22  ;;  %v5814_v19 = vpack.i.bf16 %v8734_v7, %v2367_v62 }
 0x41c   : > { %v9085_v44 = vpop.permute.xlu2 %5635 }
 0x41d   : > { %v9087_v24 = vpop.permute.xlu1 %5640  ;;  %v9104_v52 = vpop.permute.xlu0 %5610 }
 0x41e   : > { %v11242_v2 = vunpack.i.l.bf16 %v9087_v24  ;;  %v11256_v20 = vunpack.i.h.bf16 %v9104_v52 }
 0x420   : > { %v9098_v30 = vsel %vm2668_vm8, %v11243_v38, %v11242_v2  ;;  %v11618_v2 = vld [vmem:[#allocation23_spill] sm:$0xff] }
 0x421   : > { %11615 = vst [vmem:[#allocation82_spill] sm:$0xff] %v9098_v30  ;;  %v11619_v38 = vpack.i.bf16 %v11617_v48, %v11618_v2  ;;  %v2376_v2 = vsel %vm579_vm0, %v5397_v3, %v8862_v49  ;;  %v11622_v48 = vld [vmem:[#allocation28_spill] sm:$0xff] }
 0x422   : > { %5815 = vrot.lane.b32.xlu2 %v5814_v19, %s6365_s22  ;;  %v11616_v19 = vld [vmem:[#allocation56_spill] sm:$0xff]  ;;  %v5427_v3 = vunpack.i.l.bf16 %v11622_v48 }
 0x423   : > { %5870 = vrot.lane.b32.xlu1 %v8925_v35, %s6365_s22  ;;  %5820 = vrot.lane.b32.xlu0 %v8761_v60, %s6365_s22  ;;  %v2373_v60 = vsel %vm579_vm0, %v5382_v1, %v11616_v19 }
 0x424   : > { %v9109_v5 = vpop.permute.xlu2 %5650  ;;  %v5834_v14 = vpack.i.bf16 %v8802_v47, %v2373_v60  ;;  %v5894_v60 = vpack.i.bf16 %v8901_v50, %v2467_v58 }
 0x425   : > { %v9111_v25 = vpop.permute.xlu1 %5655  ;;  %v11246_v62 = vunpack.i.l.bf16 %v9109_v5 }
 0x427   : > { %v9120_v35 = vsel %vm2668_vm8, %v11247_v9, %v11246_v62 }
 0x42a   : > { %5830 = vrot.lane.b32.xlu2 %v8635_v13, %s6365_s22  ;;  %v9140_v13 = vpop.permute.xlu0 %5625 }
 0x42b   : > { %5880 = vrot.lane.b32.xlu1 %v11619_v38, %s6365_s22  ;;  %5835 = vrot.lane.b32.xlu0 %v5834_v14, %s6365_s22  ;;  %v5844_v38 = vpack.i.bf16 %v8870_v37, %v2376_v2  ;;  %v11621_v14 = vld [vmem:[#allocation44_spill] sm:$0xff]  ;;  %v5632_v2 = vunpack.i.l.bf16 %v9070_v55 }
 0x42c   : > { %v9134_v62 = vpop.permute.xlu2 %5665  ;;  %v5372_v54 = vunpack.i.l.bf16 %v11621_v14  ;;  %v11254_v14 = vunpack.i.h.bf16 %v9068_v63 }
 0x42d   : > { %v9136_v9 = vpop.permute.xlu1 %5680  ;;  %v11249_v1 = vunpack.i.h.bf16 %v9134_v62  ;;  %v5667_v19 = vunpack.i.l.bf16 %v9134_v62 }
 0x42e   : > { %11620 = vst [vmem:[#allocation56_spill] sm:$0xff] %v9136_v9 }
 0x42f   : > { %v2714_v40 = vsel %vm2668_vm8, %v5667_v19, %v11249_v1  ;;  %v5622_v1 = vunpack.i.l.bf16 %v9068_v63 }
 0x430   : > { %2837 = vmatpush.msra.mxu0 %v2714_v40 }
 0x432   : > { %5845 = vrot.lane.b32.xlu2 %v5844_v38, %s6365_s22  ;;  %v11624_v38 = vld [vmem:[#allocation55_spill] sm:$0xff] }
 0x433   : > { %5895 = vrot.lane.b32.xlu1 %v5894_v60, %s6365_s22  ;;  %5850 = vrot.lane.b32.xlu0 %v8882_v34, %s6365_s22  ;;  %v2458_v48 = vsel %vm668_vm1, %v5372_v54, %v11624_v38  ;;  %v11625_v60 = vld [vmem:[#allocation71_spill] sm:$0xff]  ;;  %v5612_v54 = vunpack.i.l.bf16 %v9104_v52 }
 0x434   : > { %v9157_v39 = vpop.permute.xlu2 %5670  ;;  %v2382_v34 = vsel %vm579_vm0, %v5427_v3, %v11625_v60  ;;  %v11627_v3 = vunpack.i.h.bf16 %v9070_v55 }
 0x435   : > { %11623 = vst [vmem:[#allocation23_spill] sm:$0xff] %v9157_v39  ;;  %v9159_v43 = vpop.permute.xlu1 %5690  ;;  %v9161_v49 = vpop.permute.xlu0 %5645  ;;  %v11626_v39 = vld [vmem:[#allocation59_spill] sm:$0xff]  ;;  %v5864_v50 = vpack.i.bf16 %v8913_v42, %v2382_v34 }
 0x436   : > { %v11253_v58 = vunpack.i.h.bf16 %v9161_v49  ;;  %v5647_v40 = vunpack.i.l.bf16 %v9161_v49  ;;  %v5914_v30 = vpack.i.bf16 %v11626_v39, %v2458_v48  ;;  %v2708_v38 = vsel %vm2668_vm8, %v5632_v2, %v11627_v3 }
 0x437   : > { %v5602_v48 = vunpack.i.l.bf16 %v9039_v22  ;;  %v5592_v2 = vunpack.i.l.bf16 %v9035_v36 }
 0x438   : > { %v2711_v19 = vsel %vm2668_vm8, %v5647_v40, %v11253_v58  ;;  %v5442_v40 = vunpack.i.l.bf16 %v8584_v61 }
 0x439   : > { %2838 = vmatpush.msra.mxu0 %v2711_v19  ;;  %v11255_v19 = vunpack.i.h.bf16 %v9039_v22 }
 0x43a   : > { %5860 = vrot.lane.b32.xlu2 %v8755_v23, %s6365_s22  ;;  %v2705_v23 = vsel %vm2668_vm8, %v5622_v1, %v11254_v14  ;;  %v2385_v3 = vsel %vm579_vm0, %v5442_v40, %v8967_v29  ;;  %v11631_v29 = vpack.i.bf16 %v8852_v6, %v8905_v11 }
 0x43b   : > { %5915 = vrot.lane.b32.xlu1 %v5914_v30, %s6365_s22  ;;  %2839 = vmatpush.msra.mxu0 %v2708_v38  ;;  %v5582_v38 = vunpack.i.l.bf16 %v9059_v33  ;;  %v5874_v58 = vpack.i.bf16 %v8973_v18, %v2385_v3  ;;  %v2699_v1 = vsel %vm2668_vm8, %v5602_v48, %v11255_v19  ;;  %v11633_v48 = vld [vmem:[#allocation60_spill] sm:$0xff]  ;;  %v11634_v3 = vld [vmem:[#allocation62_spill] sm:$0xff]  ;;  %v11636_v19 = vld [vmem:[#allocation39_spill] sm:$0xff] }
 0x43c   : > { %5865 = vrot.lane.b32.xlu0 %v5864_v50, %s6365_s22  ;;  %v9190_v60 = vpop.permute.xlu2 %5685  ;;  %v2702_v50 = vsel %vm2668_vm8, %v5612_v54, %v11256_v20  ;;  %v11632_v54 = vunpack.i.h.bf16 %v9035_v36  ;;  %v11644_v6 = vunpack.i.h.bf16 %v11636_v19 }
 0x43d   : > { %11628 = vst [vmem:[#allocation44_spill] sm:$0xff] %v9190_v60  ;;  %v9192_v34 = vpop.permute.xlu1 %5705  ;;  %v9197_v30 = vpop.permute.xlu0 %5660  ;;  %2840 = vmatpush.msra.mxu0 %v2705_v23  ;;  %v11630_v23 = vld [vmem:[#allocation35_spill] sm:$0xff] }
 0x43e   : > { %11629 = vst [vmem:[#allocation28_spill] sm:$0xff] %v9192_v34  ;;  %v5452_v61 = vunpack.i.l.bf16 %v11630_v23  ;;  %v2696_v40 = vsel %vm2668_vm8, %v5592_v2, %v11632_v54  ;;  %v11639_v54 = vld [vmem:[#allocation30_spill] sm:$0xff] }
 0x43f   : > { %2841 = vmatpush.msra.mxu0 %v2702_v50  ;;  %v5447_v50 = vunpack.i.l.bf16 %v8616_v31  ;;  %v11643_v31 = vld [vmem:[#allocation19_spill] sm:$0xff] }
 0x440   : > { %v5407_v36 = vunpack.i.l.bf16 %v11643_v31 }
 0x441   : > { %2842 = vmatpush.msra.mxu0 %v2699_v1  ;;  %v11635_v1 = vpack.i.bf16 %v11633_v48, %v11634_v3 }
 0x442   : > { %5875 = vrot.lane.b32.xlu2 %v5874_v58, %s6365_s22  ;;  %v5437_v58 = vunpack.i.l.bf16 %v11636_v19 }
 0x443   : > { %5930 = vrot.lane.b32.xlu1 %v11631_v29, %s6365_s22  ;;  %2843 = vmatpush.msra.mxu0 %v2696_v40  ;;  %v11638_v29 = vunpack.i.h.bf16 %v9059_v33  ;;  %v11262_v40 = vunpack.i.h.bf16 %v9192_v34  ;;  %v11641_v33 = vunpack.i.h.bf16 %v11630_v23  ;;  %v11657_v34 = vld [vmem:[#allocation64_spill] sm:$0xff] }
 0x444   : > { %5890 = vrot.lane.b32.xlu0 %v11635_v1, %s6365_s22  ;;  %v9228_v14 = vpop.permute.xlu2 %5710  ;;  %v5422_v1 = vunpack.i.l.bf16 %v11639_v54  ;;  %v2687_v23 = vsel %vm2668_vm8, %v5437_v58, %v11644_v6  ;;  %v11650_v6 = vunpack.i.h.bf16 %v11639_v54 }
 0x445   : > { %11637 = vst [vmem:[#allocation55_spill] sm:$0xff] %v9228_v14  ;;  %v9230_v39 = vpop.permute.xlu1 %5725  ;;  %v2693_v2 = vsel %vm2668_vm8, %v5582_v38, %v11638_v29  ;;  %v11261_v18 = vunpack.i.l.bf16 %v9228_v14  ;;  %v9238_v3 = vpop.permute.xlu0 %5675  ;;  %v2690_v38 = vsel %vm2668_vm8, %v5452_v61, %v11641_v33  ;;  %v2473_v29 = vsel %vm668_vm1, %v5447_v50, %v8939_v26  ;;  %v11648_v33 = vld [vmem:[#allocation26_spill] sm:$0xff] }
 0x446   : > { %11640 = vst [vmem:[#allocation71_spill] sm:$0xff] %v9238_v3  ;;  %2844 = vmatpush.msra.mxu0 %v2693_v2  ;;  %v5884_v20 = vpack.i.bf16 %v8947_v51, %v2473_v29  ;;  %v11645_v61 = vunpack.i.l.bf16 %v9136_v9  ;;  %v11646_v26 = vunpack.i.h.bf16 %v9238_v3  ;;  %v11649_v29 = vpack.i.bf16 %v8777_v27, %v8941_v45  ;;  %v11659_v45 = vld [vmem:[#allocation66_spill] sm:$0xff] }
 0x447   : > { %v9253_v2 = vsel %vm3275_vm9, %v11262_v40, %v11261_v18  ;;  %v5392_v18 = vunpack.i.l.bf16 %v11648_v33  ;;  %v2684_v58 = vsel %vm2668_vm8, %v5422_v1, %v11650_v6  ;;  %v11651_v40 = vld [vmem:[#allocation22_spill] sm:$0xff] }
 0x448   : > { %2845 = vmatpush.msra.mxu0 %v2690_v38  ;;  %11642 = vst [vmem:[#allocation60_spill] sm:$0xff] %v9253_v2  ;;  %v9265_v50 = vsel %vm3275_vm9, %v11646_v26, %v11645_v61  ;;  %v5377_v61 = vunpack.i.l.bf16 %v11651_v40  ;;  %v11652_v26 = vld [vmem:[#allocation15_spill] sm:$0xff]  ;;  %v5657_v2 = vunpack.i.l.bf16 %v9111_v25 }
 0x449   : > { %11647 = vst [vmem:[#allocation62_spill] sm:$0xff] %v9265_v50  ;;  %v5402_v38 = vunpack.i.l.bf16 %v11652_v26  ;;  %v11654_v50 = vld [vmem:[#allocation40_spill] sm:$0xff] }
 0x44a   : > { %2846 = vmatpush.msra.mxu0 %v2687_v23  ;;  %5885 = vrot.lane.b32.xlu2 %v5884_v20, %s6365_s22  ;;  %v5357_v6 = vunpack.i.l.bf16 %v11654_v50 }
 0x44b   : > { %5945 = vrot.lane.b32.xlu1 %v11649_v29, %s6365_s22  ;;  %v11653_v29 = vunpack.i.h.bf16 %v11643_v31  ;;  %v2464_v27 = vsel %vm668_vm1, %v5402_v38, %v11657_v34  ;;  %v5627_v38 = vunpack.i.l.bf16 %v9140_v13 }
 0x44c   : > { %2847 = vmatpush.msra.mxu0 %v2684_v58  ;;  %5905 = vrot.lane.b32.xlu0 %v8985_v12, %s6365_s22  ;;  %v9282_v20 = vpop.permute.xlu2 %5715  ;;  %v11655_v58 = vunpack.i.h.bf16 %v11648_v33  ;;  %v5637_v12 = vunpack.i.l.bf16 %v9085_v44  ;;  %v5899_v3 = vpack.i.bf16 %v11659_v45, %v2464_v27  ;;  %v11661_v33 = vld [vmem:[#allocation25_spill] sm:$0xff]  ;;  %v11663_v27 = vunpack.i.h.bf16 %v11654_v50 }
 0x44d   : > { %v9284_v23 = vpop.permute.xlu1 %5740  ;;  %v2681_v14 = vsel %vm2668_vm8, %v5407_v36, %v11653_v29  ;;  %v9291_v9 = vpop.permute.xlu0 %5695  ;;  %v11656_v36 = vld [vmem:[#allocation20_spill] sm:$0xff]  ;;  %v5352_v54 = vunpack.i.l.bf16 %v11661_v33  ;;  %v11664_v33 = vunpack.i.h.bf16 %v9111_v25 }
 0x44e   : > { %2848 = vmatpush.msra.mxu0 %v2681_v14  ;;  %v2678_v26 = vsel %vm2668_vm8, %v5392_v18, %v11655_v58  ;;  %v5697_v31 = vunpack.i.l.bf16 %v9291_v9  ;;  %v5337_v1 = vunpack.i.l.bf16 %v11656_v36  ;;  %v11658_v14 = vunpack.i.h.bf16 %v11651_v40 }
 0x44f   : > { %v11276_v58 = vunpack.i.h.bf16 %v9085_v44  ;;  %v11660_v51 = vunpack.i.h.bf16 %v9291_v9 }
 0x450   : > { %2849 = vmatpush.msra.mxu0 %v2678_v26  ;;  %v2675_v18 = vsel %vm2668_vm8, %v5377_v61, %v11658_v14  ;;  %v11662_v61 = vpack.i.bf16 %v8917_v56, %v8913_v42  ;;  %v2735_v26 = vsel %vm2668_vm8, %v5657_v2, %v11664_v33  ;;  %v11665_v42 = vld [vmem:[#allocation33_spill] sm:$0xff] }
 0x451   : > { %v2738_v29 = vsel %vm2668_vm8, %v5697_v31, %v11660_v51  ;;  %v2672_v51 = vsel %vm2668_vm8, %v5357_v6, %v11663_v27  ;;  %v9327_v31 = vld [vmem:[#allocation9 + $0x80] sm:$0xff]  ;;  %v11666_v56 = vld [vmem:[#allocation29_spill] sm:$0xff]  ;;  %v2732_v27 = vsel %vm2668_vm8, %v5637_v12, %v11276_v58  ;;  %v11672_v12 = vld [vmem:[#allocation48_spill] sm:$0xff] }
 0x452   : > { %2850 = vmatpush.msra.mxu0 %v2675_v18  ;;  %2886 = vmatpush.msra.mxu2 %v2738_v29  ;;  %v5617_v29 = vunpack.i.l.bf16 %v9057_v0  ;;  %v11667_v18 = vpack.i.bf16 %v11665_v42, %v11666_v56  ;;  %v5607_v56 = vunpack.i.l.bf16 %v9055_v10 }
 0x453   : > { %5900 = vrot.lane.b32.xlu2 %v5899_v3, %s6365_s22  ;;  %5955 = vrot.lane.b32.xlu1 %v11662_v61, %s6366_s12  ;;  %v11668_v61 = vunpack.i.h.bf16 %v11656_v36 }
 0x454   : > { %2851 = vmatpush.msra.mxu0 %v2672_v51  ;;  %2887 = vmatpush.msra.mxu2 %v2735_v26  ;;  %v9331_v14 = vpop.permute.xlu2 %5730  ;;  %v11669_v51 = vld [vmem:[#allocation45_spill] sm:$0xff] }
 0x455   : > { %5910 = vrot.lane.b32.xlu0 %v11667_v18, %s6365_s22  ;;  %v9337_v6 = vpop.permute.xlu1 %5755  ;;  %v2669_v2 = vsel %vm2668_vm8, %v5337_v1, %v11668_v61  ;;  %v2455_v33 = vsel %vm668_vm1, %v5352_v54, %v11669_v51  ;;  %v9348_v3 = vpop.permute.xlu0 %5700  ;;  %v11278_v18 = vunpack.i.h.bf16 %v9190_v60  ;;  %v11671_v1 = vunpack.i.h.bf16 %v9140_v13  ;;  %v9450_v60 = vld [vmem:[#allocation9 + $0xa8] sm:$0xff] }
 0x456   : > { %11670 = vst [vmem:[#allocation39_spill] sm:$0xff] %v9348_v3  ;;  %2852 = vmatpush.msra.mxu0 %v2669_v2  ;;  %2888 = vmatpush.msra.mxu2 %v2732_v27  ;;  %v11277_v34 = vunpack.i.l.bf16 %v9348_v3  ;;  %v5919_v54 = vpack.i.bf16 %v11672_v12, %v2455_v33  ;;  %v5597_v2 = vunpack.i.l.bf16 %v9082_v15  ;;  %v11673_v27 = vunpack.i.h.bf16 %v9057_v0  ;;  %v11675_v33 = vld [vmem:[#allocation70_spill] sm:$0xff] }
 0x457   : > { %v2729_v61 = vsel %vm2668_vm8, %v5627_v38, %v11671_v1  ;;  %2853 = vmatmul.f32.vlgmr.msra.gmra.mxu0 %v9327_v31  ;;  %v5587_v38 = vunpack.i.l.bf16 %v9026_v4  ;;  %v11676_v1 = vpack.i.bf16 %v11675_v33, %v8870_v37 }
 0x458   : > { %2889 = vmatpush.msra.mxu2 %v2729_v61  ;;  %v2726_v58 = vsel %vm2668_vm8, %v5617_v29, %v11673_v27  ;;  %v9368_v26 = vsel %vm3275_vm9, %v11278_v18, %v11277_v34  ;;  %v11677_v61 = vunpack.i.h.bf16 %v9055_v10  ;;  %v9379_v27 = vld [vmem:[#allocation9 + $0x90] sm:$0xff]  ;;  %v11679_v34 = vunpack.i.h.bf16 %v9082_v15 }
 0x459   : > { %11674 = vst [vmem:[#allocation19_spill] sm:$0xff] %v9368_v26 }
 0x45a   : > { %2890 = vmatpush.msra.mxu2 %v2726_v58  ;;  %v2723_v29 = vsel %vm2668_vm8, %v5607_v56, %v11677_v61  ;;  %v11678_v58 = vpack.i.bf16 %v8793_v17, %v8951_v8  ;;  %v2720_v37 = vsel %vm2668_vm8, %v5597_v2, %v11679_v34  ;;  %v9392_v56 = vld [vmem:[#allocation9 + $0x88] sm:$0xff]  ;;  %v11680_v61 = vunpack.i.h.bf16 %v9026_v4 }
 0x45b   : > { %5920 = vrot.lane.b32.xlu2 %v5919_v54, %s6365_s22  ;;  %5970 = vrot.lane.b32.xlu1 %v11676_v1, %s6366_s12  ;;  %v11682_v4 = vpack.i.bf16 %v8789_v59, %v8656_v28  ;;  %v11683_v2 = vld [vmem:[#allocation16_spill] sm:$0xff] }
 0x45c   : > { %2891 = vmatpush.msra.mxu2 %v2723_v29  ;;  %v9381_v51 = vpop.permute.xlu2 %5745  ;;  %v2717_v29 = vsel %vm2668_vm8, %v5587_v38, %v11680_v61  ;;  %v11684_v38 = vpack.i.bf16 %v11683_v2, %v8626_v46  ;;  %v11689_v46 = vunpack.i.h.bf16 %v9111_v25  ;;  %v9439_v25 = vld [vmem:[#allocation9 + $0xb0] sm:$0xff] }
 0x45d   : > { %5925 = vrot.lane.b32.xlu0 %v11678_v58, %s6365_s22  ;;  %v5776_v54 = vpop.permute.xlu1 %5775  ;;  %v9390_v18 = vpop.permute.xlu0 %5720  ;;  %v11681_v58 = vunpack.i.h.bf16 %v9291_v9  ;;  %v9412_v9 = vld [vmem:[#allocation9 + $0xa0] sm:$0xff]  ;;  %11692 = vst [vmem:[#allocation15_spill] sm:$0xff] %v9439_v25 }
 0x45e   : > { %v5778_v33 = vunpack.i.h.bf16 %v5776_v54  ;;  %v5777_v1 = vunpack.i.l.bf16 %v5776_v54  ;;  %2892 = vmatpush.msra.mxu2 %v2720_v37  ;;  %11685 = vst [vmem:[#allocation22_spill] sm:$0xff] %v9412_v9  ;;  %v11686_v37 = vld [vmem:[#allocation43_spill] sm:$0xff] }
 0x45f   : > { %2856 = vmatmul.f32.gmra.mxu0 %v9379_v27 }
 0x460   : > { %2893 = vmatpush.msra.mxu2 %v2717_v29  ;;  %v2739_v3 = vsel %vm2668_vm8, %v11681_v58, %v5777_v1  ;;  %v2740_v34 = vsel %vm2668_vm8, %v5777_v1, %v5778_v33  ;;  %v11687_v33 = vld [vmem:[#allocation49_spill] sm:$0xff] }
 0x461   : > { %4658 = vmatmul.msk.f32.vlgmr.msra.gmra.mxu2 %vm974_vm3, %v9392_v56  ;;  %2968 = vmatpush.msrb.mxu3 %v2739_v3  ;;  %v11688_v1 = vpack.i.bf16 %v11686_v37, %v11687_v33 }
 0x462   : > { %3050 = vmatpush.msrb.mxu2 %v2740_v34  ;;  %v9422_v34 = vld [vmem:[#allocation9 + $0x98] sm:$0xff] }
 0x463   : > { %5935 = vrot.lane.b32.xlu2 %v11682_v4, %s6365_s22  ;;  %5985 = vrot.lane.b32.xlu1 %v11684_v38, %s6366_s12  ;;  %v11690_v38 = vpack.i.bf16 %v8842_v57, %v8892_v21  ;;  %v6169_v57 = vld [vmem:[#allocation2 + $0xe8] sm:$0xff] }
 0x464   : > { %v5761_v54 = vpop.permute.xlu2 %5760 }
 0x465   : > { %5940 = vrot.lane.b32.xlu0 %v11688_v1, %s6365_s22  ;;  %v9418_v3 = vpop.permute.xlu1 %5780  ;;  %v5763_v61 = vunpack.i.h.bf16 %v5761_v54  ;;  %v5762_v29 = vunpack.i.l.bf16 %v5761_v54  ;;  %v9420_v58 = vpop.permute.xlu0 %5735  ;;  %v11691_v54 = vpack.i.bf16 %v8793_v17, %v11633_v48  ;;  %v5743_v17 = vunpack.i.h.bf16 %v9284_v23 }
 0x466   : > { %v5732_v48 = vunpack.i.l.bf16 %v9331_v14 }
 0x467   : > { %2859 = vmatmul.f32.gmra.mxu0 %v9412_v9  ;;  %v2736_v4 = vsel %vm2668_vm8, %v11689_v46, %v5762_v29  ;;  %v2737_v2 = vsel %vm2668_vm8, %v5762_v29, %v5763_v61  ;;  %v11693_v61 = vld [vmem:[#allocation54_spill] sm:$0xff] }
 0x468   : > { %2969 = vmatpush.msrb.mxu3 %v2736_v4  ;;  %3051 = vmatpush.msrb.mxu2 %v2737_v2  ;;  %v11694_v29 = vpack.i.bf16 %v11693_v61, %v8741_v41  ;;  %v5742_v2 = vunpack.i.l.bf16 %v9284_v23  ;;  %v11696_v23 = vpack.i.bf16 %v8775_v16, %v8644_v53 }
 0x469   : > { %4659 = vmatmul.msk.f32.gmra.mxu2 %vm974_vm3, %v9422_v34 }
 0x46b   : > { %5950 = vrot.lane.b32.xlu2 %v11690_v38, %s6365_s22  ;;  %5995 = vrot.lane.b32.xlu1 %v11691_v54, %s6366_s12  ;;  %v11695_v54 = vunpack.i.h.bf16 %v9085_v44  ;;  %v11697_v44 = vunpack.i.h.bf16 %v9140_v13 }
 0x46c   : > { %v9441_v1 = vpop.permute.xlu2 %5785 }
 0x46d   : > { %5965 = vrot.lane.b32.xlu0 %v11694_v29, %s6366_s12  ;;  %v9447_v46 = vpop.permute.xlu1 %5795  ;;  %v5751_v4 = vpop.permute.xlu0 %5750  ;;  %v5733_v29 = vunpack.i.h.bf16 %v9331_v14  ;;  %v5723_v14 = vunpack.i.h.bf16 %v9390_v18 }
 0x46e   : > { %v5753_v38 = vunpack.i.h.bf16 %v5751_v4  ;;  %v5752_v26 = vunpack.i.l.bf16 %v5751_v4  ;;  %v6168_v4 = vld [vmem:[#allocation2 + $0xf0] sm:$0xff] }
 0x46f   : > { %2862 = vmatmul.f32.gmra.mxu0 %v9439_v25  ;;  %v6009_v9 = vpack.i.bf16 %v6168_v4, %v6169_v57  ;;  %v5722_v25 = vunpack.i.l.bf16 %v9390_v18  ;;  %v9473_v57 = vld [vmem:[#allocation9 + $0xc0] sm:$0xff]  ;;  %v11700_v4 = vunpack.i.h.bf16 %v9057_v0 }
 0x470   : > { %v2733_v41 = vsel %vm2668_vm8, %v11695_v54, %v5752_v26  ;;  %v2734_v61 = vsel %vm2668_vm8, %v5752_v26, %v5753_v38  ;;  %v2730_v26 = vsel %vm2668_vm8, %v11697_v44, %v5742_v2  ;;  %v2731_v38 = vsel %vm2668_vm8, %v5742_v2, %v5743_v17 }
 0x471   : > { %4660 = vmatmul.msk.f32.gmra.mxu2 %vm974_vm3, %v9450_v60  ;;  %2970 = vmatpush.msrb.mxu3 %v2733_v41  ;;  %v11698_v41 = vld [vmem:[#allocation61_spill] sm:$0xff]  ;;  %v2727_v18 = vsel %vm2668_vm8, %v11700_v4, %v5732_v48  ;;  %v5798_v2 = vunpack.i.h.bf16 %v9447_v46  ;;  %v2728_v44 = vsel %vm2668_vm8, %v5732_v48, %v5733_v29  ;;  %v5757_v4 = vunpack.i.l.bf16 %v9337_v6 }
 0x472   : > { %3052 = vmatpush.msrb.mxu2 %v2734_v61  ;;  %v11699_v61 = vpack.i.bf16 %v11698_v41, %v8802_v47  ;;  %v11701_v41 = vunpack.i.h.bf16 %v9055_v10  ;;  %v5758_v10 = vunpack.i.h.bf16 %v9337_v6  ;;  %v11702_v48 = vunpack.i.h.bf16 %v9134_v62  ;;  %v11704_v62 = vld [vmem:[#allocation32_spill] sm:$0xff] }
 0x473   : > { %5960 = vrot.lane.b32.xlu2 %v11696_v23, %s6365_s22  ;;  %6010 = vrot.lane.b32.xlu1 %v6009_v9, %s6366_s12  ;;  %v5692_v9 = vunpack.i.l.bf16 %v9159_v43  ;;  %v5747_v6 = vunpack.i.l.bf16 %v9381_v51 }
 0x474   : > { %2971 = vmatpush.msrb.mxu3 %v2730_v26  ;;  %v9475_v54 = vpop.permute.xlu2 %5800  ;;  %3053 = vmatpush.msrb.mxu2 %v2731_v38  ;;  %v5693_v26 = vunpack.i.h.bf16 %v9159_v43  ;;  %v2724_v0 = vsel %vm2668_vm8, %v11701_v41, %v5722_v25  ;;  %v5748_v41 = vunpack.i.h.bf16 %v9381_v51  ;;  %v11708_v51 = vpack.i.bf16 %v8656_v28, %v11665_v42  ;;  %v9546_v28 = vld [vmem:[#allocation9 + $0xd0] sm:$0xff] }
 0x475   : > { %5980 = vrot.lane.b32.xlu0 %v11699_v61, %s6366_s12  ;;  %v9481_v13 = vpop.permute.xlu1 %5810  ;;  %v11290_v17 = vunpack.i.l.bf16 %v9475_v54  ;;  %v5766_v23 = vpop.permute.xlu0 %5765  ;;  %v9494_v61 = vld [vmem:[#allocation9 + $0xb8] sm:$0xff]  ;;  %v11288_v42 = vunpack.i.l.bf16 %v9418_v3 }
 0x476   : > { %2972 = vmatpush.msrb.mxu3 %v2727_v18  ;;  %v5768_v47 = vunpack.i.h.bf16 %v5766_v23  ;;  %v5767_v38 = vunpack.i.l.bf16 %v5766_v23  ;;  %3054 = vmatpush.msrb.mxu2 %v2728_v44  ;;  %v2725_v18 = vsel %vm2668_vm8, %v5722_v25, %v5723_v14  ;;  %v5653_v44 = vunpack.i.h.bf16 %v9109_v5 }
 0x477   : > { %2865 = vmatmul.f32.gmra.mxu0 %v9473_v57  ;;  %v9504_v43 = vsel %vm3275_vm9, %v5798_v2, %v11290_v17  ;;  %v11703_v25 = vunpack.i.h.bf16 %v9082_v15 }
 0x478   : > { %2973 = vmatpush.msrb.mxu3 %v2724_v0  ;;  %3055 = vmatpush.msrb.mxu2 %v2725_v18  ;;  %v2715_v29 = vsel %vm2668_vm8, %v11702_v48, %v5767_v38  ;;  %v2716_v23 = vsel %vm2668_vm8, %v5767_v38, %v5768_v47  ;;  %v11705_v0 = vld [vmem:[#allocation38_spill] sm:$0xff]  ;;  %v2722_v47 = vsel %vm2668_vm8, %v5692_v9, %v5693_v26  ;;  %v11707_v38 = vunpack.i.h.bf16 %v9161_v49 }
 0x479   : > { %4661 = vmatmul.msk.f32.gmra.mxu2 %vm974_vm3, %v9494_v61  ;;  %2919 = vmatpush.msrb.mxu1 %v2715_v29  ;;  %v2721_v14 = vsel %vm2668_vm8, %v11703_v25, %v5692_v9  ;;  %v11706_v18 = vpack.i.bf16 %v11704_v62, %v11705_v0  ;;  %v5738_v48 = vunpack.i.h.bf16 %v9420_v58  ;;  %v5737_v29 = vunpack.i.l.bf16 %v9420_v58 }
 0x47a   : > { %2974 = vmatpush.msrb.mxu3 %v2721_v14  ;;  %3001 = vmatpush.msrb.mxu0 %v2716_v23  ;;  %v2712_v15 = vsel %vm2668_vm8, %v11707_v38, %v5757_v4  ;;  %v2713_v9 = vsel %vm2668_vm8, %v5757_v4, %v5758_v10  ;;  %v5728_v49 = vunpack.i.h.bf16 %v9230_v39  ;;  %v5727_v23 = vunpack.i.l.bf16 %v9230_v39  ;;  %v11710_v4 = vld [vmem:[#allocation53_spill] sm:$0xff]  ;;  %v9559_v38 = vld [vmem:[#allocation9 + $0xc8] sm:$0xff] }
 0x47b   : > { %5975 = vrot.lane.b32.xlu2 %v11706_v18, %s6365_s22  ;;  %3056 = vmatpush.msrb.mxu2 %v2722_v47  ;;  %v11709_v58 = vunpack.i.l.bf16 %v9109_v5  ;;  %v11711_v10 = vpack.i.bf16 %v11710_v4, %v8734_v7  ;;  %v5718_v47 = vunpack.i.h.bf16 %v9282_v20 }
 0x47c   : > { %v9529_v25 = vpop.permute.xlu2 %5815  ;;  %6030 = vrot.lane.b32.xlu1 %v11708_v51, %s6366_s12  ;;  %2920 = vmatpush.msrb.mxu1 %v2712_v15  ;;  %v5717_v15 = vunpack.i.l.bf16 %v9282_v20  ;;  %v11713_v51 = vunpack.i.h.bf16 %v9068_v63  ;;  %v6170_v20 = vld [vmem:[#allocation2 + $0x90] sm:$0xff]  ;;  %v6171_v63 = vld [vmem:[#allocation2 + $0x88] sm:$0xff] }
 0x47d   : > { %v9536_v26 = vpop.permute.xlu1 %5825  ;;  %2975 = vmatpush.msrb.mxu3 %v9120_v35  ;;  %3002 = vmatpush.msrb.mxu0 %v2713_v9  ;;  %v2719_v14 = vsel %vm2668_vm8, %v11709_v58, %v5653_v44  ;;  %v9544_v18 = vpop.permute.xlu0 %5770  ;;  %v11712_v35 = vunpack.i.h.bf16 %v9070_v55  ;;  %v2710_v44 = vsel %vm2668_vm8, %v5747_v6, %v5748_v41  ;;  %v2707_v9 = vsel %vm2668_vm8, %v5737_v29, %v5738_v48 }
 0x47e   : > { %3057 = vmatpush.msrb.mxu2 %v2719_v14  ;;  %5990 = vrot.lane.b32.xlu0 %v11711_v10, %s6366_s12  ;;  %v11295_v39 = vunpack.i.h.bf16 %v9544_v18  ;;  %v2706_v7 = vsel %vm2668_vm8, %v11713_v51, %v5737_v29  ;;  %v6044_v41 = vpack.i.bf16 %v6170_v20, %v6171_v63  ;;  %v5662_v48 = vunpack.i.l.bf16 %v9197_v30  ;;  %v11714_v29 = vld [vmem:[#allocation36_spill] sm:$0xff] }
 0x47f   : > { %v2709_v5 = vsel %vm2668_vm8, %v11712_v35, %v5747_v6  ;;  %3003 = vmatpush.msrb.mxu0 %v2710_v44  ;;  %4666 = vmatmul.msk.f32.vlgmr.msrb.gmra.mxu3 %vm974_vm3, %v9392_v56  ;;  %v5663_v6 = vunpack.i.h.bf16 %v9197_v30  ;;  %v11715_v58 = vpack.i.bf16 %v11714_v29, %v8660_v32  ;;  %v11716_v14 = vunpack.i.h.bf16 %v9104_v52  ;;  %v11718_v52 = vld [vmem:[#allocation80_spill] sm:$0xff] }
 0x480   : > { %2921 = vmatpush.msrb.mxu1 %v2709_v5  ;;  %2868 = vmatmul.f32.gmra.mxu0 %v9546_v28  ;;  %v9574_v55 = vsel %vm3275_vm9, %v11295_v39, %v11288_v42  ;;  %v2704_v10 = vsel %vm2668_vm8, %v5727_v23, %v5728_v49  ;;  %v5643_v35 = vunpack.i.h.bf16 %v9087_v24  ;;  %v11717_v32 = vunpack.i.h.bf16 %v9039_v22  ;;  %v11719_v22 = vld [vmem:[#allocation73_spill] sm:$0xff] }
 0x481   : > { %3004 = vmatpush.msrb.mxu0 %v2707_v9  ;;  %4662 = vmatmul.msk.f32.gmra.mxu2 %vm974_vm3, %v9559_v38  ;;  %v2703_v4 = vsel %vm2668_vm8, %v11716_v14, %v5727_v23  ;;  %v2701_v44 = vsel %vm2668_vm8, %v5717_v15, %v5718_v47  ;;  %v5577_v49 = vunpack.i.l.bf16 %v11718_v52  ;;  %v9602_v9 = vld [vmem:[#allocation9 + $0xe0] sm:$0xff]  ;;  %v5788_v20 = vunpack.i.h.bf16 %v9441_v1  ;;  %v9614_v14 = vld [vmem:[#allocation9 + $0xd8] sm:$0xff] }
 0x482   : > { %2922 = vmatpush.msrb.mxu1 %v2706_v7  ;;  %v2700_v30 = vsel %vm2668_vm8, %v11717_v32, %v5717_v15  ;;  %v5578_v7 = vunpack.i.h.bf16 %v11718_v52  ;;  %v11720_v63 = vpack.i.bf16 %v8905_v11, %v11719_v22  ;;  %v11721_v15 = vld [vmem:[#allocation81_spill] sm:$0xff] }
 0x483   : > { %6000 = vrot.lane.b32.xlu2 %v11715_v58, %s6366_s12  ;;  %3005 = vmatpush.msrb.mxu0 %v2704_v10  ;;  %v2698_v58 = vsel %vm2668_vm8, %v5662_v48, %v5663_v6 }
 0x484   : > { %2923 = vmatpush.msrb.mxu1 %v2703_v4  ;;  %v9589_v5 = vpop.permute.xlu2 %5830  ;;  %6045 = vrot.lane.b32.xlu1 %v6044_v41, %s6366_s12  ;;  %v11722_v41 = vunpack.i.h.bf16 %v11721_v15  ;;  %v11723_v4 = vld [vmem:[#allocation74_spill] sm:$0xff] }
 0x485   : > { %v9596_v51 = vpop.permute.xlu1 %5840  ;;  %3006 = vmatpush.msrb.mxu0 %v2701_v44  ;;  %v9600_v23 = vpop.permute.xlu0 %5790  ;;  %v5563_v10 = vunpack.i.h.bf16 %v11723_v4  ;;  %v5562_v32 = vunpack.i.l.bf16 %v11723_v4  ;;  %v11726_v44 = vld [vmem:[#allocation69_spill] sm:$0xff] }
 0x486   : > { %2924 = vmatpush.msrb.mxu1 %v2700_v30  ;;  %6005 = vrot.lane.b32.xlu0 %v11720_v63, %s6366_s12  ;;  %v11289_v47 = vunpack.i.l.bf16 %v9600_v23  ;;  %v2697_v29 = vsel %vm2668_vm8, %v11722_v41, %v5662_v48  ;;  %v11724_v30 = vunpack.i.l.bf16 %v9087_v24  ;;  %v11725_v48 = vld [vmem:[#allocation82_spill] sm:$0xff]  ;;  %v5548_v52 = vunpack.i.h.bf16 %v11726_v44  ;;  %v11729_v63 = vld [vmem:[#allocation35_spill] sm:$0xff] }
 0x487   : > { %3007 = vmatpush.msrb.mxu0 %v2698_v58  ;;  %4667 = vmatmul.msk.f32.gmra.mxu3 %vm974_vm3, %v9422_v34  ;;  %v5547_v24 = vunpack.i.l.bf16 %v11726_v44  ;;  %v11730_v15 = vunpack.i.h.bf16 %v11729_v63  ;;  %v11731_v58 = vld [vmem:[#allocation27_spill] sm:$0xff] }
 0x488   : > { %2925 = vmatpush.msrb.mxu1 %v2697_v29  ;;  %v2695_v11 = vsel %vm2668_vm8, %v11724_v30, %v5643_v35  ;;  %2871 = vmatmul.f32.gmra.mxu0 %v9602_v9  ;;  %v9629_v6 = vsel %vm3275_vm9, %v5788_v20, %v11289_v47  ;;  %v11727_v35 = vld [vmem:[#allocation67_spill] sm:$0xff]  ;;  %v2692_v29 = vsel %vm2668_vm8, %v5577_v49, %v5578_v7  ;;  %v5533_v4 = vunpack.i.h.bf16 %v11731_v58 }
 0x489   : > { %3008 = vmatpush.msrb.mxu0 %v2695_v11  ;;  %v11728_v22 = vpack.i.bf16 %v11727_v35, %v11659_v45  ;;  %4663 = vmatmul.msk.f32.gmra.mxu2 %vm974_vm3, %v9614_v14  ;;  %v2691_v41 = vsel %vm2668_vm8, %v11730_v15, %v5577_v49  ;;  %v11732_v11 = vld [vmem:[#allocation46_spill] sm:$0xff]  ;;  %v2689_v35 = vsel %vm2668_vm8, %v5562_v32, %v5563_v10  ;;  %v9659_v49 = vld [vmem:[#allocation9 + $0xf0] sm:$0xff]  ;;  %v11735_v63 = vld [vmem:[#allocation63_spill] sm:$0xff] }
 0x48a   : > { %2926 = vmatpush.msrb.mxu1 %v11725_v48  ;;  %v11733_v45 = vpack.i.bf16 %v11686_v37, %v11732_v11  ;;  %v11734_v48 = vunpack.i.h.bf16 %v11636_v19  ;;  %v5518_v15 = vunpack.i.h.bf16 %v11735_v63  ;;  %v11736_v37 = vld [vmem:[#allocation79_spill] sm:$0xff]  ;;  %v11739_v11 = vld [vmem:[#allocation30_spill] sm:$0xff] }
 0x48b   : > { %6015 = vrot.lane.b32.xlu2 %v11728_v22, %s6366_s12  ;;  %3009 = vmatpush.msrb.mxu0 %v2692_v29  ;;  %v11737_v29 = vld [vmem:[#allocation78_spill] sm:$0xff]  ;;  %v6173_v47 = vld [vmem:[#allocation2 + $0xa8] sm:$0xff] }
 0x48c   : > { %2927 = vmatpush.msrb.mxu1 %v2691_v41  ;;  %v9645_v30 = vpop.permute.xlu2 %5845  ;;  %6065 = vrot.lane.b32.xlu1 %v11733_v45, %s6366_s12  ;;  %v2688_v44 = vsel %vm2668_vm8, %v11734_v48, %v5562_v32  ;;  %v5517_v41 = vunpack.i.l.bf16 %v11735_v63  ;;  %v11738_v19 = vpack.i.bf16 %v11736_v37, %v11737_v29  ;;  %v11740_v45 = vunpack.i.h.bf16 %v11739_v11  ;;  %v9671_v48 = vld [vmem:[#allocation9 + $0xe8] sm:$0xff] }
 0x48d   : > { %v9655_v22 = vpop.permute.xlu1 %5855  ;;  %3010 = vmatpush.msrb.mxu0 %v2689_v35  ;;  %v9657_v7 = vpop.permute.xlu0 %5805  ;;  %v2686_v32 = vsel %vm2668_vm8, %v5547_v24, %v5548_v52  ;;  %v6172_v63 = vld [vmem:[#allocation2 + $0xb0] sm:$0xff]  ;;  %v11742_v37 = vunpack.i.l.bf16 %v11731_v58  ;;  %v11743_v52 = vld [vmem:[#allocation47_spill] sm:$0xff] }
 0x48e   : > { %2928 = vmatpush.msrb.mxu1 %v2688_v44  ;;  %6020 = vrot.lane.b32.xlu0 %v11738_v19, %s6366_s12  ;;  %v2685_v10 = vsel %vm2668_vm8, %v11740_v45, %v5547_v24  ;;  %v11741_v44 = vld [vmem:[#allocation52_spill] sm:$0xff]  ;;  %v6034_v17 = vpack.i.bf16 %v6172_v63, %v6173_v47  ;;  %v11744_v45 = vld [vmem:[#allocation18_spill] sm:$0xff] }
 0x48f   : > { %3011 = vmatpush.msrb.mxu0 %v2686_v32  ;;  %v5503_v35 = vunpack.i.h.bf16 %v11741_v44  ;;  %v5502_v42 = vunpack.i.l.bf16 %v11741_v44  ;;  %v2683_v29 = vsel %vm2668_vm8, %v11742_v37, %v5533_v4  ;;  %4668 = vmatmul.msk.f32.gmra.mxu3 %vm974_vm3, %v9450_v60  ;;  %v6174_v24 = vld [vmem:[#allocation2 + $0x10] sm:$0xff]  ;;  %v6175_v19 = vld [vmem:[#allocation2 + $0x8] sm:$0xff]  ;;  %v5487_v32 = vunpack.i.l.bf16 %v11744_v45  ;;  %v11745_v47 = vld [vmem:[#allocation26_spill] sm:$0xff] }
 0x490   : > { %2929 = vmatpush.msrb.mxu1 %v2685_v10  ;;  %2874 = vmatmul.f32.gmra.mxu0 %v9659_v49  ;;  %v6079_v11 = vpack.i.bf16 %v6174_v24, %v6175_v19  ;;  %v5488_v10 = vunpack.i.h.bf16 %v11744_v45  ;;  %v11746_v58 = vunpack.i.h.bf16 %v11745_v47  ;;  %v2680_v44 = vsel %vm2668_vm8, %v5517_v41, %v5518_v15  ;;  %v6176_v63 = vld [vmem:[#allocation2 + $0xd0] sm:$0xff]  ;;  %v6177_v37 = vld [vmem:[#allocation2 + $0xc8] sm:$0xff] }
 0x491   : > { %3012 = vmatpush.msrb.mxu0 %v2683_v29  ;;  %4664 = vmatmul.msk.f32.gmra.mxu2 %vm974_vm3, %v9671_v48  ;;  %v6024_v29 = vpack.i.bf16 %v6176_v63, %v6177_v37 }
 0x492   : > { %2930 = vmatpush.msrb.mxu1 %v11743_v52  ;;  %v2679_v4 = vsel %vm2668_vm8, %v11746_v58, %v5517_v41  ;;  %v11747_v52 = vld [vmem:[#allocation17_spill] sm:$0xff]  ;;  %v2677_v58 = vsel %vm2668_vm8, %v5502_v42, %v5503_v35 }
 0x493   : > { %6035 = vrot.lane.b32.xlu2 %v6034_v17, %s6366_s12  ;;  %3013 = vmatpush.msrb.mxu0 %v2680_v44  ;;  %v5468_v24 = vunpack.i.h.bf16 %v11747_v52  ;;  %v5467_v19 = vunpack.i.l.bf16 %v11747_v52  ;;  %v11748_v17 = vunpack.i.h.bf16 %v11651_v40  ;;  %v9709_v40 = vld [vmem:[#allocation9 + $0xf8] sm:$0xff] }
 0x494   : > { %2931 = vmatpush.msrb.mxu1 %v2679_v4  ;;  %v9693_v45 = vpop.permute.xlu2 %5860  ;;  %6080 = vrot.lane.b32.xlu1 %v6079_v11, %s6366_s12  ;;  %v11749_v4 = vunpack.i.h.bf16 %v11654_v50  ;;  %v2674_v11 = vsel %vm2668_vm8, %v5487_v32, %v5488_v10  ;;  %v11751_v50 = vld [vmem:[#allocation76_spill] sm:$0xff] }
 0x495   : > { %v2676_v47 = vsel %vm2668_vm8, %v11748_v17, %v5502_v42  ;;  %v9700_v15 = vpop.permute.xlu1 %5870  ;;  %3014 = vmatpush.msrb.mxu0 %v2677_v58  ;;  %v9702_v41 = vpop.permute.xlu0 %5820  ;;  %v11750_v42 = vunpack.i.h.bf16 %v11656_v36  ;;  %v2671_v63 = vsel %vm2668_vm8, %v5467_v19, %v5468_v24  ;;  %v11752_v37 = vpack.i.bf16 %v8951_v8, %v11751_v50  ;;  %v11753_v10 = vld [vmem:[#allocation24_spill] sm:$0xff]  ;;  %v11756_v17 = vld [vmem:[#allocation59_spill] sm:$0xff] }
 0x496   : > { %2932 = vmatpush.msrb.mxu1 %v2676_v47  ;;  %6025 = vrot.lane.b32.xlu0 %v6024_v29, %s6366_s12  ;;  %v2673_v44 = vsel %vm2668_vm8, %v11749_v4, %v5487_v32  ;;  %v11754_v32 = vld [vmem:[#allocation58_spill] sm:$0xff]  ;;  %v11757_v47 = vpack.i.bf16 %v8789_v59, %v11756_v17  ;;  %v11758_v58 = vpack.i.bf16 %v11687_v33, %v11672_v12  ;;  %v6182_v50 = vld [vmem:[#allocation2 + $0x48] sm:$0xff]  ;;  %v6184_v17 = vld [vmem:[#allocation2 + $0x30] sm:$0xff] }
 0x497   : > { %3015 = vmatpush.msrb.mxu0 %v2674_v11  ;;  %v2670_v35 = vsel %vm2668_vm8, %v11750_v42, %v5467_v19  ;;  %4669 = vmatmul.msk.f32.gmra.mxu3 %vm974_vm3, %v9494_v61  ;;  %v11755_v29 = vpack.i.bf16 %v11753_v10, %v11754_v32  ;;  %v6178_v4 = vld [vmem:[#allocation2 + $0xf8] sm:$0xff]  ;;  %v6179_v11 = vld [vmem:[#allocation2 + $0x70] sm:$0xff]  ;;  %v6180_v42 = vld [vmem:[#allocation2 + $0x68] sm:$0xff] }
 0x498   : > { %2933 = vmatpush.msrb.mxu1 %v2673_v44  ;;  %v6109_v59 = vpack.i.bf16 %v6178_v4, %v8892_v21  ;;  %v6183_v10 = vld [vmem:[#allocation2 + $0x98] sm:$0xff] }
 0x499   : > { %3016 = vmatpush.msrb.mxu0 %v2671_v63  ;;  %4665 = vmatmul.msk.f32.gmra.mxu2 %vm974_vm3, %v9709_v40  ;;  %v6124_v32 = vpack.i.bf16 %v6183_v10, %v8775_v16 }
 0x49a   : > { %2934 = vmatpush.msrb.mxu1 %v2670_v35  ;;  %3017 = vmatmul.f32.vlgmr.msrb.gmra.mxu0 %v9327_v31  ;;  %v6059_v35 = vpack.i.bf16 %v6179_v11, %v6180_v42  ;;  %v5857_v11 = vunpack.i.l.bf16 %v9655_v22 }
 0x49b   : > { %6050 = vrot.lane.b32.xlu2 %v11752_v37, %s6366_s12  ;;  %2935 = vmatmul.f32.vlgmr.msrb.gmra.mxu1 %v9327_v31 }
 0x49c   : > { %v9725_v36 = vpop.permute.xlu2 %5875  ;;  %6095 = vrot.lane.b32.xlu1 %v11755_v29, %s6366_s12  ;;  %v11759_v29 = vld [vmem:[#allocation22_spill] sm:$0xff] }
 0x49d   : > { %v9731_v52 = vpop.permute.xlu1 %5880  ;;  %v5878_v24 = vunpack.i.h.bf16 %v9725_v36  ;;  %v5877_v8 = vunpack.i.l.bf16 %v9725_v36  ;;  %v9735_v19 = vpop.permute.xlu0 %5835  ;;  %v11777_v36 = vld [vmem:[#allocation28_spill] sm:$0xff] }
 0x49e   : > { %6040 = vrot.lane.b32.xlu0 %v11757_v47, %s6366_s12  ;;  %v6185_v47 = vld [vmem:[#allocation2 + $0x28] sm:$0xff]  ;;  %v5837_v10 = vunpack.i.l.bf16 %v9735_v19 }
 0x49f   : > { %v3321_v31 = vsel %vm3275_vm9, %v5877_v8, %v5878_v24  ;;  %4670 = vmatmul.msk.f32.gmra.mxu3 %vm974_vm3, %v9559_v38 }
 0x4a0   : > { %3444 = vmatpush.msra.mxu1 %v3321_v31  ;;  %v6074_v31 = vpack.i.bf16 %v6184_v17, %v6185_v47  ;;  %v11764_v47 = vld [vmem:[#allocation41_spill] sm:$0xff] }
 0x4a1   : > { %4674 = vmatmul.msk.f32.vlgmr.msrb.gmra.mxu2 %vm974_vm3, %v9392_v56 }
 0x4a2   : > { %3020 = vmatmul.f32.gmra.mxu0 %v9379_v27 }
 0x4a3   : > { %6055 = vrot.lane.b32.xlu2 %v11758_v58, %s6366_s12  ;;  %2938 = vmatmul.f32.gmra.mxu1 %v9379_v27  ;;  %v6181_v27 = vld [vmem:[#allocation2 + $0x50] sm:$0xff] }
 0x4a4   : > { %v9755_v44 = vpop.permute.xlu2 %5885  ;;  %6110 = vrot.lane.b32.xlu1 %v6109_v59, %s6366_s12  ;;  %v6069_v37 = vpack.i.bf16 %v6181_v27, %v6182_v50  ;;  %v11293_v59 = vunpack.i.h.bf16 %v9655_v22  ;;  %v11761_v27 = vld [vmem:[#allocation77_spill] sm:$0xff] }
 0x4a5   : > { %v9758_v63 = vpop.permute.xlu1 %5895  ;;  %v11291_v12 = vunpack.i.h.bf16 %v9755_v44  ;;  %v5887_v56 = vunpack.i.l.bf16 %v9755_v44  ;;  %v9762_v33 = vpop.permute.xlu0 %5850 }
 0x4a6   : > { %6060 = vrot.lane.b32.xlu0 %v6059_v35, %s6366_s12  ;;  %v11292_v35 = vunpack.i.h.bf16 %v9645_v30 }
 0x4a7   : > { %v3345_v21 = vsel %vm3275_vm9, %v5887_v56, %v11291_v12  ;;  %4671 = vmatmul.msk.f32.gmra.mxu3 %vm974_vm3, %v9614_v14  ;;  %v5847_v56 = vunpack.i.l.bf16 %v9645_v30 }
 0x4a8   : > { %3493 = vmatpush.msra.mxu3 %v3345_v21  ;;  %v11760_v21 = vld [vmem:[#allocation72_spill] sm:$0xff] }
 0x4a9   : > { %4675 = vmatmul.msk.f32.gmra.mxu2 %vm974_vm3, %v9422_v34  ;;  %v11762_v50 = vpack.i.bf16 %v11760_v21, %v11761_v27  ;;  %v3312_v21 = vsel %vm3275_vm9, %v5847_v56, %v11292_v35  ;;  %v5897_v27 = vunpack.i.l.bf16 %v9758_v63 }
 0x4aa   : > { %3023 = vmatmul.f32.gmra.mxu0 %v11759_v29 }
 0x4ab   : > { %6070 = vrot.lane.b32.xlu2 %v6069_v37, %s6366_s12  ;;  %2941 = vmatmul.f32.gmra.mxu1 %v11759_v29  ;;  %v11294_v37 = vunpack.i.h.bf16 %v9735_v19  ;;  %v3315_v29 = vsel %vm3275_vm9, %v5857_v11, %v11293_v59  ;;  %v11298_v11 = vunpack.i.h.bf16 %v9758_v63 }
 0x4ac   : > { %6125 = vrot.lane.b32.xlu1 %v6124_v32, %s6366_s12  ;;  %v11763_v32 = vld [vmem:[#allocation15_spill] sm:$0xff] }
 0x4ad   : > { %v9776_v8 = vpop.permute.xlu2 %5900  ;;  %v9779_v58 = vpop.permute.xlu1 %5915  ;;  %v3309_v56 = vsel %vm3275_vm9, %v5837_v10, %v11294_v37  ;;  %v11770_v10 = vld [vmem:[#allocation50_spill] sm:$0xff]  ;;  %v11771_v37 = vld [vmem:[#allocation75_spill] sm:$0xff] }
 0x4ae   : > { %v9781_v4 = vpop.permute.xlu0 %5865  ;;  %6075 = vrot.lane.b32.xlu0 %v6074_v31, %s6366_s12  ;;  %v11765_v31 = vld [vmem:[#allocation37_spill] sm:$0xff]  ;;  %v11297_v35 = vunpack.i.h.bf16 %v9776_v8  ;;  %v5902_v59 = vunpack.i.l.bf16 %v9776_v8  ;;  %v11772_v39 = vpack.i.bf16 %v11770_v10, %v11771_v37 }
 0x4af   : > { %v5868_v34 = vunpack.i.h.bf16 %v9781_v4  ;;  %v5867_v16 = vunpack.i.l.bf16 %v9781_v4  ;;  %4672 = vmatmul.msk.f32.gmra.mxu3 %vm974_vm3, %v9671_v48 }
 0x4b1   : > { %v3318_v42 = vsel %vm3275_vm9, %v5867_v16, %v5868_v34  ;;  %4676 = vmatmul.msk.f32.gmra.mxu2 %vm974_vm3, %v9450_v60  ;;  %v11766_v16 = vpack.i.bf16 %v11764_v47, %v11765_v31  ;;  %v5828_v31 = vunpack.i.h.bf16 %v9536_v26 }
 0x4b2   : > { %3445 = vmatpush.msra.mxu1 %v3318_v42  ;;  %3026 = vmatmul.f32.gmra.mxu0 %v11763_v32 }
 0x4b3   : > { %6085 = vrot.lane.b32.xlu2 %v11762_v50, %s6366_s12  ;;  %2944 = vmatmul.f32.gmra.mxu1 %v11763_v32  ;;  %v11767_v50 = vld [vmem:[#allocation68_spill] sm:$0xff]  ;;  %v11768_v32 = vld [vmem:[#allocation51_spill] sm:$0xff] }
 0x4b4   : > { %6140 = vrot.lane.b32.xlu1 %v11766_v16, %s6366_s12  ;;  %3446 = vmatpush.msra.mxu1 %v3315_v29  ;;  %v11769_v12 = vpack.i.bf16 %v11767_v50, %v11768_v32  ;;  %v5827_v16 = vunpack.i.l.bf16 %v9536_v26  ;;  %v5818_v50 = vunpack.i.h.bf16 %v9529_v25  ;;  %v468_v32 = vld [vmem:[%s11093_s4 + $0x10] sm:$0xff] }
 0x4b5   : > { %v9808_v17 = vpop.permute.xlu2 %5920  ;;  %v9814_v60 = vpop.permute.xlu1 %5930 }
 0x4b6   : > { %v9816_v42 = vpop.permute.xlu0 %5890  ;;  %6090 = vrot.lane.b32.xlu0 %v11769_v12, %s6366_s12  ;;  %3447 = vmatpush.msra.mxu1 %v3312_v21  ;;  %v5817_v21 = vunpack.i.l.bf16 %v9529_v25 }
 0x4b7   : > { %v11296_v47 = vunpack.i.h.bf16 %v9816_v42  ;;  %v5892_v29 = vunpack.i.l.bf16 %v9816_v42  ;;  %4673 = vmatmul.msk.f32.gmra.mxu3 %vm974_vm3, %v9709_v40 }
 0x4b8   : > { %3448 = vmatpush.msra.mxu1 %v3309_v56  ;;  %v5808_v56 = vunpack.i.h.bf16 %v9657_v7 }
 0x4b9   : > { %v3342_v12 = vsel %vm3275_vm9, %v5892_v29, %v11296_v47  ;;  %4677 = vmatmul.msk.f32.gmra.mxu2 %vm974_vm3, %v9494_v61  ;;  %v3339_v29 = vsel %vm3275_vm9, %v5897_v27, %v11298_v11  ;;  %v3306_v47 = vsel %vm3275_vm9, %v5827_v16, %v5828_v31  ;;  %v3336_v61 = vsel %vm3275_vm9, %v5902_v59, %v11297_v35  ;;  %v11773_v16 = vld [vmem:[#allocation21_spill] sm:$0xff] }
 0x4ba   : > { %3494 = vmatpush.msra.mxu3 %v3342_v12  ;;  %v5807_v12 = vunpack.i.l.bf16 %v9657_v7  ;;  %3449 = vmatpush.msra.mxu1 %v3306_v47  ;;  %v3303_v27 = vsel %vm3275_vm9, %v5817_v21, %v5818_v50  ;;  %v5787_v35 = vunpack.i.l.bf16 %v9441_v1  ;;  %v11779_v1 = vunpack.i.h.bf16 %v9544_v18 }
 0x4bb   : > { %6100 = vrot.lane.b32.xlu2 %v11772_v39, %s6366_s12  ;;  %2947 = vmatmul.f32.gmra.mxu1 %v9473_v57  ;;  %v5797_v39 = vunpack.i.l.bf16 %v9447_v46 }
 0x4bc   : > { %3495 = vmatpush.msra.mxu3 %v3339_v29  ;;  %4261 = vperm.xlu1 %5322, %v468_v32   ;;  %v11774_v29 = vld [vmem:[#allocation57_spill] sm:$0xff]  ;;  %v3300_v21 = vsel %vm3275_vm9, %v5807_v12, %v5808_v56  ;;  %v474_v12 = vld [vmem:[%s11094_s5] sm:$0xff]  ;;  %v3294_v46 = vsel %vm3275_vm9, %v5787_v35, %v5788_v20 }
 0x4bd   : > { %v9859_v37 = vpop.permute.xlu2 %5935  ;;  %3029 = vmatmul.f32.gmra.mxu0 %v9473_v57  ;;  %v11775_v47 = vpack.i.bf16 %v11773_v16, %v11774_v29  ;;  %3450 = vmatpush.msra.mxu1 %v3303_v27  ;;  %v9875_v32 = vpop.permute.xlu1 %5945  ;;  %v6186_v57 = vld [vmem:[#allocation2 + $0xd8] sm:$0xff]  ;;  %v5772_v16 = vunpack.i.l.bf16 %v9544_v18  ;;  %v3297_v29 = vsel %vm3275_vm9, %v5797_v39, %v5798_v2  ;;  %v11300_v2 = vunpack.i.l.bf16 %v9762_v33 }
 0x4be   : > { %v9868_v10 = vpop.permute.xlu0 %5905  ;;  %3496 = vmatpush.msra.mxu3 %v3336_v61  ;;  %v11776_v61 = vld [vmem:[#allocation65_spill] sm:$0xff] }
 0x4bf   : > { %6105 = vrot.lane.b32.xlu0 %v11775_v47, %s6366_s12  ;;  %v5907_v59 = vunpack.i.l.bf16 %v9868_v10  ;;  %v6114_v11 = vpack.i.bf16 %v6186_v57, %v11776_v61  ;;  %3451 = vmatpush.msra.mxu1 %v3300_v21  ;;  %v11301_v47 = vunpack.i.l.bf16 %v9693_v45  ;;  %v5872_v21 = vunpack.i.l.bf16 %v9700_v15  ;;  %v6187_v57 = vld [vmem:[#allocation2 + $0xb8] sm:$0xff] }
 0x4c0   : > { %v3291_v20 = vsel %vm3275_vm9, %v5772_v16, %v11779_v1  ;;  %v11782_v16 = vunpack.i.h.bf16 %v11777_v36 }
 0x4c1   : > { %v3322_v27 = vsel %vm3275_vm9, %v5878_v24, %v5907_v59  ;;  %3452 = vmatpush.msra.mxu1 %v3297_v29  ;;  %v5707_v24 = vunpack.i.l.bf16 %v11777_v36  ;;  %4678 = vmatmul.msk.f32.gmra.mxu2 %vm974_vm3, %v9559_v38  ;;  %v3319_v61 = vsel %vm3275_vm9, %v5868_v34, %v5872_v21  ;;  %v11778_v38 = vld [vmem:[#allocation44_spill] sm:$0xff]  ;;  %v11781_v29 = vld [vmem:[#allocation71_spill] sm:$0xff] }
 0x4c2   : > { %3526 = vmatpush.msra.mxu0 %v3322_v27  ;;  %v5687_v27 = vunpack.i.l.bf16 %v11778_v38  ;;  %v5677_v34 = vunpack.i.l.bf16 %v11781_v29 }
 0x4c3   : > { %6115 = vrot.lane.b32.xlu2 %v6114_v11, %s6366_s12  ;;  %2950 = vmatmul.f32.gmra.mxu1 %v9546_v28  ;;  %v6119_v11 = vpack.i.bf16 %v6187_v57, %v8644_v53  ;;  %v11780_v53 = vunpack.i.h.bf16 %v9655_v22  ;;  %v6188_v57 = vld [vmem:[#allocation2 + $0x78] sm:$0xff]  ;;  %v11783_v22 = vunpack.i.h.bf16 %v9645_v30  ;;  %v5842_v30 = vunpack.i.l.bf16 %v9596_v51 }
 0x4c4   : > { %3453 = vmatpush.msra.mxu1 %v3294_v46  ;;  %4339 = vperm.xlu1 %5322, %v474_v12   ;;  %v3288_v46 = vsel %vm3275_vm9, %v5707_v24, %v11782_v16  ;;  %v11785_v24 = vunpack.i.h.bf16 %v11778_v38  ;;  %v5832_v16 = vunpack.i.l.bf16 %v9589_v5  ;;  %v471_v38 = vld [vmem:[%s11093_s4 + $0x28] sm:$0xff] }
 0x4c5   : > { %v9908_v39 = vpop.permute.xlu2 %5950  ;;  %3527 = vmatpush.msra.mxu0 %v3319_v61  ;;  %v3316_v4 = vsel %vm3275_vm9, %v11780_v53, %v11301_v47  ;;  %v9935_v61 = vpop.permute.xlu1 %5955  ;;  %v3313_v1 = vsel %vm3275_vm9, %v11783_v22, %v11300_v2  ;;  %v5922_v2 = vunpack.i.l.bf16 %v9808_v17 }
 0x4c6   : > { %3454 = vmatpush.msra.mxu1 %v3291_v20  ;;  %3032 = vmatmul.f32.gmra.mxu0 %v9546_v28  ;;  %v11784_v20 = vld [vmem:[#allocation31_spill] sm:$0xff]  ;;  %v5917_v28 = vunpack.i.l.bf16 %v9779_v58 }
 0x4c7   : > { %6120 = vrot.lane.b32.xlu0 %v6119_v11, %s6366_s12  ;;  %v9921_v35 = vpop.permute.xlu0 %5910  ;;  %3528 = vmatpush.msra.mxu0 %v3316_v4  ;;  %v6129_v11 = vpack.i.bf16 %v6188_v57, %v11705_v0  ;;  %v5363_v53 = vunpack.i.h.bf16 %v11784_v20  ;;  %v5362_v36 = vunpack.i.l.bf16 %v11784_v20  ;;  %v3285_v4 = vsel %vm3275_vm9, %v5687_v27, %v11785_v24  ;;  %v11786_v27 = vld [vmem:[#allocation42_spill] sm:$0xff] }
 0x4c8   : > { %v11299_v12 = vunpack.i.h.bf16 %v9921_v35  ;;  %v5912_v18 = vunpack.i.l.bf16 %v9921_v35  ;;  %3455 = vmatpush.msra.mxu1 %v3288_v46  ;;  %v5918_v46 = vunpack.i.h.bf16 %v9779_v58  ;;  %v5343_v57 = vunpack.i.h.bf16 %v11786_v27  ;;  %v6189_v24 = vld [vmem:[#allocation2 + $0x58] sm:$0xff] }
 0x4c9   : > { %3529 = vmatpush.msra.mxu0 %v3313_v1  ;;  %v5342_v22 = vunpack.i.l.bf16 %v11786_v27  ;;  %4679 = vmatmul.msk.f32.gmra.mxu2 %vm974_vm3, %v9614_v14  ;;  %v11788_v14 = vunpack.i.h.bf16 %v9735_v19  ;;  %v5783_v20 = vunpack.i.h.bf16 %v9418_v3  ;;  %v477_v27 = vld [vmem:[%s11094_s5 + $0x18] sm:$0xff] }
 0x4ca   : > { %v3333_v0 = vsel %vm3275_vm9, %v5912_v18, %v11299_v12  ;;  %3456 = vmatpush.msra.mxu1 %v3285_v4  ;;  %v11787_v18 = vunpack.i.h.bf16 %v11781_v29  ;;  %v5822_v4 = vunpack.i.l.bf16 %v9702_v41  ;;  %v5923_v12 = vunpack.i.h.bf16 %v9808_v17 }
 0x4cb   : > { %6130 = vrot.lane.b32.xlu2 %v6129_v11, %s6366_s12  ;;  %2953 = vmatmul.f32.gmra.mxu1 %v9602_v9  ;;  %v6134_v11 = vpack.i.bf16 %v6189_v24, %v11704_v62  ;;  %v3310_v29 = vsel %vm3275_vm9, %v11788_v14, %v5842_v30  ;;  %v3279_v62 = vsel %vm3275_vm9, %v5362_v36, %v5363_v53  ;;  %v5882_v24 = vunpack.i.l.bf16 %v9731_v52  ;;  %v466_v36 = vld [vmem:[%s11093_s4] sm:$0xff] }
 0x4cc   : > { %v3282_v1 = vsel %vm3275_vm9, %v5677_v34, %v11787_v18  ;;  %3497 = vmatpush.msra.mxu3 %v3333_v0  ;;  %v5908_v34 = vunpack.i.h.bf16 %v9868_v10  ;;  %3530 = vmatpush.msra.mxu0 %v3310_v29  ;;  %v5883_v18 = vunpack.i.h.bf16 %v9731_v52  ;;  %v3330_v19 = vsel %vm3275_vm9, %v5917_v28, %v5918_v46  ;;  %v476_v52 = vld [vmem:[%s11094_s5 + $0x10] sm:$0xff] }
 0x4cd   : > { %v9971_v47 = vpop.permute.xlu2 %5960  ;;  %3457 = vmatpush.msra.mxu1 %v3282_v1  ;;  %4276 = vperm.xlu1 %5322, %v471_v38   ;;  %v3307_v0 = vsel %vm3275_vm9, %v5828_v31, %v5832_v16  ;;  %v5812_v28 = vunpack.i.l.bf16 %v9481_v13  ;;  %v5873_v14 = vunpack.i.h.bf16 %v9700_v15  ;;  %v3327_v26 = vsel %vm3275_vm9, %v5922_v2, %v5923_v12  ;;  %v10015_v2 = vpop.permute.xlu1 %5970 }
 0x4ce   : > { %3498 = vmatpush.msra.mxu3 %v3330_v19  ;;  %3531 = vmatpush.msra.mxu0 %v3307_v0  ;;  %v3304_v31 = vsel %vm3275_vm9, %v5818_v50, %v5822_v4  ;;  %v5947_v29 = vunpack.i.l.bf16 %v9875_v32  ;;  %v3324_v25 = vsel %vm3275_vm9, %v5882_v24, %v5883_v18  ;;  %v11789_v50 = vunpack.i.h.bf16 %v9755_v44  ;;  %v478_v44 = vld [vmem:[%s11094_s5 + $0x20] sm:$0xff]  ;;  %v467_v24 = vld [vmem:[%s11093_s4 + $0x8] sm:$0xff] }
 0x4cf   : > { %6135 = vrot.lane.b32.xlu0 %v6134_v11, %s6366_s12  ;;  %3458 = vmatpush.msra.mxu1 %v3279_v62  ;;  %v5926_v38 = vpop.permute.xlu0 %5925  ;;  %v3276_v11 = vsel %vm3275_vm9, %v5342_v22, %v5343_v57  ;;  %v3323_v22 = vsel %vm3275_vm9, %v5907_v59, %v5908_v34  ;;  %v5863_v62 = vunpack.i.h.bf16 %v9693_v45  ;;  %v3320_v7 = vsel %vm3275_vm9, %v5872_v21, %v5873_v14 }
 0x4d0   : > { %v5927_v1 = vunpack.i.l.bf16 %v5926_v38  ;;  %3035 = vmatmul.f32.gmra.mxu0 %v9602_v9  ;;  %3499 = vmatpush.msra.mxu3 %v3327_v26  ;;  %v3301_v9 = vsel %vm3275_vm9, %v5808_v56, %v5812_v28  ;;  %v5928_v0 = vunpack.i.h.bf16 %v5926_v38  ;;  %v10039_v56 = vld [vmem:[#allocation9 + $0x8] sm:$0xff]  ;;  %v5853_v38 = vunpack.i.h.bf16 %v9762_v33 }
 0x4d1   : > { %3459 = vmatpush.msra.mxu1 %v3276_v11  ;;  %3532 = vmatpush.msra.mxu0 %v3304_v31  ;;  %v469_v11 = vld [vmem:[%s11093_s4 + $0x18] sm:$0xff]  ;;  %v11792_v14 = vunpack.i.h.bf16 %v9816_v42  ;;  %v5953_v31 = vunpack.i.h.bf16 %v9908_v39  ;;  %v11794_v42 = vunpack.i.h.bf16 %v9758_v63  ;;  %v5962_v63 = vunpack.i.l.bf16 %v9971_v47 }
 0x4d2   : > { %3500 = vmatpush.msra.mxu3 %v3324_v25  ;;  %v3346_v10 = vsel %vm3275_vm9, %v11789_v50, %v5927_v1  ;;  %v3347_v59 = vsel %vm3275_vm9, %v5927_v1, %v5947_v29  ;;  %4680 = vmatmul.msk.f32.gmra.mxu2 %vm974_vm3, %v9671_v48  ;;  %v11791_v48 = vunpack.i.l.bf16 %v9693_v45  ;;  %v5952_v1 = vunpack.i.l.bf16 %v9908_v39 }
 0x4d3   : > { %4251 = vperm.xlu2 %5323, %v466_v36   ;;  %3608 = vmatpush.msrb.mxu1 %v3323_v22  ;;  %v5948_v36 = vunpack.i.h.bf16 %v9875_v32  ;;  %v5843_v45 = vunpack.i.h.bf16 %v9596_v51  ;;  %v3343_v26 = vsel %vm3275_vm9, %v11792_v14, %v5928_v0  ;;  %v5933_v32 = vunpack.i.h.bf16 %v9814_v60 }
 0x4d4   : > { %3533 = vmatpush.msra.mxu0 %v3301_v9  ;;  %v10029_v34 = vpop.f32.mrf.mxu0  ;;  %2956 = vmatmul.f32.gmra.mxu1 %v9659_v49  ;;  %v3317_v15 = vsel %vm3275_vm9, %v11791_v48, %v5863_v62  ;;  %v11793_v22 = vunpack.i.l.bf16 %v9762_v33  ;;  %v11795_v33 = vld [vmem:[#allocation60_spill] sm:$0xff]  ;;  %v11797_v48 = vld [vmem:[#allocation19_spill] sm:$0xff] }
 0x4d5   : > { %11790 = vst [vmem:[#allocation40_spill] sm:$0xff] %v10029_v34  ;;  %v10031_v19 = vpop.permute.xlu2 %5975  ;;  %3609 = vmatpush.msrb.mxu1 %v3320_v7  ;;  %3575 = vmatpush.msra.mxu2 %v3346_v10  ;;  %v3344_v29 = vsel %vm3275_vm9, %v5928_v0, %v5948_v36  ;;  %v10081_v9 = vpop.permute.xlu1 %5985  ;;  %v11796_v10 = vunpack.i.h.bf16 %v9776_v8  ;;  %v3338_v0 = vsel %vm3275_vm9, %v5933_v32, %v5953_v31  ;;  %v10094_v7 = vld [vmem:[#allocation9] sm:$0xff]  ;;  %v480_v8 = vld [vmem:[%s11094_s5 + $0x30] sm:$0xff]  ;;  %v5963_v36 = vunpack.i.h.bf16 %v9971_v47 }
 0x4d6   : > { %3534 = vmatpush.msra.mxu0 %v9504_v43  ;;  %3657 = vmatpush.msrb.mxu3 %v3347_v59  ;;  %v5932_v43 = vunpack.i.l.bf16 %v9814_v60  ;;  %v3314_v62 = vsel %vm3275_vm9, %v11793_v22, %v5853_v38  ;;  %v5977_v14 = vunpack.i.l.bf16 %v10031_v19  ;;  %v11801_v31 = vld [vmem:[#allocation34_spill] sm:$0xff] }
 0x4d7   : > { %v10052_v21 = vpop.permute.xlu0 %5940  ;;  %4682 = vmatmul.msk.f32.vlgmr.msra.gmra.mxu3 %vm974_vm3, %v10039_v56  ;;  %3610 = vmatpush.msrb.mxu1 %v3317_v15  ;;  %v3337_v59 = vsel %vm3275_vm9, %v11796_v10, %v5933_v32  ;;  %v11798_v15 = vunpack.i.h.bf16 %v9921_v35  ;;  %v470_v35 = vld [vmem:[%s11093_s4 + $0x20] sm:$0xff] }
 0x4d8   : > { %4359 = vperm.xlu1 %5322, %v478_v44   ;;  %4256 = vperm.xlu0 %5321, %v467_v24   ;;  %v3340_v60 = vsel %vm3275_vm9, %v11794_v42, %v5932_v43  ;;  %v3341_v39 = vsel %vm3275_vm9, %v5932_v43, %v5952_v1  ;;  %v5823_v44 = vunpack.i.h.bf16 %v9702_v41  ;;  %v5937_v24 = vunpack.i.l.bf16 %v9859_v37  ;;  %v10115_v43 = vld [vmem:[#allocation9 + $0x18] sm:$0xff] }
 0x4d9   : > { %3535 = vmatpush.msra.mxu0 %v9629_v6  ;;  %3576 = vmatpush.msra.mxu2 %v3343_v26  ;;  %v5833_v6 = vunpack.i.h.bf16 %v9589_v5  ;;  %v475_v5 = vld [vmem:[%s11094_s5 + $0x8] sm:$0xff]  ;;  %v5943_v22 = vunpack.i.h.bf16 %v10052_v21  ;;  %v11802_v42 = vld [vmem:[#allocation62_spill] sm:$0xff] }
 0x4da   : > { %3658 = vmatpush.msrb.mxu3 %v3344_v29  ;;  %3611 = vmatpush.msrb.mxu1 %v3314_v62  ;;  %v3305_v47 = vsel %vm3275_vm9, %v5822_v4, %v5823_v44  ;;  %v5472_v29 = vunpack.i.l.bf16 %v11801_v31  ;;  %v5978_v62 = vunpack.i.h.bf16 %v10031_v19 }
 0x4db   : > { %4266 = vperm.xlu2 %5323, %v469_v11   ;;  %3536 = vmatpush.msra.mxu0 %v9574_v55  ;;  %v3311_v55 = vsel %vm3275_vm9, %v5842_v30, %v5843_v45  ;;  %v5938_v30 = vunpack.i.h.bf16 %v9859_v37  ;;  %v3308_v38 = vsel %vm3275_vm9, %v5832_v16, %v5833_v6  ;;  %v3335_v37 = vsel %vm3275_vm9, %v5937_v24, %v5962_v63  ;;  %v11799_v16 = vld [vmem:[#allocation23_spill] sm:$0xff]  ;;  %v10169_v63 = vld [vmem:[#allocation9 + $0x10] sm:$0xff] }
 0x4dc   : > { %v10078_v25 = vpop.f32.mrf.mxu0  ;;  %3577 = vmatpush.msra.mxu2 %v3340_v60  ;;  %3659 = vmatpush.msrb.mxu3 %v3341_v39  ;;  %v5672_v1 = vunpack.i.l.bf16 %v11799_v16  ;;  %v5942_v11 = vunpack.i.l.bf16 %v10052_v21  ;;  %v5803_v45 = vunpack.i.h.bf16 %v9475_v54  ;;  %v11803_v6 = vunpack.i.l.bf16 %v9475_v54 }
 0x4dd   : > { %v10083_v50 = vpop.permute.xlu2 %6000  ;;  %3612 = vmatpush.msrb.mxu1 %v3311_v55  ;;  %3537 = vmatpush.msra.mxu0 %v11795_v33  ;;  %v3331_v41 = vsel %vm3275_vm9, %v5918_v46, %v5938_v30  ;;  %v3332_v60 = vsel %vm3275_vm9, %v5938_v30, %v5963_v36  ;;  %v10152_v21 = vpop.permute.xlu1 %5995  ;;  %v3277_v17 = vsel %vm3275_vm9, %v5343_v57, %v5472_v29  ;;  %v11804_v57 = vld [vmem:[#allocation55_spill] sm:$0xff]  ;;  %v11805_v33 = vunpack.i.l.bf16 %v9600_v23 }
 0x4de   : > { %3578 = vmatpush.msra.mxu2 %v3337_v59  ;;  %3660 = vmatpush.msrb.mxu3 %v3338_v0  ;;  %v3280_v58 = vsel %vm3275_vm9, %v5363_v53, %v5672_v1  ;;  %v3328_v46 = vsel %vm3275_vm9, %v5923_v12, %v5942_v11  ;;  %v3299_v55 = vsel %vm3275_vm9, %v11803_v6, %v5803_v45  ;;  %v10181_v53 = vld [vmem:[#allocation9 + $0x28] sm:$0xff]  ;;  %v11807_v30 = vunpack.i.l.bf16 %v9418_v3  ;;  %v10260_v6 = vld [vmem:[#allocation9 + $0x30] sm:$0xff] }
 0x4df   : > { %v10098_v51 = vpop.permute.xlu0 %5965  ;;  %3038 = vmatmul.f32.gmra.mxu0 %v9659_v49  ;;  %4681 = vmatmul.msk.f32.gmra.mxu2 %vm974_vm3, %v9709_v40  ;;  %v3334_v49 = vsel %vm3275_vm9, %v11798_v15, %v5937_v24  ;;  %v5813_v40 = vunpack.i.h.bf16 %v9481_v13  ;;  %v5793_v13 = vunpack.i.h.bf16 %v9600_v23  ;;  %v3325_v12 = vsel %vm3275_vm9, %v5883_v18, %v5943_v22  ;;  %v11806_v24 = vld [vmem:[#allocation39_spill] sm:$0xff]  ;;  %v11808_v23 = vld [vmem:[#allocation56_spill] sm:$0xff] }
 0x4e0   : > { %3460 = vmatmul.f32.vlgmr.msra.gmra.mxu1 %v10094_v7  ;;  %3538 = vmatpush.msra.mxu0 %v11797_v48  ;;  %v3326_v54 = vsel %vm3275_vm9, %v5943_v22, %v5978_v62  ;;  %v5713_v18 = vunpack.i.h.bf16 %v11804_v57  ;;  %v5683_v48 = vunpack.i.h.bf16 %v11808_v23  ;;  %v11809_v15 = vunpack.i.l.bf16 %v11804_v57  ;;  %v479_v57 = vld [vmem:[%s11094_s5 + $0x28] sm:$0xff] }
 0x4e1   : > { %3613 = vmatpush.msrb.mxu1 %v3308_v38  ;;  %3579 = vmatpush.msra.mxu2 %v3334_v49  ;;  %v3302_v39 = vsel %vm3275_vm9, %v5812_v28, %v5813_v40  ;;  %v3329_v28 = vsel %vm3275_vm9, %v5942_v11, %v5977_v14  ;;  %v3296_v10 = vsel %vm3275_vm9, %v11805_v33, %v5793_v13  ;;  %v5673_v40 = vunpack.i.h.bf16 %v11799_v16  ;;  %v10223_v11 = vld [vmem:[#allocation9 + $0x38] sm:$0xff] }
 0x4e2   : > { %3661 = vmatpush.msrb.mxu3 %v3335_v37  ;;  %4369 = vperm.xlu1 %5322, %v480_v8   ;;  %v5703_v8 = vunpack.i.h.bf16 %v11806_v24  ;;  %v3293_v38 = vsel %vm3275_vm9, %v11807_v30, %v5783_v20  ;;  %v3290_v49 = vsel %vm3275_vm9, %v11809_v15, %v5713_v18  ;;  %v10216_v37 = vld [vmem:[#allocation9 + $0x20] sm:$0xff]  ;;  %v11810_v3 = vunpack.i.l.bf16 %v11806_v24 }
 0x4e3   : > { %4683 = vmatmul.msk.f32.gmra.mxu3 %vm974_vm3, %v10115_v43  ;;  %3614 = vmatpush.msrb.mxu1 %v3305_v47  ;;  %v473_v47 = vld [vmem:[%s11093_s4 + $0x38] sm:$0xff]  ;;  %v5473_v45 = vunpack.i.h.bf16 %v11801_v31  ;;  %v11811_v14 = vunpack.i.l.bf16 %v11808_v23  ;;  %v5958_v23 = vunpack.i.h.bf16 %v9935_v61 }
 0x4e4   : > { %v10135_v26 = vpop.f32.mrf.mxu2  ;;  %v10137_v32 = vpop.f32.mrf.mxu0  ;;  %4344 = vperm.xlu2 %5323, %v475_v5   ;;  %4271 = vperm.xlu0 %5321, %v470_v35   ;;  %v3287_v35 = vsel %vm3275_vm9, %v11810_v3, %v5703_v8 }
 0x4e5   : > { %11800 = vst [vmem:[#allocation20_spill] sm:$0xff] %v10135_v26  ;;  %v10144_v4 = vpop.permute.xlu2 %6015  ;;  %3539 = vmatpush.msra.mxu0 %v11802_v42  ;;  %3580 = vmatpush.msra.mxu2 %v3331_v41  ;;  %v10214_v36 = vpop.permute.xlu1 %6010  ;;  %v3284_v22 = vsel %vm3275_vm9, %v11811_v14, %v5683_v48  ;;  %v472_v41 = vld [vmem:[%s11093_s4 + $0x30] sm:$0xff]  ;;  %v3281_v42 = vsel %vm3275_vm9, %v5672_v1, %v5673_v40  ;;  %v10302_v48 = vld [vmem:[#allocation9 + $0x40] sm:$0xff]  ;;  %v5967_v14 = vunpack.i.l.bf16 %v10098_v51 }
 0x4e6   : > { %3662 = vmatpush.msrb.mxu3 %v3332_v60  ;;  %3615 = vmatpush.msrb.mxu1 %v3302_v39  ;;  %v3278_v16 = vsel %vm3275_vm9, %v5472_v29, %v5473_v45  ;;  %v10271_v29 = vld [vmem:[#allocation9 + $0x48] sm:$0xff]  ;;  %v11308_v45 = vunpack.i.h.bf16 %v10098_v51 }
 0x4e7   : > { %v10162_v19 = vpop.permute.xlu0 %5980  ;;  %3540 = vmatpush.msra.mxu0 %v3280_v58  ;;  %3581 = vmatpush.msra.mxu2 %v3328_v46  ;;  %v11305_v58 = vunpack.i.h.bf16 %v10152_v21  ;;  %v5997_v46 = vunpack.i.l.bf16 %v10152_v21 }
 0x4e8   : > { %3663 = vmatpush.msrb.mxu3 %v3329_v28  ;;  %3616 = vmatpush.msrb.mxu1 %v3299_v55 }
 0x4e9   : > { %3541 = vmatpush.msra.mxu0 %v3277_v17  ;;  %3582 = vmatpush.msra.mxu2 %v3325_v12  ;;  %v3879_v17 = vsel %vm3834_vm10, %v5997_v46, %v11305_v58  ;;  %v6012_v58 = vunpack.i.l.bf16 %v10214_v36 }
 0x4ea   : > { %3664 = vmatpush.msrb.mxu3 %v3326_v54  ;;  %3463 = vmatmul.f32.gmra.mxu1 %v10169_v63  ;;  %v481_v54 = vld [vmem:[%s11094_s5 + $0x38] sm:$0xff] }
 0x4eb   : > { %3542 = vmatmul.f32.vlgmr.msra.gmra.mxu0 %v10094_v7  ;;  %4690 = vmatmul.msk.f32.vlgmr.msra.gmra.mxu2 %vm974_vm3, %v10039_v56 }
 0x4ec   : > { %v10197_v59 = vpop.f32.mrf.mxu0  ;;  %3617 = vmatpush.msrb.mxu1 %v3296_v10  ;;  %4684 = vmatmul.msk.f32.gmra.mxu3 %vm974_vm3, %v10181_v53  ;;  %v10203_v44 = vpop.f32.mrf.mxu2 }
 0x4ed   : > { %v10201_v0 = vpop.permute.xlu2 %6035  ;;  %4354 = vperm.xlu2 %5323, %v477_v27   ;;  %4349 = vperm.xlu0 %5321, %v476_v52   ;;  %v11303_v27 = vunpack.i.h.bf16 %v10144_v4  ;;  %v6017_v52 = vunpack.i.l.bf16 %v10144_v4 }
 0x4ee   : > { %3618 = vmatpush.msrb.mxu1 %v3293_v38  ;;  %v10269_v20 = vpop.permute.xlu1 %6030 }
 0x4ef   : > { %v11302_v10 = vunpack.i.h.bf16 %v10269_v20  ;;  %v6032_v24 = vunpack.i.l.bf16 %v10269_v20  ;;  %v3875_v38 = vsel %vm3834_vm10, %v6017_v52, %v11303_v27  ;;  %v5982_v52 = vunpack.i.l.bf16 %v10162_v19 }
 0x4f0   : > { %3619 = vmatpush.msrb.mxu1 %v3290_v49  ;;  %v10218_v5 = vpop.permute.xlu0 %5990  ;;  %v5957_v49 = vunpack.i.l.bf16 %v9935_v61 }
 0x4f2   : > { %3620 = vmatpush.msrb.mxu1 %v3287_v35  ;;  %v3873_v35 = vsel %vm3834_vm10, %v6032_v24, %v11302_v10  ;;  %v10337_v24 = vld [vmem:[#allocation9 + $0x50] sm:$0xff] }
 0x4f3   : > { %3466 = vmatmul.f32.gmra.mxu1 %v10216_v37  ;;  %3545 = vmatmul.f32.gmra.mxu0 %v10169_v63 }
 0x4f4   : > { %v10237_v62 = vpop.f32.mrf.mxu0  ;;  %4691 = vmatmul.msk.f32.gmra.mxu2 %vm974_vm3, %v10115_v43  ;;  %3621 = vmatpush.msrb.mxu1 %v3284_v22  ;;  %v10246_v39 = vpop.f32.mrf.mxu2  ;;  %v482_v22 = vld [vmem:[#allocation3] sm:$0x1] }
 0x4f5   : > { %11812 = vst [vmem:[#allocation64_spill] sm:$0xff] %v10237_v62  ;;  %v10244_v60 = vpop.permute.xlu2 %6050  ;;  %4685 = vmatmul.msk.f32.gmra.mxu3 %vm974_vm3, %v10223_v11  ;;  %4286 = vperm.xlu2 %5323, %v473_v47   ;;  %v10308_v47 = vld [vmem:[#allocation9 + $0x58] sm:$0xff] }
 0x4f6   : > { %v11309_v13 = vunpack.i.h.bf16 %v10244_v60  ;;  %v6052_v28 = vunpack.i.l.bf16 %v10244_v60  ;;  %3622 = vmatpush.msrb.mxu1 %v3281_v42  ;;  %4281 = vperm.xlu0 %5321, %v472_v41   ;;  %v10315_v42 = vpop.permute.xlu1 %6045  ;;  %v11821_v34 = vunpack.i.h.bf16 %v10244_v60 }
 0x4f7   : > { %v11824_v60 = vunpack.i.h.bf16 %v10315_v42 }
 0x4f8   : > { %v3881_v1 = vsel %vm3834_vm10, %v6052_v28, %v11309_v13  ;;  %3623 = vmatpush.msrb.mxu1 %v3278_v16  ;;  %v10262_v55 = vpop.permute.xlu0 %6005  ;;  %v11307_v28 = vunpack.i.h.bf16 %v10015_v2  ;;  %v5972_v16 = vunpack.i.l.bf16 %v10015_v2  ;;  %v10384_v13 = vld [vmem:[#allocation9 + $0x60] sm:$0xff] }
 0x4f9   : > { %4028 = vmatpush.msrb.mxu2 %v3881_v1  ;;  %v11304_v12 = vunpack.i.h.bf16 %v10262_v55  ;;  %v6007_v31 = vunpack.i.l.bf16 %v10262_v55 }
 0x4fb   : > { %4029 = vmatpush.msrb.mxu2 %v3879_v17  ;;  %3469 = vmatmul.f32.gmra.mxu1 %v10260_v6  ;;  %v3877_v8 = vsel %vm3834_vm10, %v6007_v31, %v11304_v12  ;;  %v3863_v17 = vsel %vm3834_vm10, %v5957_v49, %v5958_v23  ;;  %v3859_v49 = vsel %vm3834_vm10, %v5972_v16, %v11307_v28  ;;  %v6002_v16 = vunpack.i.l.bf16 %v10083_v50 }
 0x4fc   : > { %3548 = vmatmul.f32.gmra.mxu0 %v10216_v37  ;;  %4692 = vmatmul.msk.f32.gmra.mxu2 %vm974_vm3, %v10181_v53  ;;  %v10287_v33 = vpop.f32.mrf.mxu2  ;;  %v11314_v12 = vunpack.i.h.bf16 %v10214_v36 }
 0x4fd   : > { %v10285_v18 = vpop.permute.xlu2 %6055  ;;  %4686 = vmatmul.msk.f32.gmra.mxu3 %vm974_vm3, %v10271_v29  ;;  %4374 = vperm.xlu2 %5323, %v481_v54   ;;  %v10296_v30 = vpop.f32.mrf.mxu0  ;;  %v11306_v54 = vunpack.i.h.bf16 %v10162_v19 }
 0x4fe   : > { %11813 = vst [vmem:[#allocation66_spill] sm:$0xff] %v10296_v30  ;;  %4364 = vperm.xlu0 %5321, %v479_v57   ;;  %4030 = vmatpush.msrb.mxu2 %v3877_v8  ;;  %v3861_v57 = vsel %vm3834_vm10, %v5967_v14, %v11308_v45  ;;  %v5992_v14 = vunpack.i.l.bf16 %v10218_v5  ;;  %v6057_v45 = vunpack.i.l.bf16 %v10285_v18  ;;  %v3849_v61 = vsel %vm3834_vm10, %v6012_v58, %v11314_v12 }
 0x500   : > { %4031 = vmatpush.msrb.mxu2 %v3875_v38  ;;  %v6021_v15 = vpop.permute.xlu0 %6020  ;;  %v11311_v38 = vunpack.i.h.bf16 %v10081_v9 }
 0x501   : > { %v6023_v40 = vunpack.i.h.bf16 %v6021_v15  ;;  %v6022_v3 = vunpack.i.l.bf16 %v6021_v15  ;;  %v5987_v15 = vunpack.i.l.bf16 %v10081_v9 }
 0x502   : > { %4032 = vmatpush.msrb.mxu2 %v3873_v35  ;;  %v11310_v35 = vunpack.i.h.bf16 %v10218_v5 }
 0x503   : > { %3472 = vmatmul.f32.gmra.mxu1 %v10302_v48  ;;  %v3865_v41 = vsel %vm3834_vm10, %v6022_v3, %v6023_v40  ;;  %v10346_v3 = vld [vmem:[#allocation9 + $0x68] sm:$0xff] }
 0x504   : > { %3551 = vmatmul.f32.gmra.mxu0 %v10260_v6  ;;  %4693 = vmatmul.msk.f32.gmra.mxu2 %vm974_vm3, %v10223_v11  ;;  %v10325_v1 = vpop.f32.mrf.mxu2 }
 0x505   : > { %v10319_v46 = vpop.permute.xlu2 %6070  ;;  %3979 = vmatpush.msrb.mxu0 %v3865_v41  ;;  %4687 = vmatmul.msk.f32.gmra.mxu3 %vm974_vm3, %v10308_v47  ;;  %11814 = vst [vmem:[#allocation25_spill] sm:$0xff] %v10325_v1  ;;  %v10330_v31 = vpop.f32.mrf.mxu0 }
 0x506   : > { %11815 = vst [vmem:[#allocation33_spill] sm:$0xff] %v10330_v31  ;;  %4450 = vperm.xlu0 %5321, %v482_v22   ;;  %v3857_v22 = vsel %vm3834_vm10, %v5982_v52, %v11306_v54  ;;  %v10355_v41 = vpop.f32.mrf.mxu3  ;;  %v3855_v52 = vsel %vm3834_vm10, %v5987_v15, %v11311_v38  ;;  %v10374_v54 = vpop.permute.xlu1 %6065  ;;  %v10442_v31 = vld [vmem:[#allocation9 + $0x70] sm:$0xff] }
 0x507   : > { %3980 = vmatpush.msrb.mxu0 %v3863_v17  ;;  %v11312_v17 = vunpack.i.h.bf16 %v10083_v50 }
 0x508   : > { %v10339_v8 = vpop.permute.xlu0 %6025 }
 0x509   : > { %3981 = vmatpush.msrb.mxu0 %v3861_v57 }
 0x50b   : > { %3982 = vmatpush.msrb.mxu0 %v3859_v49  ;;  %3475 = vmatmul.f32.gmra.mxu1 %v10337_v24 }
 0x50c   : > { %3554 = vmatmul.f32.gmra.mxu0 %v10302_v48  ;;  %4694 = vmatmul.msk.f32.gmra.mxu2 %vm974_vm3, %v10271_v29  ;;  %v10367_v27 = vpop.f32.mrf.mxu2 }
 0x50d   : > { %v6086_v57 = vpop.permute.xlu2 %6085  ;;  %3983 = vmatpush.msrb.mxu0 %v3857_v22  ;;  %4688 = vmatmul.msk.f32.gmra.mxu3 %vm974_vm3, %v10346_v3  ;;  %11816 = vst [vmem:[#allocation29_spill] sm:$0xff] %v10367_v27  ;;  %v10381_v28 = vpop.f32.mrf.mxu0 }
 0x50e   : > { %v10363_v49 = vunpack.i.h.bf16 %v6086_v57  ;;  %v10365_v10 = vunpack.i.l.bf16 %v6086_v57  ;;  %v3853_v57 = vsel %vm3834_vm10, %v5992_v14, %v11310_v35  ;;  %11817 = vst [vmem:[#allocation45_spill] sm:$0xff] %v10381_v28 }
 0x50f   : > { %3984 = vmatpush.msrb.mxu0 %v3855_v52  ;;  %v3851_v52 = vsel %vm3834_vm10, %v6002_v16, %v11312_v17  ;;  %v6037_v17 = vunpack.i.l.bf16 %v10201_v0  ;;  %v6067_v16 = vunpack.i.l.bf16 %v10374_v54 }
 0x510   : > { %v3866_v22 = vsel %vm3834_vm10, %v6023_v40, %v10365_v10  ;;  %v10386_v15 = vpop.permute.xlu0 %6040  ;;  %v6027_v40 = vunpack.i.l.bf16 %v10339_v8  ;;  %v3864_v14 = vsel %vm3834_vm10, %v5958_v23, %v10363_v49 }
 0x511   : > { %4061 = vmatpush.msra.mxu1 %v3866_v22  ;;  %3985 = vmatpush.msrb.mxu0 %v3853_v57  ;;  %v11313_v35 = vunpack.i.h.bf16 %v10386_v15  ;;  %v6042_v38 = vunpack.i.l.bf16 %v10386_v15  ;;  %v10400_v57 = vld [vmem:[#allocation9 + $0x78] sm:$0xff]  ;;  %v10430_v22 = vpop.f32.mrf.mxu3 }
 0x513   : > { %4062 = vmatpush.msra.mxu1 %v3864_v14  ;;  %3986 = vmatpush.msrb.mxu0 %v3851_v52  ;;  %v3871_v23 = vsel %vm3834_vm10, %v6042_v38, %v11313_v35  ;;  %v6047_v52 = vunpack.i.l.bf16 %v10315_v42  ;;  %v11819_v35 = vunpack.i.h.bf16 %v10339_v8  ;;  %v11820_v14 = vunpack.i.h.bf16 %v10285_v18 }
 0x514   : > { %3478 = vmatmul.f32.gmra.mxu1 %v10384_v13  ;;  %3557 = vmatmul.f32.gmra.mxu0 %v10337_v24  ;;  %v10425_v38 = vpop.f32.mrf.mxu2 }
 0x515   : > { %4695 = vmatmul.msk.f32.gmra.mxu2 %vm974_vm3, %v10308_v47  ;;  %v10418_v26 = vpop.permute.xlu2 %6100  ;;  %3987 = vmatpush.msrb.mxu0 %v3849_v61  ;;  %11818 = vst [vmem:[#allocation48_spill] sm:$0xff] %v10425_v38  ;;  %v3847_v12 = vsel %vm3834_vm10, %v6027_v40, %v11819_v35  ;;  %v3869_v61 = vsel %vm3834_vm10, %v6057_v45, %v11820_v14  ;;  %v11823_v45 = vunpack.i.h.bf16 %v10374_v54  ;;  %v11316_v14 = vunpack.i.h.bf16 %v10319_v46 }
 0x516   : > { %4689 = vmatmul.msk.f32.gmra.mxu3 %vm974_vm3, %v10400_v57  ;;  %v10423_v58 = vunpack.i.l.bf16 %v10418_v26  ;;  %4033 = vmatpush.msrb.mxu2 %v3871_v23  ;;  %v11822_v23 = vunpack.i.h.bf16 %v10201_v0  ;;  %v10551_v1 = vunpack.i.h.bf16 %v10418_v26 }
 0x517   : > { %3988 = vmatpush.msrb.mxu0 %v3847_v12  ;;  %v3867_v40 = vsel %vm3834_vm10, %v6067_v16, %v11823_v45 }
 0x518   : > { %v3882_v28 = vsel %vm3834_vm10, %v11821_v34, %v10423_v58  ;;  %4034 = vmatpush.msrb.mxu2 %v3869_v61  ;;  %v3845_v38 = vsel %vm3834_vm10, %v6037_v17, %v11822_v23  ;;  %v10444_v35 = vpop.f32.mrf.mxu1  ;;  %v10446_v12 = vpop.permute.xlu0 %6060  ;;  %v3843_v34 = vsel %vm3834_vm10, %v6047_v52, %v11824_v60  ;;  %v6072_v17 = vunpack.i.l.bf16 %v10319_v46 }
 0x519   : > { %4110 = vmatpush.msra.mxu3 %v3882_v28  ;;  %3989 = vmatpush.msrb.mxu0 %v3845_v38  ;;  %v10456_v61 = vpop.permute.xlu1 %6080  ;;  %v11315_v28 = vunpack.i.h.bf16 %v10446_v12  ;;  %v6062_v23 = vunpack.i.l.bf16 %v10446_v12  ;;  %v10460_v38 = vpop.f32.mrf.mxu0 }
 0x51a   : > { %4035 = vmatpush.msrb.mxu2 %v3867_v40  ;;  %11825 = vst [vmem:[#allocation70_spill] sm:$0xff] %v10460_v38  ;;  %v3839_v45 = vsel %vm3834_vm10, %v6072_v17, %v11316_v14  ;;  %v10477_v40 = vpop.f32.mrf.mxu3 }
 0x51b   : > { %3990 = vmatpush.msrb.mxu0 %v3843_v34  ;;  %v3841_v16 = vsel %vm3834_vm10, %v6062_v23, %v11315_v28  ;;  %v11318_v23 = vunpack.i.h.bf16 %v10456_v61 }
 0x51c   : > { %4192 = vmatpush.msra.mxu2 %v10423_v58  ;;  %3481 = vmatmul.f32.gmra.mxu1 %v10442_v31  ;;  %v10472_v52 = vpop.f32.mrf.mxu2 }
 0x51d   : > { %3560 = vmatmul.f32.gmra.mxu0 %v10384_v13  ;;  %4696 = vmatmul.msk.f32.gmra.mxu2 %vm974_vm3, %v10346_v3  ;;  %11826 = vst [vmem:[#allocation16_spill] sm:$0xff] %v10472_v52 }
 0x51e   : > { %3991 = vmatpush.msrb.mxu0 %v3841_v16  ;;  %4698 = vmatmul.msk.f32.vlgmr.msrb.gmra.mxu3 %vm974_vm3, %v10039_v56  ;;  %v6082_v16 = vunpack.i.l.bf16 %v10456_v61 }
 0x520   : > { %3992 = vmatpush.msrb.mxu0 %v3839_v45  ;;  %v10479_v60 = vpop.f32.mrf.mxu1  ;;  %v10481_v34 = vpop.permute.xlu0 %6075  ;;  %v3835_v14 = vsel %vm3834_vm10, %v6082_v16, %v11318_v23 }
 0x521   : > { %v11317_v28 = vunpack.i.h.bf16 %v10481_v34  ;;  %v6077_v56 = vunpack.i.l.bf16 %v10481_v34  ;;  %v10487_v38 = vpop.f32.mrf.mxu0  ;;  %v6096_v52 = vpop.permute.xlu1 %6095 }
 0x522   : > { %11827 = vst [vmem:[#allocation43_spill] sm:$0xff] %v10487_v38  ;;  %v10525_v27 = vunpack.i.l.bf16 %v6096_v52 }
 0x523   : > { %v3837_v17 = vsel %vm3834_vm10, %v6077_v56, %v11317_v28  ;;  %v10506_v56 = vld [vmem:[#allocation9 + $0x100] sm:$0xff]  ;;  %v10508_v28 = vld [vmem:[#allocation9 + $0x108] sm:$0xff] }
 0x524   : > { %3624 = vmatmul.f32.vlgmr.msrb.gmra.mxu1 %v10094_v7  ;;  %3993 = vmatpush.msrb.mxu0 %v3837_v17  ;;  %v10498_v45 = vpop.f32.mrf.mxu2 }
 0x525   : > { %3563 = vmatmul.f32.gmra.mxu0 %v10442_v31  ;;  %4697 = vmatmul.msk.f32.gmra.mxu2 %vm974_vm3, %v10400_v57  ;;  %11828 = vst [vmem:[#allocation49_spill] sm:$0xff] %v10498_v45  ;;  %v10515_v45 = vpop.f32.mrf.mxu3 }
 0x526   : > { %4699 = vmatmul.msk.f32.gmra.mxu3 %vm974_vm3, %v10115_v43  ;;  %3994 = vmatpush.msrb.mxu0 %v3835_v14  ;;  %11829 = vst [vmem:[#allocation54_spill] sm:$0xff] %v10515_v45  ;;  %v11830_v14 = vunpack.i.h.bf16 %v10098_v51  ;;  %v11833_v51 = vunpack.i.h.bf16 %v10015_v2  ;;  %v10553_v2 = vld [vmem:[#allocation9 + $0x118] sm:$0xff] }
 0x528   : > { %4143 = vmatpush.msra.mxu0 %v10365_v10  ;;  %v10504_v7 = vpop.f32.mrf.mxu1  ;;  %v6091_v38 = vpop.permute.xlu0 %6090 }
 0x529   : > { %v10510_v17 = vunpack.i.l.bf16 %v6091_v38  ;;  %v10513_v43 = vunpack.i.h.bf16 %v6091_v38  ;;  %v10523_v23 = vpop.f32.mrf.mxu0  ;;  %v6111_v38 = vpop.permute.xlu1 %6110 }
 0x52a   : > { %4144 = vmatpush.msra.mxu0 %v10363_v49  ;;  %11831 = vst [vmem:[#allocation61_spill] sm:$0xff] %v10523_v23  ;;  %v10539_v23 = vunpack.i.h.bf16 %v6096_v52 }
 0x52b   : > { %v3862_v16 = vsel %vm3834_vm10, %v11830_v14, %v10510_v17  ;;  %v3860_v14 = vsel %vm3834_vm10, %v11833_v51, %v10513_v43  ;;  %v6116_v51 = vpop.permute.xlu2 %6115 }
 0x52c   : > { %3627 = vmatmul.f32.gmra.mxu1 %v10169_v63  ;;  %4145 = vmatpush.msra.mxu0 %v10510_v17  ;;  %v10532_v63 = vpop.f32.mrf.mxu2 }
 0x52d   : > { %3995 = vmatmul.f32.vlgmr.msrb.gmra.mxu0 %v10506_v56  ;;  %4706 = vmatmul.msk.f32.vlgmr.msrb.gmra.mxu2 %vm974_vm3, %v10508_v28  ;;  %11832 = vst [vmem:[#allocation32_spill] sm:$0xff] %v10532_v63  ;;  %v10548_v63 = vld [vmem:[#allocation9 + $0x110] sm:$0xff] }
 0x52e   : > { %4700 = vmatmul.msk.f32.gmra.mxu3 %vm974_vm3, %v10181_v53  ;;  %4063 = vmatpush.msra.mxu1 %v3862_v16  ;;  %v11835_v53 = vunpack.i.h.bf16 %v10162_v19  ;;  %v11836_v19 = vunpack.i.h.bf16 %v10081_v9  ;;  %v11839_v9 = vunpack.i.h.bf16 %v10218_v5 }
 0x52f   : > { %4146 = vmatpush.msra.mxu0 %v10513_v43 }
 0x530   : > { %4064 = vmatpush.msra.mxu1 %v3860_v14  ;;  %v10542_v30 = vpop.f32.mrf.mxu1  ;;  %v3858_v16 = vsel %vm3834_vm10, %v11835_v53, %v10525_v27  ;;  %v3856_v26 = vsel %vm3834_vm10, %v11836_v19, %v10539_v23  ;;  %v10566_v53 = vunpack.i.l.bf16 %v6111_v38  ;;  %v3854_v19 = vsel %vm3834_vm10, %v11839_v9, %v10551_v1 }
 0x531   : > { %4147 = vmatpush.msra.mxu0 %v10525_v27  ;;  %11834 = vst [vmem:[#allocation38_spill] sm:$0xff] %v10542_v30  ;;  %v6106_v45 = vpop.permute.xlu0 %6105  ;;  %v10576_v30 = vunpack.i.h.bf16 %v6111_v38  ;;  %v10587_v62 = vpop.f32.mrf.mxu0 }
 0x532   : > { %v10555_v52 = vunpack.i.l.bf16 %v6106_v45  ;;  %4065 = vmatpush.msra.mxu1 %v3858_v16  ;;  %v10559_v14 = vunpack.i.h.bf16 %v6106_v45  ;;  %v11837_v16 = vunpack.i.h.bf16 %v10152_v21  ;;  %v10574_v45 = vpop.f32.mrf.mxu3  ;;  %11841 = vst [vmem:[#allocation80_spill] sm:$0xff] %v10587_v62  ;;  %v10589_v21 = vunpack.i.l.bf16 %v6116_v51  ;;  %v6126_v38 = vpop.permute.xlu1 %6125 }
 0x533   : > { %4148 = vmatpush.msra.mxu0 %v10539_v23  ;;  %11838 = vst [vmem:[#allocation53_spill] sm:$0xff] %v10574_v45  ;;  %v6131_v45 = vpop.permute.xlu2 %6130 }
 0x534   : > { %3630 = vmatmul.f32.gmra.mxu1 %v10216_v37  ;;  %v3880_v37 = vsel %vm3834_vm10, %v11837_v16, %v10555_v52  ;;  %4193 = vmatpush.msra.mxu2 %v10555_v52  ;;  %v11843_v16 = vunpack.i.h.bf16 %v10262_v55 }
 0x535   : > { %3998 = vmatmul.f32.gmra.mxu0 %v10548_v63  ;;  %4707 = vmatmul.msk.f32.gmra.mxu2 %vm974_vm3, %v10553_v2 }
 0x536   : > { %4066 = vmatpush.msra.mxu1 %v3856_v26  ;;  %4701 = vmatmul.msk.f32.gmra.mxu3 %vm974_vm3, %v10223_v11  ;;  %v10585_v26 = vpop.f32.mrf.mxu2  ;;  %v11842_v11 = vunpack.i.h.bf16 %v10083_v50  ;;  %v3878_v9 = vsel %vm3834_vm10, %v11843_v16, %v10566_v53  ;;  %v10617_v16 = vld [vmem:[#allocation9 + $0x120] sm:$0xff] }
 0x537   : > { %4149 = vmatpush.msra.mxu0 %v10551_v1  ;;  %11840 = vst [vmem:[#allocation36_spill] sm:$0xff] %v10585_v26  ;;  %4111 = vmatpush.msra.mxu3 %v3880_v37  ;;  %v10604_v26 = vunpack.i.h.bf16 %v6116_v51  ;;  %v10606_v37 = vld [vmem:[#allocation9 + $0x128] sm:$0xff]  ;;  %v11845_v51 = vunpack.i.h.bf16 %v10144_v4  ;;  %v11847_v4 = vunpack.i.h.bf16 %v10339_v8 }
 0x538   : > { %4067 = vmatpush.msra.mxu1 %v3854_v19  ;;  %v3852_v5 = vsel %vm3834_vm10, %v11842_v11, %v10559_v14  ;;  %4194 = vmatpush.msra.mxu2 %v10566_v53  ;;  %v10602_v62 = vpop.f32.mrf.mxu1 }
 0x539   : > { %4150 = vmatpush.msra.mxu0 %v10559_v14  ;;  %v6121_v19 = vpop.permute.xlu0 %6120  ;;  %4112 = vmatpush.msra.mxu3 %v3878_v9  ;;  %v3876_v9 = vsel %vm3834_vm10, %v11845_v51, %v10589_v21  ;;  %v11848_v51 = vunpack.i.h.bf16 %v10201_v0  ;;  %v11852_v0 = vunpack.i.h.bf16 %v10386_v15  ;;  %v10676_v15 = vld [vmem:[#allocation9 + $0x130] sm:$0xff] }
 0x53a   : > { %4068 = vmatpush.msra.mxu1 %v3852_v5  ;;  %v10609_v50 = vunpack.i.h.bf16 %v6121_v19  ;;  %v10611_v11 = vunpack.i.l.bf16 %v6121_v19  ;;  %v11844_v5 = vunpack.i.h.bf16 %v10214_v36  ;;  %4195 = vmatpush.msra.mxu2 %v10589_v21  ;;  %v10625_v19 = vunpack.i.l.bf16 %v6126_v38  ;;  %v10655_v8 = vpop.f32.mrf.mxu0 }
 0x53b   : > { %4151 = vmatpush.msra.mxu0 %v10576_v30  ;;  %4113 = vmatpush.msra.mxu3 %v3876_v9  ;;  %v11846_v36 = vunpack.i.h.bf16 %v10269_v20  ;;  %11851 = vst [vmem:[#allocation74_spill] sm:$0xff] %v10655_v8 }
 0x53c   : > { %v3850_v55 = vsel %vm3834_vm10, %v11844_v5, %v10576_v30  ;;  %3633 = vmatmul.f32.gmra.mxu1 %v10260_v6  ;;  %v3848_v6 = vsel %vm3834_vm10, %v11847_v4, %v10604_v26  ;;  %v3846_v9 = vsel %vm3834_vm10, %v11848_v51, %v10609_v50  ;;  %4196 = vmatpush.msra.mxu2 %v10611_v11 }
 0x53d   : > { %4069 = vmatpush.msra.mxu1 %v3850_v55  ;;  %4708 = vmatmul.msk.f32.gmra.mxu2 %vm974_vm3, %v10606_v37  ;;  %v3874_v5 = vsel %vm3834_vm10, %v11846_v36, %v10611_v11  ;;  %v10634_v55 = vunpack.i.h.bf16 %v6126_v38  ;;  %v10650_v38 = vpop.f32.mrf.mxu3  ;;  %v10657_v36 = vunpack.i.l.bf16 %v6131_v45  ;;  %v3872_v4 = vsel %vm3834_vm10, %v11852_v0, %v10625_v19 }
 0x53e   : > { %4001 = vmatmul.f32.gmra.mxu0 %v10617_v16  ;;  %4702 = vmatmul.msk.f32.gmra.mxu3 %vm974_vm3, %v10271_v29  ;;  %v10647_v20 = vpop.f32.mrf.mxu2  ;;  %11850 = vst [vmem:[#allocation81_spill] sm:$0xff] %v10650_v38  ;;  %v10652_v29 = vunpack.i.h.bf16 %v6131_v45  ;;  %v10666_v38 = vld [vmem:[#allocation9 + $0x138] sm:$0xff]  ;;  %v11854_v45 = vunpack.i.h.bf16 %v10315_v42  ;;  %v11855_v0 = vunpack.i.h.bf16 %v10446_v12 }
 0x53f   : > { %4152 = vmatpush.msra.mxu0 %v10604_v26  ;;  %11849 = vst [vmem:[#allocation73_spill] sm:$0xff] %v10647_v20  ;;  %4070 = vmatpush.msra.mxu1 %v3848_v6  ;;  %v6141_v20 = vpop.permute.xlu1 %6140 }
 0x540   : > { %4114 = vmatpush.msra.mxu3 %v3874_v5  ;;  %4197 = vmatpush.msra.mxu2 %v10625_v19  ;;  %v10664_v6 = vpop.f32.mrf.mxu1  ;;  %v3844_v5 = vsel %vm3834_vm10, %v11854_v45, %v10634_v55  ;;  %v3842_v42 = vsel %vm3834_vm10, %v11855_v0, %v10652_v29  ;;  %v11858_v45 = vunpack.i.h.bf16 %v10374_v54  ;;  %v10705_v0 = vunpack.i.h.bf16 %v6141_v20 }
 0x541   : > { %4153 = vmatpush.msra.mxu0 %v10609_v50  ;;  %4071 = vmatpush.msra.mxu1 %v3846_v9  ;;  %11853 = vst [vmem:[#allocation82_spill] sm:$0xff] %v10664_v6  ;;  %v6136_v51 = vpop.permute.xlu0 %6135  ;;  %v10684_v6 = vunpack.i.l.bf16 %v6141_v20 }
 0x542   : > { %4115 = vmatpush.msra.mxu3 %v3872_v4  ;;  %v10673_v9 = vunpack.i.h.bf16 %v6136_v51  ;;  %v6137_v8 = vunpack.i.l.bf16 %v6136_v51  ;;  %4198 = vmatpush.msra.mxu2 %v10657_v36  ;;  %v11856_v4 = vunpack.i.h.bf16 %v10319_v46 }
 0x543   : > { %4154 = vmatpush.msra.mxu0 %v10634_v55  ;;  %4072 = vmatpush.msra.mxu1 %v3844_v5  ;;  %v10720_v20 = vpop.f32.mrf.mxu0 }
 0x544   : > { %3636 = vmatmul.f32.gmra.mxu1 %v10302_v48  ;;  %v3840_v51 = vsel %vm3834_vm10, %v11856_v4, %v10673_v9  ;;  %v11857_v48 = vunpack.i.h.bf16 %v10285_v18  ;;  %v3868_v5 = vsel %vm3834_vm10, %v11858_v45, %v6137_v8  ;;  %4199 = vmatpush.msra.mxu2 %v6137_v8  ;;  %v11859_v18 = vunpack.i.h.bf16 %v10481_v34 }
 0x545   : > { %4155 = vmatpush.msra.mxu0 %v10652_v29  ;;  %4709 = vmatmul.msk.f32.gmra.mxu2 %vm974_vm3, %v10666_v38  ;;  %v10712_v54 = vpop.f32.mrf.mxu3  ;;  %v11860_v34 = vunpack.i.h.bf16 %v10456_v61 }
 0x546   : > { %4073 = vmatpush.msra.mxu1 %v3842_v42  ;;  %4703 = vmatmul.msk.f32.gmra.mxu3 %vm974_vm3, %v10308_v47  ;;  %v3870_v12 = vsel %vm3834_vm10, %v11857_v48, %v10657_v36  ;;  %v10703_v46 = vpop.f32.mrf.mxu2  ;;  %v3838_v47 = vsel %vm3834_vm10, %v11859_v18, %v10684_v6  ;;  %v10714_v42 = vld [vmem:[#allocation9 + $0x148] sm:$0xff] }
 0x547   : > { %4004 = vmatmul.f32.gmra.mxu0 %v10676_v15  ;;  %4116 = vmatpush.msra.mxu3 %v3870_v12  ;;  %v3836_v48 = vsel %vm3834_vm10, %v11860_v34, %v10705_v0 }
 0x548   : > { %4156 = vmatpush.msra.mxu0 %v10673_v9  ;;  %4074 = vmatpush.msra.mxu1 %v3840_v51  ;;  %v10717_v4 = vpop.f32.mrf.mxu1  ;;  %v10722_v51 = vld [vmem:[#allocation9 + $0x140] sm:$0xff] }
 0x549   : > { %4117 = vmatpush.msra.mxu3 %v3868_v5 }
 0x54a   : > { %4157 = vmatpush.msra.mxu0 %v10684_v6  ;;  %4075 = vmatpush.msra.mxu1 %v3838_v47 }
 0x54b   : > { %4748 = vmatpush.msrb.mxu3 %v10423_v58  ;;  %v10741_v58 = vld [vmem:[#allocation9 + $0x158] sm:$0xff] }
 0x54c   : > { %4158 = vmatpush.msra.mxu0 %v10705_v0  ;;  %3639 = vmatmul.f32.gmra.mxu1 %v10337_v24 }
 0x54d   : > { %4749 = vmatpush.msrb.mxu3 %v10555_v52  ;;  %4710 = vmatmul.msk.f32.gmra.mxu2 %vm974_vm3, %v10714_v42  ;;  %v10745_v61 = vpop.f32.mrf.mxu3  ;;  %v10787_v52 = vld [vmem:[#allocation9 + $0x170] sm:$0xff] }
 0x54e   : > { %4076 = vmatpush.msra.mxu1 %v3836_v48  ;;  %4704 = vmatmul.msk.f32.gmra.mxu3 %vm974_vm3, %v10346_v3  ;;  %v10737_v24 = vpop.f32.mrf.mxu2  ;;  %v10747_v3 = vld [vmem:[#allocation9 + $0x150] sm:$0xff] }
 0x54f   : > { %4007 = vmatmul.f32.gmra.mxu0 %v10722_v51  ;;  %4750 = vmatpush.msrb.mxu3 %v10566_v53 }
 0x550   : > { %4732 = vmatpush.msrb.mxu1 %v10365_v10 }
 0x551   : > { %4751 = vmatpush.msrb.mxu3 %v10589_v21  ;;  %v10750_v10 = vpop.f32.mrf.mxu1 }
 0x552   : > { %4733 = vmatpush.msrb.mxu1 %v10363_v49  ;;  %v10755_v49 = vpop.f32.mrf.mxu0 }
 0x553   : > { %4752 = vmatpush.msrb.mxu3 %v10611_v11 }
 0x554   : > { %4734 = vmatpush.msrb.mxu1 %v10510_v17  ;;  %v10766_v17 = vld [vmem:[#allocation9 + $0x168] sm:$0xff] }
 0x555   : > { %3642 = vmatmul.f32.gmra.mxu1 %v10384_v13  ;;  %4711 = vmatmul.msk.f32.gmra.mxu2 %vm974_vm3, %v10741_v58 }
 0x556   : > { %4735 = vmatpush.msrb.mxu1 %v10513_v43  ;;  %4705 = vmatmul.msk.f32.gmra.mxu3 %vm974_vm3, %v10400_v57  ;;  %v10764_v13 = vpop.f32.mrf.mxu2  ;;  %v10769_v43 = vld [vmem:[#allocation9 + $0x160] sm:$0xff] }
 0x557   : > { %4010 = vmatmul.f32.gmra.mxu0 %v10747_v3  ;;  %4753 = vmatpush.msrb.mxu3 %v10625_v19  ;;  %v2978_v19 = vadd.f32 %v10355_v41, %v10444_v35 }
 0x558   : > { %4736 = vmatpush.msrb.mxu1 %v10525_v27 }
 0x559   : > { %4754 = vmatpush.msrb.mxu3 %v10657_v36 }
 0x55a   : > { %4737 = vmatpush.msrb.mxu1 %v10539_v23  ;;  %v10775_v27 = vpop.f32.mrf.mxu3 }
 0x55b   : > { %4755 = vmatpush.msrb.mxu3 %v6137_v8 }
 0x55c   : > { %4738 = vmatpush.msrb.mxu1 %v10551_v1  ;;  %v3039_v23 = vpop.f32.mrf.mxu0  ;;  %v10784_v1 = vld [vmem:[#allocation9 + $0x178] sm:$0xff] }
 0x55d   : > { %3645 = vmatmul.f32.gmra.mxu1 %v10442_v31  ;;  %4712 = vmatmul.msk.f32.gmra.mxu2 %vm974_vm3, %v10766_v17  ;;  %v10779_v57 = vpop.f32.mrf.mxu1 }
 0x55e   : > { %4739 = vmatpush.msrb.mxu1 %v10559_v14  ;;  %4714 = vmatmul.msk.f32.vlgmr.msra.gmra.mxu3 %vm974_vm3, %v10508_v28 }
 0x55f   : > { %4013 = vmatmul.f32.gmra.mxu0 %v10769_v43 }
 0x560   : > { %4740 = vmatpush.msrb.mxu1 %v10576_v30  ;;  %v2899_v30 = vadd.f32 %v10203_v44, %v10078_v25 }
 0x562   : > { %4741 = vmatpush.msrb.mxu1 %v10604_v26  ;;  %v3080_v31 = vpop.f32.mrf.mxu2 }
 0x563   : > { %v10790_v14 = vadd.f32 %v3080_v31, %v3039_v23 }
 0x564   : > { %4742 = vmatpush.msrb.mxu1 %v10609_v50 }
 0x565   : > { %4077 = vmatmul.f32.vlgmr.msra.gmra.mxu1 %v10506_v56  ;;  %4713 = vmatmul.msk.f32.gmra.mxu2 %vm974_vm3, %v10784_v1 }
 0x566   : > { %4743 = vmatpush.msrb.mxu1 %v10634_v55  ;;  %4715 = vmatmul.msk.f32.gmra.mxu3 %vm974_vm3, %v10553_v2  ;;  %v3505_v53 = vpop.f32.mrf.mxu3  ;;  %v2902_v55 = vadd.f32 %v10246_v39, %v10137_v32  ;;  %v2905_v39 = vadd.f32 %v10287_v33, %v10197_v59  ;;  %v11861_v33 = vld [vmem:[#allocation64_spill] sm:$0xff] }
 0x567   : > { %4016 = vmatmul.f32.gmra.mxu0 %v10787_v52  ;;  %v3464_v26 = vpop.f32.mrf.mxu1 }
 0x568   : > { %4744 = vmatpush.msrb.mxu1 %v10652_v29  ;;  %v3465_v21 = vadd.f32 %v3464_v26, %v2899_v30  ;;  %v3543_v50 = vpop.f32.mrf.mxu0  ;;  %v11866_v26 = vld [vmem:[#allocation29_spill] sm:$0xff] }
 0x569   : > { %v3544_v25 = vadd.f32 %v3543_v50, %v2978_v19 }
 0x56a   : > { %4745 = vmatpush.msrb.mxu1 %v10673_v9  ;;  %v10802_v11 = vadd.f32 %v3505_v53, %v3465_v21  ;;  %v11865_v53 = vld [vmem:[#allocation66_spill] sm:$0xff] }
 0x56b   : > { %v2911_v21 = vadd.f32 %v11866_v26, %v11865_v53 }
 0x56c   : > { %4746 = vmatpush.msrb.mxu1 %v10684_v6 }
 0x56d   : > { %4080 = vmatmul.f32.gmra.mxu1 %v10548_v63  ;;  %4722 = vmatmul.msk.f32.vlgmr.msra.gmra.mxu2 %vm974_vm3, %v10508_v28  ;;  %v2981_v28 = vadd.f32 %v10430_v22, %v10479_v60  ;;  %v2984_v60 = vadd.f32 %v10477_v40, %v10504_v7  ;;  %v11863_v7 = vld [vmem:[#allocation38_spill] sm:$0xff] }
 0x56e   : > { %4747 = vmatpush.msrb.mxu1 %v10705_v0  ;;  %4716 = vmatmul.msk.f32.gmra.mxu3 %vm974_vm3, %v10606_v37  ;;  %v3584_v44 = vpop.f32.mrf.mxu2 }
 0x56f   : > { %4159 = vmatmul.f32.vlgmr.msra.gmra.mxu0 %v10506_v56  ;;  %v10816_v29 = vadd.f32 %v3584_v44, %v3544_v25  ;;  %v3508_v41 = vpop.f32.mrf.mxu3 }
 0x570   : > { %v3467_v35 = vpop.f32.mrf.mxu1  ;;  %v3546_v36 = vpop.f32.mrf.mxu0 }
 0x571   : > { %v3468_v8 = vadd.f32 %v3467_v35, %v2902_v55  ;;  %v3547_v32 = vadd.f32 %v3546_v36, %v2981_v28  ;;  %v11868_v36 = vld [vmem:[#allocation33_spill] sm:$0xff]  ;;  %v11869_v28 = vld [vmem:[#allocation48_spill] sm:$0xff] }
 0x573   : > { %v10818_v6 = vadd.f32 %v3508_v41, %v3468_v8 }
 0x575   : > { %4083 = vmatmul.f32.gmra.mxu1 %v10617_v16  ;;  %4723 = vmatmul.msk.f32.gmra.mxu2 %vm974_vm3, %v10553_v2 }
 0x576   : > { %4717 = vmatmul.msk.f32.gmra.mxu3 %vm974_vm3, %v10666_v38 }
 0x577   : > { %4162 = vmatmul.f32.gmra.mxu0 %v10548_v63  ;;  %v3587_v56 = vpop.f32.mrf.mxu2  ;;  %v11862_v63 = vld [vmem:[#allocation25_spill] sm:$0xff] }
 0x578   : > { %v10830_v9 = vadd.f32 %v3587_v56, %v3547_v32  ;;  %v3470_v12 = vpop.f32.mrf.mxu1  ;;  %v3511_v5 = vpop.f32.mrf.mxu3  ;;  %v2908_v2 = vadd.f32 %v11862_v63, %v11861_v33  ;;  %v2914_v32 = vadd.f32 %v11869_v28, %v11868_v36  ;;  %v11872_v33 = vld [vmem:[#allocation45_spill] sm:$0xff]  ;;  %v11873_v63 = vld [vmem:[#allocation16_spill] sm:$0xff] }
 0x579   : > { %v3471_v45 = vadd.f32 %v3470_v12, %v2905_v39  ;;  %v3549_v0 = vpop.f32.mrf.mxu0 }
 0x57a   : > { %v3550_v59 = vadd.f32 %v3549_v0, %v2984_v60  ;;  %v11871_v60 = vld [vmem:[#allocation81_spill] sm:$0xff] }
 0x57b   : > { %v10832_v22 = vadd.f32 %v3511_v5, %v3471_v45 }
 0x57d   : > { %4086 = vmatmul.f32.gmra.mxu1 %v10676_v15  ;;  %4724 = vmatmul.msk.f32.gmra.mxu2 %vm974_vm3, %v10606_v37  ;;  %v11864_v37 = vld [vmem:[#allocation54_spill] sm:$0xff] }
 0x57e   : > { %4718 = vmatmul.msk.f32.gmra.mxu3 %vm974_vm3, %v10714_v42  ;;  %v2987_v30 = vadd.f32 %v11864_v37, %v11863_v7 }
 0x57f   : > { %4165 = vmatmul.f32.gmra.mxu0 %v10617_v16  ;;  %v3590_v18 = vpop.f32.mrf.mxu2 }
 0x580   : > { %v10844_v47 = vadd.f32 %v3590_v18, %v3550_v59  ;;  %v3473_v34 = vpop.f32.mrf.mxu1  ;;  %v3514_v23 = vpop.f32.mrf.mxu3 }
 0x581   : > { %v3474_v48 = vadd.f32 %v3473_v34, %v2908_v2  ;;  %v3552_v31 = vpop.f32.mrf.mxu0  ;;  %v2917_v2 = vadd.f32 %v11873_v63, %v11872_v33 }
 0x582   : > { %v3553_v16 = vadd.f32 %v3552_v31, %v2987_v30  ;;  %v11874_v30 = vld [vmem:[#allocation70_spill] sm:$0xff] }
 0x583   : > { %v10846_v40 = vadd.f32 %v3514_v23, %v3474_v48 }
 0x585   : > { %4089 = vmatmul.f32.gmra.mxu1 %v10722_v51  ;;  %4725 = vmatmul.msk.f32.gmra.mxu2 %vm974_vm3, %v10666_v38  ;;  %v11867_v38 = vld [vmem:[#allocation53_spill] sm:$0xff] }
 0x586   : > { %4719 = vmatmul.msk.f32.gmra.mxu3 %vm974_vm3, %v10741_v58  ;;  %v2990_v8 = vadd.f32 %v11867_v38, %v10602_v62 }
 0x587   : > { %4168 = vmatmul.f32.gmra.mxu0 %v10676_v15  ;;  %v3593_v50 = vpop.f32.mrf.mxu2 }
 0x588   : > { %v10858_v19 = vadd.f32 %v3593_v50, %v3553_v16  ;;  %v3476_v25 = vpop.f32.mrf.mxu1  ;;  %v3517_v55 = vpop.f32.mrf.mxu3  ;;  %v11875_v16 = vld [vmem:[#allocation49_spill] sm:$0xff] }
 0x589   : > { %v3477_v44 = vadd.f32 %v3476_v25, %v2911_v21  ;;  %v3555_v41 = vpop.f32.mrf.mxu0  ;;  %v3060_v53 = vadd.f32 %v11875_v16, %v11874_v30 }
 0x58a   : > { %v3556_v15 = vadd.f32 %v3555_v41, %v2990_v8 }
 0x58b   : > { %v10860_v35 = vadd.f32 %v3517_v55, %v3477_v44 }
 0x58d   : > { %4092 = vmatmul.f32.gmra.mxu1 %v10747_v3  ;;  %4726 = vmatmul.msk.f32.gmra.mxu2 %vm974_vm3, %v10714_v42  ;;  %v11870_v42 = vld [vmem:[#allocation82_spill] sm:$0xff] }
 0x58e   : > { %4720 = vmatmul.msk.f32.gmra.mxu3 %vm974_vm3, %v10766_v17  ;;  %v2993_v59 = vadd.f32 %v11871_v60, %v11870_v42 }
 0x58f   : > { %4171 = vmatmul.f32.gmra.mxu0 %v10722_v51  ;;  %v3596_v39 = vpop.f32.mrf.mxu2 }
 0x590   : > { %v10872_v56 = vadd.f32 %v3596_v39, %v3556_v15  ;;  %v3520_v5 = vpop.f32.mrf.mxu3  ;;  %v11878_v39 = vld [vmem:[#allocation40_spill] sm:$0xff] }
 0x591   : > { %v3479_v12 = vpop.f32.mrf.mxu1  ;;  %v3558_v0 = vpop.f32.mrf.mxu0 }
 0x592   : > { %v3480_v45 = vadd.f32 %v3479_v12, %v2914_v32  ;;  %v3559_v51 = vadd.f32 %v3558_v0, %v2993_v59  ;;  %v11879_v12 = vld [vmem:[#allocation20_spill] sm:$0xff] }
 0x593   : > { %v11881_v0 = vld [vmem:[#allocation36_spill] sm:$0xff] }
 0x594   : > { %v10874_v62 = vadd.f32 %v3520_v5, %v3480_v45  ;;  %v2896_v45 = vadd.f32 %v11879_v12, %v11878_v39  ;;  %v10913_v5 = vpop.permute.xlu2 %4251 }
 0x595   : > { %4095 = vmatmul.f32.gmra.mxu1 %v10769_v43  ;;  %4727 = vmatmul.msk.f32.gmra.mxu2 %vm974_vm3, %v10741_v58  ;;  %v2996_v58 = vadd.f32 %v10712_v54, %v10717_v4  ;;  %v2999_v4 = vadd.f32 %v10745_v61, %v10750_v10  ;;  %v11880_v10 = vld [vmem:[#allocation61_spill] sm:$0xff] }
 0x596   : > { %4721 = vmatmul.msk.f32.gmra.mxu3 %vm974_vm3, %v10784_v1  ;;  %v3462_v61 = vadd.f32 %v10779_v57, %v2896_v45  ;;  %v3066_v42 = vadd.f32 %v11881_v0, %v11880_v10  ;;  %v11882_v57 = vld [vmem:[#allocation80_spill] sm:$0xff] }
 0x597   : > { %4174 = vmatmul.f32.gmra.mxu0 %v10747_v3 }
 0x598   : > { %v3599_v18 = vpop.f32.mrf.mxu2  ;;  %v3503_v59 = vadd.f32 %v10775_v27, %v3462_v61 }
 0x599   : > { %v10886_v34 = vadd.f32 %v3599_v18, %v3559_v51  ;;  %v3482_v48 = vpop.f32.mrf.mxu1  ;;  %v3523_v31 = vpop.f32.mrf.mxu3 }
 0x59a   : > { %v3483_v23 = vadd.f32 %v3482_v48, %v2917_v2  ;;  %v3561_v7 = vpop.f32.mrf.mxu0 }
 0x59b   : > { %v3562_v3 = vadd.f32 %v3561_v7, %v2996_v58  ;;  %v10925_v7 = vpop.permute.xlu1 %4261 }
 0x59c   : > { %v10888_v37 = vadd.f32 %v3523_v31, %v3483_v23  ;;  %v10921_v23 = vpop.permute.xlu0 %4256  ;;  %v10927_v58 = vpop.permute.xlu2 %4266 }
 0x59d   : > { %4098 = vmatmul.f32.gmra.mxu1 %v10787_v52  ;;  %4728 = vmatmul.msk.f32.gmra.mxu2 %vm974_vm3, %v10766_v17 }
 0x59e   : > { %4729 = vmatmul.msk.f32.vlgmr.msrb.gmra.mxu3 %vm974_vm3, %v10784_v1  ;;  %v11877_v1 = vld [vmem:[#allocation32_spill] sm:$0xff] }
 0x59f   : > { %4177 = vmatmul.f32.gmra.mxu0 %v10769_v43  ;;  %v11876_v43 = vld [vmem:[#allocation43_spill] sm:$0xff] }
 0x5a0   : > { %v3602_v26 = vpop.f32.mrf.mxu2  ;;  %v3063_v41 = vadd.f32 %v11877_v1, %v11876_v43 }
 0x5a1   : > { %v10900_v21 = vadd.f32 %v3602_v26, %v3562_v3  ;;  %v3625_v50 = vpop.f32.mrf.mxu1  ;;  %v3666_v55 = vpop.f32.mrf.mxu3  ;;  %v11883_v3 = vld [vmem:[#allocation73_spill] sm:$0xff] }
 0x5a2   : > { %v3564_v25 = vpop.f32.mrf.mxu0  ;;  %v3626_v44 = vadd.f32 %v3625_v50, %v3060_v53  ;;  %v3069_v30 = vadd.f32 %v11883_v3, %v11882_v57 }
 0x5a3   : > { %v3565_v17 = vadd.f32 %v3564_v25, %v2999_v4 }
 0x5a4   : > { %v10902_v54 = vadd.f32 %v3666_v55, %v3626_v44  ;;  %v10936_v1 = vpop.permute.xlu0 %4271 }
 0x5a5   : > { %4180 = vmatmul.f32.vlgmr.msrb.gmra.mxu1 %v10787_v52 }
 0x5a8   : > { %v3605_v38 = vpop.f32.mrf.mxu2 }
 0x5a9   : > { %v10909_v8 = vadd.f32 %v3605_v38, %v3565_v17  ;;  %v3628_v15 = vpop.f32.mrf.mxu1  ;;  %v3669_v28 = vpop.f32.mrf.mxu3 }
 0x5aa   : > { %v3629_v36 = vadd.f32 %v3628_v15, %v3063_v41  ;;  %v3996_v32 = vpop.f32.mrf.mxu0  ;;  %v10938_v41 = vpop.permute.xlu1 %4339 }
 0x5ab   : > { %v10940_v15 = vpop.permute.xlu2 %4344 }
 0x5ac   : > { %v10915_v52 = vadd.f32 %v3669_v28, %v3629_v36  ;;  %v11884_v36 = vld [vmem:[#allocation74_spill] sm:$0xff] }
 0x5ad   : > { %v3072_v28 = vadd.f32 %v10703_v46, %v11884_v36  ;;  %v3075_v46 = vadd.f32 %v10737_v24, %v10720_v20 }
 0x5b0   : > { %v4037_v60 = vpop.f32.mrf.mxu2 }
 0x5b1   : > { %v4038_v51 = vadd.f32 %v4037_v60, %v3996_v32  ;;  %v3631_v33 = vpop.f32.mrf.mxu1  ;;  %v3672_v2 = vpop.f32.mrf.mxu3 }
 0x5b2   : > { %v3632_v63 = vadd.f32 %v3631_v33, %v3066_v42  ;;  %v3999_v18 = vpop.f32.mrf.mxu0 }
 0x5b3   : > { %v4225_v48 = vadd.f32 %v4038_v51, %v3503_v59  ;;  %v10961_v24 = vpop.permute.xlu2 %4354 }
 0x5b4   : > { %v10923_v31 = vadd.f32 %v3672_v2, %v3632_v63  ;;  %v10952_v63 = vpop.permute.xlu0 %4349 }
 0x5b5   : > { %v4289_v27 = vadd.f32 %v10913_v5, %v4225_v48 }
 0x5b7   : > { %v4313_v17 = vmax.f32 %v4289_v27, 0.0 }
 0x5b8   : > { %v4040_v16 = vpop.f32.mrf.mxu2 }
 0x5b9   : > { %v4041_v53 = vadd.f32 %v4040_v16, %v3999_v18  ;;  %v3634_v26 = vpop.f32.mrf.mxu1  ;;  %v3675_v25 = vpop.f32.mrf.mxu3  ;;  %v4377_v39 = vmul.f32 %v10938_v41, %v4313_v17 }
 0x5ba   : > { %v3635_v50 = vadd.f32 %v3634_v26, %v3069_v30 }
 0x5bb   : > { %v4002_v44 = vpop.f32.mrf.mxu0  ;;  %v4228_v55 = vadd.f32 %v4041_v53, %v10802_v11 }
 0x5bc   : > { %v10933_v4 = vadd.f32 %v3675_v25, %v3635_v50  ;;  %v10959_v50 = vpop.permute.xlu1 %4276  ;;  %v3078_v25 = vadd.f32 %v10764_v13, %v10755_v49 }
 0x5bd   : > { %v4292_v43 = vadd.f32 %v10921_v23, %v4228_v55 }
 0x5bf   : > { %v4316_v38 = vmax.f32 %v4292_v43, 0.0 }
 0x5c0   : > { %v4043_v32 = vpop.f32.mrf.mxu2 }
 0x5c1   : > { %v4380_v11 = vmul.f32 %v10940_v15, %v4316_v38  ;;  %v4044_v12 = vadd.f32 %v4043_v32, %v4002_v44  ;;  %v3637_v45 = vpop.f32.mrf.mxu1  ;;  %v3678_v10 = vpop.f32.mrf.mxu3 }
 0x5c2   : > { %v3638_v61 = vadd.f32 %v3637_v45, %v3072_v28 }
 0x5c3   : > { %v4401_v0 = vadd.f32 %v4380_v11, %v4377_v39  ;;  %v4231_v42 = vadd.f32 %v4044_v12, %v10818_v6  ;;  %v10970_v12 = vpop.permute.xlu0 %4281 }
 0x5c4   : > { %v4005_v60 = vpop.f32.mrf.mxu0  ;;  %v10947_v59 = vadd.f32 %v3678_v10, %v3638_v61  ;;  %v10972_v61 = vpop.permute.xlu1 %4359 }
 0x5c5   : > { %v4295_v51 = vadd.f32 %v10925_v7, %v4231_v42 }
 0x5c7   : > { %v4319_v33 = vmax.f32 %v4295_v51, 0.0 }
 0x5c8   : > { %v4046_v2 = vpop.f32.mrf.mxu2 }
 0x5c9   : > { %v4383_v18 = vmul.f32 %v10952_v63, %v4319_v33  ;;  %v4047_v48 = vadd.f32 %v4046_v2, %v4005_v60  ;;  %v3640_v57 = vpop.f32.mrf.mxu1  ;;  %v3681_v30 = vpop.f32.mrf.mxu3 }
 0x5ca   : > { %v3641_v3 = vadd.f32 %v3640_v57, %v3075_v46 }
 0x5cb   : > { %v4402_v16 = vadd.f32 %v4401_v0, %v4383_v18  ;;  %v4234_v6 = vadd.f32 %v4047_v48, %v10832_v22  ;;  %v10980_v48 = vpop.permute.xlu0 %4364 }
 0x5cc   : > { %v4008_v27 = vpop.f32.mrf.mxu0  ;;  %v10956_v53 = vadd.f32 %v3681_v30, %v3641_v3 }
 0x5cd   : > { %v4298_v26 = vadd.f32 %v10927_v58, %v4234_v6 }
 0x5cf   : > { %v4322_v20 = vmax.f32 %v4298_v26, 0.0 }
 0x5d0   : > { %v4049_v44 = vpop.f32.mrf.mxu2 }
 0x5d1   : > { %v4386_v55 = vmul.f32 %v10961_v24, %v4322_v20  ;;  %v4050_v17 = vadd.f32 %v4049_v44, %v4008_v27  ;;  %v3684_v22 = vpop.f32.mrf.mxu3 }
 0x5d2   : > { %v3643_v43 = vpop.f32.mrf.mxu1 }
 0x5d3   : > { %v3644_v38 = vadd.f32 %v3643_v43, %v3078_v25  ;;  %v4403_v36 = vadd.f32 %v4402_v16, %v4386_v55  ;;  %v4237_v28 = vadd.f32 %v4050_v17, %v10846_v40  ;;  %v10985_v25 = vpop.permute.xlu2 %4286  ;;  %v10988_v17 = vpop.permute.xlu1 %4369 }
 0x5d4   : > { %v4011_v32 = vpop.f32.mrf.mxu0 }
 0x5d5   : > { %v10967_v39 = vadd.f32 %v3684_v22, %v3644_v38  ;;  %v4301_v11 = vadd.f32 %v10936_v1, %v4237_v28 }
 0x5d7   : > { %v4325_v45 = vmax.f32 %v4301_v11, 0.0 }
 0x5d8   : > { %v4052_v49 = vpop.f32.mrf.mxu2 }
 0x5d9   : > { %v4389_v13 = vmul.f32 %v10972_v61, %v4325_v45  ;;  %v4053_v10 = vadd.f32 %v4052_v49, %v4011_v32  ;;  %v3687_v60 = vpop.f32.mrf.mxu3 }
 0x5da   : > { %v3646_v0 = vpop.f32.mrf.mxu1 }
 0x5db   : > { %v3647_v42 = vadd.f32 %v3646_v0, %v10790_v14  ;;  %v4404_v51 = vadd.f32 %v4403_v36, %v4389_v13  ;;  %v4240_v40 = vadd.f32 %v4053_v10, %v10860_v35 }
 0x5dc   : > { %v4014_v33 = vpop.f32.mrf.mxu0 }
 0x5dd   : > { %v10977_v46 = vadd.f32 %v3687_v60, %v3647_v42  ;;  %v4304_v2 = vadd.f32 %v10959_v50, %v4240_v40  ;;  %v10996_v60 = vpop.permute.xlu2 %4374 }
 0x5df   : > { %v4328_v18 = vmax.f32 %v4304_v2, 0.0 }
 0x5e0   : > { %v4055_v57 = vpop.f32.mrf.mxu2 }
 0x5e1   : > { %v4392_v3 = vmul.f32 %v10980_v48, %v4328_v18  ;;  %v4056_v30 = vadd.f32 %v4055_v57, %v4014_v33  ;;  %v4119_v6 = vpop.f32.mrf.mxu3 }
 0x5e2   : > { %v4078_v16 = vpop.f32.mrf.mxu1 }
 0x5e3   : > { %v4405_v27 = vadd.f32 %v4404_v51, %v4392_v3  ;;  %v4243_v14 = vadd.f32 %v4056_v30, %v10874_v62  ;;  %v4120_v26 = vadd.f32 %v4119_v6, %v4078_v16 }
 0x5e4   : > { %v4017_v20 = vpop.f32.mrf.mxu0 }
 0x5e5   : > { %v4307_v35 = vadd.f32 %v10970_v12, %v4243_v14  ;;  %v4226_v44 = vadd.f32 %v4120_v26, %v10816_v29 }
 0x5e7   : > { %v4331_v55 = vmax.f32 %v4307_v35, 0.0  ;;  %v4290_v28 = vadd.f32 %v10913_v5, %v4226_v44 }
 0x5e8   : > { %v4058_v43 = vpop.f32.mrf.mxu2 }
 0x5e9   : > { %v4395_v38 = vmul.f32 %v10988_v17, %v4331_v55  ;;  %v4059_v22 = vadd.f32 %v4058_v43, %v4017_v20  ;;  %v4122_v32 = vpop.f32.mrf.mxu3  ;;  %v4314_v10 = vmax.f32 %v4290_v28, 0.0 }
 0x5ea   : > { %v4081_v36 = vpop.f32.mrf.mxu1 }
 0x5eb   : > { %v4406_v62 = vadd.f32 %v4405_v27, %v4395_v38  ;;  %v4246_v11 = vadd.f32 %v4059_v22, %v10888_v37  ;;  %v4123_v45 = vadd.f32 %v4122_v32, %v4081_v36  ;;  %v4378_v37 = vmul.f32 %v10938_v41, %v4314_v10 }
 0x5ec   : > { %v4160_v49 = vpop.f32.mrf.mxu0 }
 0x5ed   : > { %v4310_v13 = vadd.f32 %v10985_v25, %v4246_v11  ;;  %v4229_v29 = vadd.f32 %v4123_v45, %v10830_v9 }
 0x5ef   : > { %v4334_v0 = vmax.f32 %v4310_v13, 0.0  ;;  %v4293_v42 = vadd.f32 %v10921_v23, %v4229_v29 }
 0x5f0   : > { %v4201_v51 = vpop.f32.mrf.mxu2 }
 0x5f1   : > { %v4398_v40 = vmul.f32 %v10996_v60, %v4334_v0  ;;  %v4317_v33 = vmax.f32 %v4293_v42, 0.0  ;;  %v4202_v2 = vadd.f32 %v4201_v51, %v4160_v49  ;;  %v4125_v57 = vpop.f32.mrf.mxu3 }
 0x5f2   : > { %v4084_v18 = vpop.f32.mrf.mxu1 }
 0x5f3   : > { %v11000_v3 = vadd.f32 %v4406_v62, %v4398_v40  ;;  %v4381_v30 = vmul.f32 %v10940_v15, %v4317_v33  ;;  %v4227_v9 = vadd.f32 %v4202_v2, %v10902_v54  ;;  %v4126_v16 = vadd.f32 %v4125_v57, %v4084_v18 }
 0x5f4   : > { %v4163_v6 = vpop.f32.mrf.mxu0 }
 0x5f5   : > { %v4414_v27 = vadd.f32 %v4381_v30, %v4378_v37  ;;  %v4232_v14 = vadd.f32 %v4126_v16, %v10844_v47  ;;  %v4291_v26 = vadd.f32 %v10913_v5, %v4227_v9 }
 0x5f7   : > { %v4296_v20 = vadd.f32 %v10925_v7, %v4232_v14  ;;  %v4315_v22 = vmax.f32 %v4291_v26, 0.0 }
 0x5f8   : > { %v4204_v35 = vpop.f32.mrf.mxu2 }
 0x5f9   : > { %v4320_v44 = vmax.f32 %v4296_v20, 0.0  ;;  %v4205_v55 = vadd.f32 %v4204_v35, %v4163_v6  ;;  %v4128_v38 = vpop.f32.mrf.mxu3  ;;  %v4379_v5 = vmul.f32 %v10938_v41, %v4315_v22 }
 0x5fa   : > { %v4087_v43 = vpop.f32.mrf.mxu1 }
 0x5fb   : > { %v4384_v36 = vmul.f32 %v10952_v63, %v4320_v44  ;;  %v4230_v28 = vadd.f32 %v4205_v55, %v10915_v52  ;;  %v4129_v32 = vadd.f32 %v4128_v38, %v4087_v43  ;;  %v4427_v52 = vsel %vm2213_vm7, %v4379_v5, 0.0 }
 0x5fc   : > { %v4166_v54 = vpop.f32.mrf.mxu0 }
 0x5fd   : > { %v4415_v62 = vadd.f32 %v4414_v27, %v4384_v36  ;;  %v4294_v11 = vadd.f32 %v10921_v23, %v4230_v28  ;;  %v4235_v47 = vadd.f32 %v4129_v32, %v10858_v19 }
 0x5ff   : > { %v4318_v45 = vmax.f32 %v4294_v11, 0.0  ;;  %v4299_v49 = vadd.f32 %v10927_v58, %v4235_v47 }
 0x600   : > { %v4207_v13 = vpop.f32.mrf.mxu2 }
 0x601   : > { %v4382_v29 = vmul.f32 %v10940_v15, %v4318_v45  ;;  %v4208_v10 = vadd.f32 %v4207_v13, %v4166_v54  ;;  %v4323_v42 = vmax.f32 %v4299_v49, 0.0  ;;  %v4131_v51 = vpop.f32.mrf.mxu3 }
 0x602   : > { %v4090_v0 = vpop.f32.mrf.mxu1 }
 0x603   : > { %v4428_v40 = vsel %vm2213_vm7, %v4382_v29, 0.0  ;;  %v4233_v23 = vadd.f32 %v4208_v10, %v10923_v31  ;;  %v4132_v33 = vadd.f32 %v4131_v51, %v4090_v0  ;;  %v4387_v41 = vmul.f32 %v10961_v24, %v4323_v42 }
 0x604   : > { %v4169_v19 = vpop.f32.mrf.mxu0  ;;  %v4429_v2 = vadd.f32 %v4428_v40, %v4427_v52 }
 0x605   : > { %v4297_v18 = vadd.f32 %v10925_v7, %v4233_v23  ;;  %v4238_v37 = vadd.f32 %v4132_v33, %v10872_v56  ;;  %v4416_v15 = vadd.f32 %v4415_v62, %v4387_v41 }
 0x607   : > { %v4321_v57 = vmax.f32 %v4297_v18, 0.0  ;;  %v4302_v30 = vadd.f32 %v10936_v1, %v4238_v37 }
 0x608   : > { %v4210_v9 = vpop.f32.mrf.mxu2 }
 0x609   : > { %v4385_v16 = vmul.f32 %v10952_v63, %v4321_v57  ;;  %v4326_v6 = vmax.f32 %v4302_v30, 0.0  ;;  %v4211_v27 = vadd.f32 %v4210_v9, %v4169_v19  ;;  %v4134_v31 = vpop.f32.mrf.mxu3 }
 0x60a   : > { %v4093_v14 = vpop.f32.mrf.mxu1 }
 0x60b   : > { %v4430_v26 = vsel %vm2213_vm7, %v4385_v16, 0.0  ;;  %v4390_v20 = vmul.f32 %v10972_v61, %v4326_v6  ;;  %v4236_v35 = vadd.f32 %v4211_v27, %v10933_v4  ;;  %v4135_v7 = vadd.f32 %v4134_v31, %v4093_v14 }
 0x60c   : > { %v4172_v44 = vpop.f32.mrf.mxu0  ;;  %v4431_v56 = vadd.f32 %v4430_v26, %v4429_v2 }
 0x60d   : > { %v4417_v55 = vadd.f32 %v4416_v15, %v4390_v20  ;;  %v4300_v43 = vadd.f32 %v10927_v58, %v4236_v35  ;;  %v4241_v38 = vadd.f32 %v4135_v7, %v10886_v34 }
 0x60f   : > { %v4324_v22 = vmax.f32 %v4300_v43, 0.0  ;;  %v4305_v63 = vadd.f32 %v10959_v50, %v4241_v38 }
 0x610   : > { %v4213_v36 = vpop.f32.mrf.mxu2 }
 0x611   : > { %v4388_v28 = vmul.f32 %v10961_v24, %v4324_v22  ;;  %v4329_v54 = vmax.f32 %v4305_v63, 0.0  ;;  %v4214_v32 = vadd.f32 %v4213_v36, %v4172_v44  ;;  %v4137_v11 = vpop.f32.mrf.mxu3 }
 0x612   : > { %v4096_v62 = vpop.f32.mrf.mxu1 }
 0x613   : > { %v4432_v4 = vsel %vm2213_vm7, %v4388_v28, 0.0  ;;  %v4393_v47 = vmul.f32 %v10980_v48, %v4329_v54  ;;  %v4239_v5 = vadd.f32 %v4214_v32, %v10947_v59  ;;  %v4138_v45 = vadd.f32 %v4137_v11, %v4096_v62  ;;  %v4451_v62 = vpop.permute.xlu0 %4450 }
 0x614   : > { %v4433_v58 = vadd.f32 %v4432_v4, %v4431_v56  ;;  %v4175_v49 = vpop.f32.mrf.mxu0 }
 0x615   : > { %v4418_v34 = vadd.f32 %v4417_v55, %v4393_v47  ;;  %v4303_v13 = vadd.f32 %v10936_v1, %v4239_v5  ;;  %v4244_v29 = vadd.f32 %v4138_v45, %v10900_v21  ;;  %v4408_v21 = vrot.slane %v11000_v3, 4 }
 0x616   : > { %v4453_v47 = vperm.slane %v4451_v62, 0 }
 0x617   : > { %v4327_v10 = vmax.f32 %v4303_v13, 0.0  ;;  %v4308_v24 = vadd.f32 %v10970_v12, %v4244_v29  ;;  %v4409_v9 = vadd.f32 %v4408_v21, %v11000_v3 }
 0x618   : > { %v4216_v0 = vpop.f32.mrf.mxu2 }
 0x619   : > { %v4391_v42 = vmul.f32 %v10972_v61, %v4327_v10  ;;  %v4332_v51 = vmax.f32 %v4308_v24, 0.0  ;;  %v4217_v52 = vadd.f32 %v4216_v0, %v4175_v49  ;;  %v4140_v23 = vpop.f32.mrf.mxu3  ;;  %v4410_v35 = vrot.slane %v4409_v9, 2 }
 0x61a   : > { %v4099_v40 = vpop.f32.mrf.mxu1  ;;  %v4467_v0 = vlaneseq }
 0x61b   : > { %v4434_v59 = vsel %vm2213_vm7, %v4391_v42, 0.0  ;;  %v4396_v33 = vmul.f32 %v10988_v17, %v4332_v51  ;;  %v4242_v19 = vadd.f32 %v4217_v52, %v10956_v53  ;;  %v4141_v2 = vadd.f32 %v4140_v23, %v4099_v40 }
 0x61c   : > { %v4435_v1 = vadd.f32 %v4434_v59, %v4433_v58  ;;  %v4178_v61 = vpop.f32.mrf.mxu0  ;;  %v4411_v43 = vadd.f32 %v4410_v35, %v4409_v9  ;;  %vm4469_vm13 = vcmp.lt.s32.totalorder %v4467_v0, 288 }
 0x61d   : > { %v4419_v41 = vadd.f32 %v4418_v34, %v4396_v33  ;;  %v4306_v18 = vadd.f32 %v10959_v50, %v4242_v19  ;;  %v4247_v37 = vadd.f32 %v4141_v2, %v10909_v8 }
 0x61e   : > { %v4412_v32 = vrot.slane %v4411_v43, 1 }
 0x61f   : > { %v4330_v15 = vmax.f32 %v4306_v18, 0.0  ;;  %v4311_v57 = vadd.f32 %v10985_v25, %v4247_v37 }
 0x620   : > { %v4219_v30 = vpop.f32.mrf.mxu2  ;;  %v4413_v5 = vadd.f32 %v4412_v32, %v4411_v43 }
 0x621   : > { %v4394_v16 = vmul.f32 %v10980_v48, %v4330_v15  ;;  %v4335_v6 = vmax.f32 %v4311_v57, 0.0  ;;  %v4220_v53 = vadd.f32 %v4219_v30, %v4178_v61  ;;  %v4222_v14 = vpop.f32.mrf.mxu3 }
 0x622   : > { %v4181_v27 = vpop.f32.mrf.mxu1  ;;  %v4454_v34 = vadd.f32 %v4453_v47, %v4413_v5 }
 0x623   : > { %v4436_v31 = vsel %vm2213_vm7, %v4394_v16, 0.0  ;;  %v4399_v26 = vmul.f32 %v10996_v60, %v4335_v6  ;;  %v4245_v50 = vadd.f32 %v4220_v53, %v10967_v39  ;;  %v4223_v8 = vadd.f32 %v4222_v14, %v4181_v27 }
 0x624   : > { %v4437_v20 = vadd.f32 %v4436_v31, %v4435_v1 }
 0x625   : > { %v4420_v7 = vadd.f32 %v4419_v41, %v4399_v26  ;;  %v4309_v44 = vadd.f32 %v10970_v12, %v4245_v50  ;;  %v4248_v3 = vadd.f32 %v4223_v8, %v10977_v46 }
 0x627   : > { %v4421_v56 = vrot.slane %v4420_v7, 4  ;;  %v4333_v48 = vmax.f32 %v4309_v44, 0.0  ;;  %v4312_v55 = vadd.f32 %v10985_v25, %v4248_v3 }
 0x629   : > { %v4422_v38 = vadd.f32 %v4421_v56, %v4420_v7  ;;  %v4397_v22 = vmul.f32 %v10988_v17, %v4333_v48  ;;  %v4336_v63 = vmax.f32 %v4312_v55, 0.0 }
 0x62b   : > { %v4423_v36 = vrot.slane %v4422_v38, 2  ;;  %v4438_v39 = vsel %vm2213_vm7, %v4397_v22, 0.0  ;;  %v4400_v28 = vmul.f32 %v10996_v60, %v4336_v63 }
 0x62c   : > { %v4439_v54 = vadd.f32 %v4438_v39, %v4437_v20 }
 0x62d   : > { %v4424_v12 = vadd.f32 %v4423_v36, %v4422_v38  ;;  %v4440_v46 = vsel %vm2213_vm7, %v4400_v28, 0.0 }
 0x62e   : > { %v4441_v11 = vadd.f32 %v4440_v46, %v4439_v54 }
 0x62f   : > { %v4425_v25 = vrot.slane %v4424_v12, 1 }
 0x630   : > { %v4442_v4 = vrot.slane %v4441_v11, 4 }
 0x631   : > { %v4426_v17 = vadd.f32 %v4425_v25, %v4424_v12 }
 0x632   : > { %v4443_v45 = vadd.f32 %v4442_v4, %v4441_v11 }
 0x633   : > { %v4455_v58 = vadd.f32 %v4453_v47, %v4426_v17 }
 0x634   : > { %v4444_v49 = vrot.slane %v4443_v45, 2 }
 0x635   : > { %v4460_v60 = vrot.slane %v4455_v58, 7 }
 0x636   : > { %v4445_v13 = vadd.f32 %v4444_v49, %v4443_v45 }
 0x637   : > { %v4463_v29 = vsel %vm4462_vm11, %v4454_v34, %v4460_v60 }
 0x638   : > { %v4446_v10 = vrot.slane %v4445_v13, 1 }
 0x63a   : > { %v4447_v24 = vadd.f32 %v4446_v10, %v4445_v13 }
 0x63c   : > { %v4456_v42 = vadd.f32 %v4453_v47, %v4447_v24 }
 0x63e   : > { %v4461_v51 = vrot.slane %v4456_v42, 6 }
 0x640   : > { %v4465_v52 = vsel %vm4464_vm12, %v4463_v29, %v4461_v51 }
 0x641   : > { %4471 = vst.msk [vmem:[%s360_s23] sm:$0x7] %vm4469_vm13, %v4465_v52 }
 0x642   : > { %6307 = shalt.err (!%p6304_p10)
}
 0x643   : > { %4771 = dma.vmem_to_hbm [thread:$0]  (%p6481_p3), %s4486_s1, 48, %s4488_s20, %s4473_s6  }
 0x644 PF: > { %s4499_s3 = sand.u32 1, %s6338_s29   ;;  %p11885_p12 = scmp.ge.s32.totalorder %s6350_s10, 2 }
 0x645   : > { %s4500_s12 = scalar_lea.sflag [#allocation6], %s4499_s3 }
 0x646   : > { %p4785_p13 = pnand %p11885_p12, %p6450_p6 }
 0x648   : > { %p4786_p0 = pneg %p4785_p13 }
 0x64a   : > { %6333 = dma.done.wait (%p4786_p0), %s4500_s12, 48  }
 0x64b   : > { %6335 = vsyncadd (%p4786_p0), %s4500_s12, 4294967248  ;;  %s11886_s17 = sld [smem:[#allocation14_spill]]  ;;  %p24_p5 = scmp.ge.s32.totalorder %s6471_s27, 4  }
 0x64c   : > { %s11887_s29 = smov %s6342_s30  ;;  %s11888_s30 = smov %s6346_s9 }
 0x64d   : > { %s11890_s10 = smov %s6471_s27  ;;  %26 = sbr.rel (!%p24_p5) target bundleno = 9 (0x9), region = 105 }
 0x651   : > { %s11889_s9 = smov %s11886_s17 }
 0x652   :  { %4506 = vsyncpa [#allocation5], 1 }
 0x653   :  { %4508 = vsyncpa [#allocation5 + $0x1], 1 }
 0x654   :  { %4509 = vsyncpa [#allocation8], 1 }
 0x655   :  { %4510 = vsyncpa [#allocation6], 1 }
 0x656   :  { %4512 = vsyncpa [#allocation6 + $0x1], 1 }

</bundles_post_ra>
